<compile_context>
chip_gen: v5e
topology: v5e:2x2
jax: 0.10.0
libtpu: 0.0.40
codegen_flags: <defaults>
</compile_context>

<pallas_src>
import functools
import math

import numpy as np
import jax
import jax.numpy as jnp
from jax import lax
from jax.experimental import pallas as pl
from jax.experimental.pallas import tpu as pltpu

FEATURE_DIM = 32
NUM_HEADS = 4
HEAD_DIM = FEATURE_DIM // NUM_HEADS
LAYER_NAMES = ("self", "cross")   # matches AttentionalGNN(layer_names=...)
USE_HISTORY = False               # phattn / ghattn are None in this config
ABLATION = 0                      # default path: scores come from last layer's score1
SINKHORN_ITERS = 5


# ------------------------------ fused kernel ------------------------------

def _gnn_fused_kernel(
    # data
    desc0_ref, desc1_ref, dist_ref, unreach_ref, lmb_ref, fidxt_ref,
    # "self" layer (MultiHeadedAttention + propagation MLP) weights
    s_wqkv_ref, s_bqkv_ref, s_wm3_ref, s_bm_ref,
    s_w1a_ref, s_w1b_ref, s_b1_ref, s_w2_ref, s_b2_ref,
    # "cross" layer (MLPAttention) weights
    c_w1_ref, c_b1_ref, c_w2_ref, c_b2_ref,
    # constants
    eq_ref, ek_ref, logmu_ref, lognu_ref,
    # bin_score scalar (SMEM)
    alpha_ref,
    # output
    out_ref,
    # scratch
    cpl_ref,
):
    f32 = jnp.float32
    d = FEATURE_DIM
    hd = HEAD_DIM
    scale = 1.0 / math.sqrt(hd)

    def dot(a, b):
        return jnp.dot(a, b, preferred_element_type=f32)

    # ---- "self" layer: fused qkv projection, 4-head attention, merge,
    #      propagation MLP and residual add (scores of this layer are unused).
    def self_layer(x):                                    # x: (d, N) value
        n = x.shape[-1]
        qkv = dot(s_wqkv_ref[...], x) + s_bqkv_ref[...]   # (3d, N), head-permuted rows
        msg = jnp.zeros((d, n), f32)
        for h in range(NUM_HEADS):                        # sublane-tile-aligned slices
            qh = qkv[h * hd:(h + 1) * hd, :]
            kh = qkv[d + h * hd:d + (h + 1) * hd, :]
            vh = qkv[2 * d + h * hd:2 * d + (h + 1) * hd, :]
            s = lax.dot_general(qh, kh, (((0,), (0,)), ((), ())),
                                preferred_element_type=f32) * scale        # (N, N)
            p = jnp.exp(s - jnp.max(s, axis=-1, keepdims=True))
            p = p / jnp.sum(p, axis=-1, keepdims=True)
            xh = lax.dot_general(vh, p, (((1,), (1,)), ((), ())),
                                 preferred_element_type=f32)               # (hd, N)
            msg = msg + dot(s_wm3_ref[h], xh)             # merge conv, head block
        msg = msg + s_bm_ref[...]                                          # (d, N)
        # MLP([2d, 2d, d]) on cat([x, msg]) via column-split first layer
        h1 = jnp.maximum(dot(s_w1a_ref[...], x) + dot(s_w1b_ref[...], msg)
                         + s_b1_ref[...], 0.0)                             # (2d, N)
        return x + dot(s_w2_ref[...], h1) + s_b2_ref[...]                  # residual

    d0 = self_layer(desc0_ref[...])          # frontiers (d, nf)
    d1 = self_layer(desc1_ref[...])          # agents    (d, na)

    # ---- "cross" layer: MLP-attention raw scores (query=agents, key=frontiers).
    #      MLP([3d, d, 1]) on cat([q_rep, k_rep, dist]) without materializing
    #      the concat: split w1 into query / key / dist column blocks and
    #      broadcast the per-q / per-k terms onto the pair grid with 0/1 matmuls.
    a_q = dot(c_w1_ref[:, 0:d], d1)                        # (d, na)
    b_k = dot(c_w1_ref[:, d:2 * d], d0)                    # (d, nf)
    d_d = dot(c_w1_ref[:, 2 * d:3 * d], dist_ref[...])     # (d, na*nf)
    hid = jnp.maximum(dot(a_q, eq_ref[...]) + dot(b_k, ek_ref[...]) + d_d
                      + c_b1_ref[...], 0.0)                # (d, na*nf)
    s_flat = dot(c_w2_ref[...], hid) + c_b2_ref[...]       # (1, na*nf)
    # unflatten (1, na*nf) -> (na, nf) with two 0/1 selection matrices (no reshape)
    s_mat = lax.dot_general(eq_ref[...] * s_flat, ek_ref[...],
                            (((1,), (1,)), ((), ())),
                            preferred_element_type=f32)    # (na, nf)

    # ---- epilogue: log_softmax(dim=-2) + log-space optimal transport + masking
    na, nf = out_ref.shape
    z = s_mat - jnp.max(s_mat, axis=0, keepdims=True)
    scores_ls = z - jnp.log(jnp.sum(jnp.exp(z), axis=0, keepdims=True))

    alpha = alpha_ref[0, 0]                                # learned dustbin score
    cpl_ref[...] = jnp.zeros((na + 1, nf + 1), f32) + alpha
    cpl_ref[0:na, 0:nf] = scores_ls
    Z = cpl_ref[...]                                       # (na+1, nf+1) couplings

    def lse(t, axis):
        m = jnp.max(t, axis=axis, keepdims=True)
        return jnp.log(jnp.sum(jnp.exp(t - m), axis=axis, keepdims=True)) + m

    log_mu = logmu_ref[...]                                # (na+1, 1)
    log_nu = lognu_ref[...]                                # (1, nf+1)
    u = jnp.zeros((na + 1, 1), f32)
    v = jnp.zeros((1, nf + 1), f32)
    for _ in range(SINKHORN_ITERS):
        u = log_mu - lse(Z + v, axis=1)
        v = log_nu - lse(Z + u, axis=0)
    norm = -math.log(na + nf)
    ot = (Z + u + v - norm)[0:na, 0:nf]                    # drop dustbin row/col

    # invalid[a, f] = frontier f outside agent a's local map bounds
    fx = fidxt_ref[0:1, :]                                 # (1, nf)
    fy = fidxt_ref[1:2, :]                                 # (1, nf)
    invalid_b = ((fx < lmb_ref[:, 0:1]) | (fx >= lmb_ref[:, 1:2]) |
                 (fy < lmb_ref[:, 2:3]) | (fy >= lmb_ref[:, 3:4]))
    invalid = jnp.where(invalid_b, 1.0, 0.0)               # (na, nf)

    smin = jnp.min(jnp.min(ot, axis=1, keepdims=True), axis=0, keepdims=True)
    smax = jnp.max(jnp.max(ot, axis=1, keepdims=True), axis=0, keepdims=True)
    score_min = smin - smax                                # (1, 1)
    out_ref[...] = (ot + (score_min - 40.0) * invalid
                    + (score_min - 20.0) * unreach_ref[...]) * 15.0


# -------------------------- parameters (synthetic) -------------------------

def _init_conv(key, cout, cin):
    kw, kb = jax.random.split(key)
    lim = 1.0 / math.sqrt(cin)
    w = jax.random.uniform(kw, (cout, cin), jnp.float32, -lim, lim)
    b = jax.random.uniform(kb, (cout,), jnp.float32, -lim, lim)
    return w, b


def init_params(key, d, layer_names):
    params = {"layers": [], "bin_score": jnp.float32(1.0)}
    for name in layer_names:
        key, k0, k1, k2, k3, k4, k5, k6, k7 = jax.random.split(key, 9)
        layer = {"name": name}
        if name == "cross":
            # MLPAttention.mlp = MLP([3d, d, 1])
            layer["attn_mlp"] = [_init_conv(k0, d, 3 * d), _init_conv(k1, 1, d)]
        else:
            # MultiHeadedAttention: 3 proj convs + merge conv, all (d, d) k=1
            layer["proj"] = [_init_conv(k, d, d) for k in (k2, k3, k4)]
            layer["merge"] = _init_conv(k5, d, d)
        # AttentionalPropagation.mlp = MLP([2d, 2d, d]); last bias initialized to 0
        w1, b1 = _init_conv(k6, 2 * d, 2 * d)
        w2, b2 = _init_conv(k7, d, 2 * d)
        layer["mlp"] = [(w1, b1), (w2, jnp.zeros_like(b2))]
        params["layers"].append(layer)
    # TODO(synk): score_layer (MLP([2d, d, 1])) only feeds the ablation==1 path; omitted (ablation=0).
    return params


def prepare_params(params, n_agent, n_frontier):
    """Offline weight repack for the fused kernel (head-contiguous permutation,
    stacked q/k/v, split MLP / cross-attention weights, OT constants)."""
    assert [l["name"] for l in params["layers"]] == list(LAYER_NAMES)
    d = FEATURE_DIM
    hd = HEAD_DIM
    # new row r = h*hd + i  <-  original channel c = i*NUM_HEADS + h  (head-minor in torch view)
    perm = np.array([i * NUM_HEADS + h for h in range(NUM_HEADS) for i in range(hd)],
                    dtype=np.int32)
    layers = {l["name"]: l for l in params["layers"]}
    sl, cl = layers["self"], layers["cross"]

    (wq, bq), (wk, bk), (wv, bv) = sl["proj"]
    wm, bm = sl["merge"]
    (w1, b1), (w2, b2) = sl["mlp"]
    (cw1, cb1), (cw2, cb2) = cl["attn_mlp"]
    # NOTE: cl["mlp"] (cross-layer propagation MLP) and dist0 cannot influence
    # the returned scores for ablation=0 / use_history=False, so they are not
    # shipped to the TPU at all.

    wm_p = wm[:, perm]                                             # columns follow the row perm
    prepped = {
        "s_wqkv": jnp.concatenate([wq[perm], wk[perm], wv[perm]], axis=0),      # (3d, d)
        "s_bqkv": jnp.concatenate([bq[perm], bk[perm], bv[perm]]).reshape(3 * d, 1),
        "s_wm3": jnp.transpose(wm_p.reshape(d, NUM_HEADS, hd), (1, 0, 2)),      # (H, d, hd)
        "s_bm": bm.reshape(d, 1),
        "s_w1a": w1[:, :d],                                        # acts on x
        "s_w1b": w1[:, d:],                                        # acts on message
        "s_b1": b1.reshape(2 * d, 1),
        "s_w2": w2,
        "s_b2": b2.reshape(d, 1),
        "c_w1": cw1,                                               # (d, 3d): [Wq | Wk | Wd]
        "c_b1": cb1.reshape(d, 1),
        "c_w2": cw2,                                               # (1, d)
        "c_b2": cb2.reshape(1, 1),
        "alpha": jnp.asarray(params["bin_score"], jnp.float32).reshape(1, 1),
    }
    nq, nk = n_agent, n_frontier
    # 0/1 broadcast matrices: Eq[q, j] = [j // nk == q], Ek[k, j] = [j % nk == k]
    prepped["eq"] = jnp.asarray(
        np.kron(np.eye(nq, dtype=np.float32), np.ones((1, nk), np.float32)))
    prepped["ek"] = jnp.asarray(np.tile(np.eye(nk, dtype=np.float32), (1, nq)))
    norm = -math.log(nq + nk)
    log_mu = np.full((nq + 1, 1), norm, np.float32)
    log_mu[nq, 0] = math.log(nk) + norm
    log_nu = np.full((1, nk + 1), norm, np.float32)
    log_nu[0, nk] = math.log(nq) + norm
    prepped["log_mu"] = jnp.asarray(log_mu)
    prepped["log_nu"] = jnp.asarray(log_nu)
    return prepped


# ------------------------------ model forward ------------------------------

def attentional_gnn_forward(prepped, desc0, desc1, lmb, fidx, dist, unreachable):
    """desc0: (d, n_frontier), desc1: (d, n_agent), dist: (d, n_agent*n_frontier),
    lmb: (n_agent, 4), fidx: (n_frontier, 2), unreachable: (n_agent, n_frontier) bool.
    Returns (n_agent, n_frontier) float32 scores."""
    n_f = desc0.shape[-1]
    n_a = desc1.shape[-1]

    inputs = (
        desc0, desc1, dist,
        unreachable.astype(jnp.float32), lmb, fidx.T,
        prepped["s_wqkv"], prepped["s_bqkv"], prepped["s_wm3"], prepped["s_bm"],
        prepped["s_w1a"], prepped["s_w1b"], prepped["s_b1"],
        prepped["s_w2"], prepped["s_b2"],
        prepped["c_w1"], prepped["c_b1"], prepped["c_w2"], prepped["c_b2"],
        prepped["eq"], prepped["ek"], prepped["log_mu"], prepped["log_nu"],
        prepped["alpha"],
    )
    in_specs = (
        [pl.BlockSpec(memory_space=pltpu.MemorySpace.VMEM) for _ in range(len(inputs) - 1)]
        + [pl.BlockSpec(memory_space=pltpu.MemorySpace.SMEM)]   # bin_score scalar
    )
    return pl.pallas_call(
        _gnn_fused_kernel,
        out_shape=jax.ShapeDtypeStruct((n_a, n_f), jnp.float32),
        in_specs=in_specs,
        out_specs=pl.BlockSpec(memory_space=pltpu.MemorySpace.VMEM),
        scratch_shapes=[pltpu.VMEM((n_a + 1, n_f + 1), jnp.float32)],  # OT couplings
    )(*inputs)


# ----------------------------------- main -----------------------------------

if __name__ == "__main__":
    key = jax.random.PRNGKey(0)
    d = FEATURE_DIM
    n_frontier, n_agent = 8, 4

    k_par, k0, k1, k2, k3, k4, k5 = jax.random.split(key, 7)
    params = init_params(k_par, d, LAYER_NAMES)

    desc0 = jax.random.normal(k0, (d, n_frontier), jnp.float32)      # frontiers
    desc1 = jax.random.normal(k1, (d, n_agent), jnp.float32)         # agents
    dist = jax.random.normal(k2, (d, n_agent * n_frontier), jnp.float32)
    lmb = (jnp.tile(jnp.array([[0.0, 12.0, 0.0, 12.0]], jnp.float32), (n_agent, 1))
           + jax.random.uniform(k3, (n_agent, 4), jnp.float32, -1.0, 1.0))
    fidx = jax.random.uniform(k4, (n_frontier, 2), jnp.float32, 0.0, 16.0)
    unreachable = jax.random.bernoulli(k5, 0.2, (n_agent, n_frontier))

    prepped = prepare_params(params, n_agent, n_frontier)
    fwd = jax.jit(functools.partial(attentional_gnn_forward, prepped))
    out = fwd(desc0, desc1, lmb, fidx, dist, unreachable)
    jax.block_until_ready(out)
    assert out.shape == (n_agent, n_frontier)
    print("KERNEL_OK")
</pallas_src>

<mosaic_0001>
module attributes {stable_mosaic.version = 11 : i64} {
  func.func @_gnn_fused_kernel(%arg0: memref<32x8xf32, #tpu.memory_space<vmem>>, %arg1: memref<32x4xf32, #tpu.memory_space<vmem>>, %arg2: memref<32x32xf32, #tpu.memory_space<vmem>>, %arg3: memref<4x8xf32, #tpu.memory_space<vmem>>, %arg4: memref<4x4xf32, #tpu.memory_space<vmem>>, %arg5: memref<2x8xf32, #tpu.memory_space<vmem>>, %arg6: memref<96x32xf32, #tpu.memory_space<vmem>>, %arg7: memref<96x1xf32, #tpu.memory_space<vmem>>, %arg8: memref<4x32x8xf32, #tpu.memory_space<vmem>>, %arg9: memref<32x1xf32, #tpu.memory_space<vmem>>, %arg10: memref<64x32xf32, #tpu.memory_space<vmem>>, %arg11: memref<64x32xf32, #tpu.memory_space<vmem>>, %arg12: memref<64x1xf32, #tpu.memory_space<vmem>>, %arg13: memref<32x64xf32, #tpu.memory_space<vmem>>, %arg14: memref<32x1xf32, #tpu.memory_space<vmem>>, %arg15: memref<32x96xf32, #tpu.memory_space<vmem>>, %arg16: memref<32x1xf32, #tpu.memory_space<vmem>>, %arg17: memref<1x32xf32, #tpu.memory_space<vmem>>, %arg18: memref<1x1xf32, #tpu.memory_space<vmem>>, %arg19: memref<4x32xf32, #tpu.memory_space<vmem>>, %arg20: memref<8x32xf32, #tpu.memory_space<vmem>>, %arg21: memref<5x1xf32, #tpu.memory_space<vmem>>, %arg22: memref<1x9xf32, #tpu.memory_space<vmem>>, %arg23: memref<1x1xf32, #tpu.memory_space<smem>>, %arg24: memref<4x8xf32, #tpu.memory_space<vmem>>, %arg25: memref<5x9xf32, #tpu.memory_space<vmem>>) attributes {dimension_semantics = [], scalar_prefetch = 0 : i64, scratch_operands = 1 : i64, tpu.core_type = #tpu.core_type<tc>} {
    %c0 = arith.constant 0 : index
    %c0_0 = arith.constant 0 : index
    %0 = vector.load %arg0[%c0, %c0_0] : memref<32x8xf32, #tpu.memory_space<vmem>>, vector<32x8xf32>
    %c0_1 = arith.constant 0 : index
    %c0_2 = arith.constant 0 : index
    %1 = vector.load %arg6[%c0_1, %c0_2] : memref<96x32xf32, #tpu.memory_space<vmem>>, vector<96x32xf32>
    %cst = arith.constant dense<0.000000e+00> : vector<96x8xf32>
    %2 = tpu.matmul %1, %0, %cst {dimension_numbers = #tpu.dot_dimension_numbers<[1], [0], [0], [1], [0, 0, 1, 1], [], []>} : vector<96x32xf32>, vector<32x8xf32>, vector<96x8xf32> -> vector<96x8xf32>
    %c0_3 = arith.constant 0 : index
    %c0_4 = arith.constant 0 : index
    %3 = vector.load %arg7[%c0_3, %c0_4] : memref<96x1xf32, #tpu.memory_space<vmem>>, vector<96x1xf32>
    %4 = vector.broadcast %3 : vector<96x1xf32> to vector<96x8xf32>
    %5 = arith.addf %2, %4 : vector<96x8xf32>
    %cst_5 = arith.constant 0.000000e+00 : f32
    %6 = vector.broadcast %cst_5 : f32 to vector<32x8xf32>
    %7 = vector.extract_strided_slice %5 {offsets = [0, 0], sizes = [8, 8], strides = [1, 1]} : vector<96x8xf32> to vector<8x8xf32>
    %8 = vector.extract_strided_slice %5 {offsets = [32, 0], sizes = [8, 8], strides = [1, 1]} : vector<96x8xf32> to vector<8x8xf32>
    %9 = vector.extract_strided_slice %5 {offsets = [64, 0], sizes = [8, 8], strides = [1, 1]} : vector<96x8xf32> to vector<8x8xf32>
    %cst_6 = arith.constant dense<0.000000e+00> : vector<8x8xf32>
    %10 = tpu.matmul %7, %8, %cst_6 {dimension_numbers = #tpu.dot_dimension_numbers<[0], [0], [1], [1], [0, 1, 1, 1], [], []>} : vector<8x8xf32>, vector<8x8xf32>, vector<8x8xf32> -> vector<8x8xf32>
    %cst_7 = arith.constant 0.353553385 : f32
    %11 = vector.broadcast %cst_7 : f32 to vector<8x8xf32>
    %12 = arith.mulf %10, %11 : vector<8x8xf32>
    %cst_8 = arith.constant dense<0xFF800000> : vector<8xf32>
    %13 = vector.multi_reduction <maximumf>, %12, %cst_8 [1] : vector<8x8xf32> to vector<8xf32>
    %14 = vector.shape_cast %13 : vector<8xf32> to vector<8x1xf32>
    %15 = vector.broadcast %14 : vector<8x1xf32> to vector<8x8xf32>
    %16 = arith.subf %12, %15 : vector<8x8xf32>
    %17 = math.exp %16 : vector<8x8xf32>
    %cst_9 = arith.constant dense<0.000000e+00> : vector<8xf32>
    %18 = vector.multi_reduction <add>, %17, %cst_9 [1] : vector<8x8xf32> to vector<8xf32>
    %19 = vector.shape_cast %18 : vector<8xf32> to vector<8x1xf32>
    %20 = vector.broadcast %19 : vector<8x1xf32> to vector<8x8xf32>
    %21 = arith.divf %17, %20 : vector<8x8xf32>
    %cst_10 = arith.constant dense<0.000000e+00> : vector<8x8xf32>
    %22 = tpu.matmul %9, %21, %cst_10 {dimension_numbers = #tpu.dot_dimension_numbers<[1], [1], [0], [0], [0, 0, 1, 0], [], []>} : vector<8x8xf32>, vector<8x8xf32>, vector<8x8xf32> -> vector<8x8xf32>
    %c0_11 = arith.constant 0 : index
    %c0_12 = arith.constant 0 : index
    %c0_13 = arith.constant 0 : index
    %23 = vector.load %arg8[%c0_11, %c0_12, %c0_13] : memref<4x32x8xf32, #tpu.memory_space<vmem>>, vector<1x32x8xf32>
    %24 = vector.shape_cast %23 : vector<1x32x8xf32> to vector<32x8xf32>
    %cst_14 = arith.constant dense<0.000000e+00> : vector<32x8xf32>
    %25 = tpu.matmul %24, %22, %cst_14 {dimension_numbers = #tpu.dot_dimension_numbers<[1], [0], [0], [1], [0, 0, 1, 1], [], []>} : vector<32x8xf32>, vector<8x8xf32>, vector<32x8xf32> -> vector<32x8xf32>
    %26 = arith.addf %6, %25 : vector<32x8xf32>
    %27 = vector.extract_strided_slice %5 {offsets = [8, 0], sizes = [8, 8], strides = [1, 1]} : vector<96x8xf32> to vector<8x8xf32>
    %28 = vector.extract_strided_slice %5 {offsets = [40, 0], sizes = [8, 8], strides = [1, 1]} : vector<96x8xf32> to vector<8x8xf32>
    %29 = vector.extract_strided_slice %5 {offsets = [72, 0], sizes = [8, 8], strides = [1, 1]} : vector<96x8xf32> to vector<8x8xf32>
    %cst_15 = arith.constant dense<0.000000e+00> : vector<8x8xf32>
    %30 = tpu.matmul %27, %28, %cst_15 {dimension_numbers = #tpu.dot_dimension_numbers<[0], [0], [1], [1], [0, 1, 1, 1], [], []>} : vector<8x8xf32>, vector<8x8xf32>, vector<8x8xf32> -> vector<8x8xf32>
    %cst_16 = arith.constant 0.353553385 : f32
    %31 = vector.broadcast %cst_16 : f32 to vector<8x8xf32>
    %32 = arith.mulf %30, %31 : vector<8x8xf32>
    %cst_17 = arith.constant dense<0xFF800000> : vector<8xf32>
    %33 = vector.multi_reduction <maximumf>, %32, %cst_17 [1] : vector<8x8xf32> to vector<8xf32>
    %34 = vector.shape_cast %33 : vector<8xf32> to vector<8x1xf32>
    %35 = vector.broadcast %34 : vector<8x1xf32> to vector<8x8xf32>
    %36 = arith.subf %32, %35 : vector<8x8xf32>
    %37 = math.exp %36 : vector<8x8xf32>
    %cst_18 = arith.constant dense<0.000000e+00> : vector<8xf32>
    %38 = vector.multi_reduction <add>, %37, %cst_18 [1] : vector<8x8xf32> to vector<8xf32>
    %39 = vector.shape_cast %38 : vector<8xf32> to vector<8x1xf32>
    %40 = vector.broadcast %39 : vector<8x1xf32> to vector<8x8xf32>
    %41 = arith.divf %37, %40 : vector<8x8xf32>
    %cst_19 = arith.constant dense<0.000000e+00> : vector<8x8xf32>
    %42 = tpu.matmul %29, %41, %cst_19 {dimension_numbers = #tpu.dot_dimension_numbers<[1], [1], [0], [0], [0, 0, 1, 0], [], []>} : vector<8x8xf32>, vector<8x8xf32>, vector<8x8xf32> -> vector<8x8xf32>
    %c1 = arith.constant 1 : index
    %c0_20 = arith.constant 0 : index
    %c0_21 = arith.constant 0 : index
    %43 = vector.load %arg8[%c1, %c0_20, %c0_21] : memref<4x32x8xf32, #tpu.memory_space<vmem>>, vector<1x32x8xf32>
    %44 = vector.shape_cast %43 : vector<1x32x8xf32> to vector<32x8xf32>
    %cst_22 = arith.constant dense<0.000000e+00> : vector<32x8xf32>
    %45 = tpu.matmul %44, %42, %cst_22 {dimension_numbers = #tpu.dot_dimension_numbers<[1], [0], [0], [1], [0, 0, 1, 1], [], []>} : vector<32x8xf32>, vector<8x8xf32>, vector<32x8xf32> -> vector<32x8xf32>
    %46 = arith.addf %26, %45 : vector<32x8xf32>
    %47 = vector.extract_strided_slice %5 {offsets = [16, 0], sizes = [8, 8], strides = [1, 1]} : vector<96x8xf32> to vector<8x8xf32>
    %48 = vector.extract_strided_slice %5 {offsets = [48, 0], sizes = [8, 8], strides = [1, 1]} : vector<96x8xf32> to vector<8x8xf32>
    %49 = vector.extract_strided_slice %5 {offsets = [80, 0], sizes = [8, 8], strides = [1, 1]} : vector<96x8xf32> to vector<8x8xf32>
    %cst_23 = arith.constant dense<0.000000e+00> : vector<8x8xf32>
    %50 = tpu.matmul %47, %48, %cst_23 {dimension_numbers = #tpu.dot_dimension_numbers<[0], [0], [1], [1], [0, 1, 1, 1], [], []>} : vector<8x8xf32>, vector<8x8xf32>, vector<8x8xf32> -> vector<8x8xf32>
    %cst_24 = arith.constant 0.353553385 : f32
    %51 = vector.broadcast %cst_24 : f32 to vector<8x8xf32>
    %52 = arith.mulf %50, %51 : vector<8x8xf32>
    %cst_25 = arith.constant dense<0xFF800000> : vector<8xf32>
    %53 = vector.multi_reduction <maximumf>, %52, %cst_25 [1] : vector<8x8xf32> to vector<8xf32>
    %54 = vector.shape_cast %53 : vector<8xf32> to vector<8x1xf32>
    %55 = vector.broadcast %54 : vector<8x1xf32> to vector<8x8xf32>
    %56 = arith.subf %52, %55 : vector<8x8xf32>
    %57 = math.exp %56 : vector<8x8xf32>
    %cst_26 = arith.constant dense<0.000000e+00> : vector<8xf32>
    %58 = vector.multi_reduction <add>, %57, %cst_26 [1] : vector<8x8xf32> to vector<8xf32>
    %59 = vector.shape_cast %58 : vector<8xf32> to vector<8x1xf32>
    %60 = vector.broadcast %59 : vector<8x1xf32> to vector<8x8xf32>
    %61 = arith.divf %57, %60 : vector<8x8xf32>
    %cst_27 = arith.constant dense<0.000000e+00> : vector<8x8xf32>
    %62 = tpu.matmul %49, %61, %cst_27 {dimension_numbers = #tpu.dot_dimension_numbers<[1], [1], [0], [0], [0, 0, 1, 0], [], []>} : vector<8x8xf32>, vector<8x8xf32>, vector<8x8xf32> -> vector<8x8xf32>
    %c2 = arith.constant 2 : index
    %c0_28 = arith.constant 0 : index
    %c0_29 = arith.constant 0 : index
    %63 = vector.load %arg8[%c2, %c0_28, %c0_29] : memref<4x32x8xf32, #tpu.memory_space<vmem>>, vector<1x32x8xf32>
    %64 = vector.shape_cast %63 : vector<1x32x8xf32> to vector<32x8xf32>
    %cst_30 = arith.constant dense<0.000000e+00> : vector<32x8xf32>
    %65 = tpu.matmul %64, %62, %cst_30 {dimension_numbers = #tpu.dot_dimension_numbers<[1], [0], [0], [1], [0, 0, 1, 1], [], []>} : vector<32x8xf32>, vector<8x8xf32>, vector<32x8xf32> -> vector<32x8xf32>
    %66 = arith.addf %46, %65 : vector<32x8xf32>
    %67 = vector.extract_strided_slice %5 {offsets = [24, 0], sizes = [8, 8], strides = [1, 1]} : vector<96x8xf32> to vector<8x8xf32>
    %68 = vector.extract_strided_slice %5 {offsets = [56, 0], sizes = [8, 8], strides = [1, 1]} : vector<96x8xf32> to vector<8x8xf32>
    %69 = vector.extract_strided_slice %5 {offsets = [88, 0], sizes = [8, 8], strides = [1, 1]} : vector<96x8xf32> to vector<8x8xf32>
    %cst_31 = arith.constant dense<0.000000e+00> : vector<8x8xf32>
    %70 = tpu.matmul %67, %68, %cst_31 {dimension_numbers = #tpu.dot_dimension_numbers<[0], [0], [1], [1], [0, 1, 1, 1], [], []>} : vector<8x8xf32>, vector<8x8xf32>, vector<8x8xf32> -> vector<8x8xf32>
    %cst_32 = arith.constant 0.353553385 : f32
    %71 = vector.broadcast %cst_32 : f32 to vector<8x8xf32>
    %72 = arith.mulf %70, %71 : vector<8x8xf32>
    %cst_33 = arith.constant dense<0xFF800000> : vector<8xf32>
    %73 = vector.multi_reduction <maximumf>, %72, %cst_33 [1] : vector<8x8xf32> to vector<8xf32>
    %74 = vector.shape_cast %73 : vector<8xf32> to vector<8x1xf32>
    %75 = vector.broadcast %74 : vector<8x1xf32> to vector<8x8xf32>
    %76 = arith.subf %72, %75 : vector<8x8xf32>
    %77 = math.exp %76 : vector<8x8xf32>
    %cst_34 = arith.constant dense<0.000000e+00> : vector<8xf32>
    %78 = vector.multi_reduction <add>, %77, %cst_34 [1] : vector<8x8xf32> to vector<8xf32>
    %79 = vector.shape_cast %78 : vector<8xf32> to vector<8x1xf32>
    %80 = vector.broadcast %79 : vector<8x1xf32> to vector<8x8xf32>
    %81 = arith.divf %77, %80 : vector<8x8xf32>
    %cst_35 = arith.constant dense<0.000000e+00> : vector<8x8xf32>
    %82 = tpu.matmul %69, %81, %cst_35 {dimension_numbers = #tpu.dot_dimension_numbers<[1], [1], [0], [0], [0, 0, 1, 0], [], []>} : vector<8x8xf32>, vector<8x8xf32>, vector<8x8xf32> -> vector<8x8xf32>
    %c3 = arith.constant 3 : index
    %c0_36 = arith.constant 0 : index
    %c0_37 = arith.constant 0 : index
    %83 = vector.load %arg8[%c3, %c0_36, %c0_37] : memref<4x32x8xf32, #tpu.memory_space<vmem>>, vector<1x32x8xf32>
    %84 = vector.shape_cast %83 : vector<1x32x8xf32> to vector<32x8xf32>
    %cst_38 = arith.constant dense<0.000000e+00> : vector<32x8xf32>
    %85 = tpu.matmul %84, %82, %cst_38 {dimension_numbers = #tpu.dot_dimension_numbers<[1], [0], [0], [1], [0, 0, 1, 1], [], []>} : vector<32x8xf32>, vector<8x8xf32>, vector<32x8xf32> -> vector<32x8xf32>
    %86 = arith.addf %66, %85 : vector<32x8xf32>
    %c0_39 = arith.constant 0 : index
    %c0_40 = arith.constant 0 : index
    %87 = vector.load %arg9[%c0_39, %c0_40] : memref<32x1xf32, #tpu.memory_space<vmem>>, vector<32x1xf32>
    %88 = vector.broadcast %87 : vector<32x1xf32> to vector<32x8xf32>
    %89 = arith.addf %86, %88 : vector<32x8xf32>
    %c0_41 = arith.constant 0 : index
    %c0_42 = arith.constant 0 : index
    %90 = vector.load %arg10[%c0_41, %c0_42] : memref<64x32xf32, #tpu.memory_space<vmem>>, vector<64x32xf32>
    %cst_43 = arith.constant dense<0.000000e+00> : vector<64x8xf32>
    %91 = tpu.matmul %90, %0, %cst_43 {dimension_numbers = #tpu.dot_dimension_numbers<[1], [0], [0], [1], [0, 0, 1, 1], [], []>} : vector<64x32xf32>, vector<32x8xf32>, vector<64x8xf32> -> vector<64x8xf32>
    %c0_44 = arith.constant 0 : index
    %c0_45 = arith.constant 0 : index
    %92 = vector.load %arg11[%c0_44, %c0_45] : memref<64x32xf32, #tpu.memory_space<vmem>>, vector<64x32xf32>
    %cst_46 = arith.constant dense<0.000000e+00> : vector<64x8xf32>
    %93 = tpu.matmul %92, %89, %cst_46 {dimension_numbers = #tpu.dot_dimension_numbers<[1], [0], [0], [1], [0, 0, 1, 1], [], []>} : vector<64x32xf32>, vector<32x8xf32>, vector<64x8xf32> -> vector<64x8xf32>
    %94 = arith.addf %91, %93 : vector<64x8xf32>
    %c0_47 = arith.constant 0 : index
    %c0_48 = arith.constant 0 : index
    %95 = vector.load %arg12[%c0_47, %c0_48] : memref<64x1xf32, #tpu.memory_space<vmem>>, vector<64x1xf32>
    %96 = vector.broadcast %95 : vector<64x1xf32> to vector<64x8xf32>
    %97 = arith.addf %94, %96 : vector<64x8xf32>
    %cst_49 = arith.constant 0.000000e+00 : f32
    %98 = vector.broadcast %cst_49 : f32 to vector<64x8xf32>
    %99 = arith.maximumf %97, %98 : vector<64x8xf32>
    %c0_50 = arith.constant 0 : index
    %c0_51 = arith.constant 0 : index
    %100 = vector.load %arg13[%c0_50, %c0_51] : memref<32x64xf32, #tpu.memory_space<vmem>>, vector<32x64xf32>
    %cst_52 = arith.constant dense<0.000000e+00> : vector<32x8xf32>
    %101 = tpu.matmul %100, %99, %cst_52 {dimension_numbers = #tpu.dot_dimension_numbers<[1], [0], [0], [1], [0, 0, 1, 1], [], []>} : vector<32x64xf32>, vector<64x8xf32>, vector<32x8xf32> -> vector<32x8xf32>
    %102 = arith.addf %0, %101 : vector<32x8xf32>
    %c0_53 = arith.constant 0 : index
    %c0_54 = arith.constant 0 : index
    %103 = vector.load %arg14[%c0_53, %c0_54] : memref<32x1xf32, #tpu.memory_space<vmem>>, vector<32x1xf32>
    %104 = vector.broadcast %103 : vector<32x1xf32> to vector<32x8xf32>
    %105 = arith.addf %102, %104 : vector<32x8xf32>
    %c0_55 = arith.constant 0 : index
    %c0_56 = arith.constant 0 : index
    %106 = vector.load %arg1[%c0_55, %c0_56] : memref<32x4xf32, #tpu.memory_space<vmem>>, vector<32x4xf32>
    %c0_57 = arith.constant 0 : index
    %c0_58 = arith.constant 0 : index
    %107 = vector.load %arg6[%c0_57, %c0_58] : memref<96x32xf32, #tpu.memory_space<vmem>>, vector<96x32xf32>
    %cst_59 = arith.constant dense<0.000000e+00> : vector<96x4xf32>
    %108 = tpu.matmul %107, %106, %cst_59 {dimension_numbers = #tpu.dot_dimension_numbers<[1], [0], [0], [1], [0, 0, 1, 1], [], []>} : vector<96x32xf32>, vector<32x4xf32>, vector<96x4xf32> -> vector<96x4xf32>
    %c0_60 = arith.constant 0 : index
    %c0_61 = arith.constant 0 : index
    %109 = vector.load %arg7[%c0_60, %c0_61] : memref<96x1xf32, #tpu.memory_space<vmem>>, vector<96x1xf32>
    %110 = vector.broadcast %109 : vector<96x1xf32> to vector<96x4xf32>
    %111 = arith.addf %108, %110 : vector<96x4xf32>
    %cst_62 = arith.constant 0.000000e+00 : f32
    %112 = vector.broadcast %cst_62 : f32 to vector<32x4xf32>
    %113 = vector.extract_strided_slice %111 {offsets = [0, 0], sizes = [8, 4], strides = [1, 1]} : vector<96x4xf32> to vector<8x4xf32>
    %114 = vector.extract_strided_slice %111 {offsets = [32, 0], sizes = [8, 4], strides = [1, 1]} : vector<96x4xf32> to vector<8x4xf32>
    %115 = vector.extract_strided_slice %111 {offsets = [64, 0], sizes = [8, 4], strides = [1, 1]} : vector<96x4xf32> to vector<8x4xf32>
    %cst_63 = arith.constant dense<0.000000e+00> : vector<4x4xf32>
    %116 = tpu.matmul %113, %114, %cst_63 {dimension_numbers = #tpu.dot_dimension_numbers<[0], [0], [1], [1], [0, 1, 1, 1], [], []>} : vector<8x4xf32>, vector<8x4xf32>, vector<4x4xf32> -> vector<4x4xf32>
    %cst_64 = arith.constant 0.353553385 : f32
    %117 = vector.broadcast %cst_64 : f32 to vector<4x4xf32>
    %118 = arith.mulf %116, %117 : vector<4x4xf32>
    %cst_65 = arith.constant dense<0xFF800000> : vector<4xf32>
    %119 = vector.multi_reduction <maximumf>, %118, %cst_65 [1] : vector<4x4xf32> to vector<4xf32>
    %120 = vector.shape_cast %119 : vector<4xf32> to vector<4x1xf32>
    %121 = vector.broadcast %120 : vector<4x1xf32> to vector<4x4xf32>
    %122 = arith.subf %118, %121 : vector<4x4xf32>
    %123 = math.exp %122 : vector<4x4xf32>
    %cst_66 = arith.constant dense<0.000000e+00> : vector<4xf32>
    %124 = vector.multi_reduction <add>, %123, %cst_66 [1] : vector<4x4xf32> to vector<4xf32>
    %125 = vector.shape_cast %124 : vector<4xf32> to vector<4x1xf32>
    %126 = vector.broadcast %125 : vector<4x1xf32> to vector<4x4xf32>
    %127 = arith.divf %123, %126 : vector<4x4xf32>
    %cst_67 = arith.constant dense<0.000000e+00> : vector<8x4xf32>
    %128 = tpu.matmul %115, %127, %cst_67 {dimension_numbers = #tpu.dot_dimension_numbers<[1], [1], [0], [0], [0, 0, 1, 0], [], []>} : vector<8x4xf32>, vector<4x4xf32>, vector<8x4xf32> -> vector<8x4xf32>
    %c0_68 = arith.constant 0 : index
    %c0_69 = arith.constant 0 : index
    %c0_70 = arith.constant 0 : index
    %129 = vector.load %arg8[%c0_68, %c0_69, %c0_70] : memref<4x32x8xf32, #tpu.memory_space<vmem>>, vector<1x32x8xf32>
    %130 = vector.shape_cast %129 : vector<1x32x8xf32> to vector<32x8xf32>
    %cst_71 = arith.constant dense<0.000000e+00> : vector<32x4xf32>
    %131 = tpu.matmul %130, %128, %cst_71 {dimension_numbers = #tpu.dot_dimension_numbers<[1], [0], [0], [1], [0, 0, 1, 1], [], []>} : vector<32x8xf32>, vector<8x4xf32>, vector<32x4xf32> -> vector<32x4xf32>
    %132 = arith.addf %112, %131 : vector<32x4xf32>
    %133 = vector.extract_strided_slice %111 {offsets = [8, 0], sizes = [8, 4], strides = [1, 1]} : vector<96x4xf32> to vector<8x4xf32>
    %134 = vector.extract_strided_slice %111 {offsets = [40, 0], sizes = [8, 4], strides = [1, 1]} : vector<96x4xf32> to vector<8x4xf32>
    %135 = vector.extract_strided_slice %111 {offsets = [72, 0], sizes = [8, 4], strides = [1, 1]} : vector<96x4xf32> to vector<8x4xf32>
    %cst_72 = arith.constant dense<0.000000e+00> : vector<4x4xf32>
    %136 = tpu.matmul %133, %134, %cst_72 {dimension_numbers = #tpu.dot_dimension_numbers<[0], [0], [1], [1], [0, 1, 1, 1], [], []>} : vector<8x4xf32>, vector<8x4xf32>, vector<4x4xf32> -> vector<4x4xf32>
    %cst_73 = arith.constant 0.353553385 : f32
    %137 = vector.broadcast %cst_73 : f32 to vector<4x4xf32>
    %138 = arith.mulf %136, %137 : vector<4x4xf32>
    %cst_74 = arith.constant dense<0xFF800000> : vector<4xf32>
    %139 = vector.multi_reduction <maximumf>, %138, %cst_74 [1] : vector<4x4xf32> to vector<4xf32>
    %140 = vector.shape_cast %139 : vector<4xf32> to vector<4x1xf32>
    %141 = vector.broadcast %140 : vector<4x1xf32> to vector<4x4xf32>
    %142 = arith.subf %138, %141 : vector<4x4xf32>
    %143 = math.exp %142 : vector<4x4xf32>
    %cst_75 = arith.constant dense<0.000000e+00> : vector<4xf32>
    %144 = vector.multi_reduction <add>, %143, %cst_75 [1] : vector<4x4xf32> to vector<4xf32>
    %145 = vector.shape_cast %144 : vector<4xf32> to vector<4x1xf32>
    %146 = vector.broadcast %145 : vector<4x1xf32> to vector<4x4xf32>
    %147 = arith.divf %143, %146 : vector<4x4xf32>
    %cst_76 = arith.constant dense<0.000000e+00> : vector<8x4xf32>
    %148 = tpu.matmul %135, %147, %cst_76 {dimension_numbers = #tpu.dot_dimension_numbers<[1], [1], [0], [0], [0, 0, 1, 0], [], []>} : vector<8x4xf32>, vector<4x4xf32>, vector<8x4xf32> -> vector<8x4xf32>
    %c1_77 = arith.constant 1 : index
    %c0_78 = arith.constant 0 : index
    %c0_79 = arith.constant 0 : index
    %149 = vector.load %arg8[%c1_77, %c0_78, %c0_79] : memref<4x32x8xf32, #tpu.memory_space<vmem>>, vector<1x32x8xf32>
    %150 = vector.shape_cast %149 : vector<1x32x8xf32> to vector<32x8xf32>
    %cst_80 = arith.constant dense<0.000000e+00> : vector<32x4xf32>
    %151 = tpu.matmul %150, %148, %cst_80 {dimension_numbers = #tpu.dot_dimension_numbers<[1], [0], [0], [1], [0, 0, 1, 1], [], []>} : vector<32x8xf32>, vector<8x4xf32>, vector<32x4xf32> -> vector<32x4xf32>
    %152 = arith.addf %132, %151 : vector<32x4xf32>
    %153 = vector.extract_strided_slice %111 {offsets = [16, 0], sizes = [8, 4], strides = [1, 1]} : vector<96x4xf32> to vector<8x4xf32>
    %154 = vector.extract_strided_slice %111 {offsets = [48, 0], sizes = [8, 4], strides = [1, 1]} : vector<96x4xf32> to vector<8x4xf32>
    %155 = vector.extract_strided_slice %111 {offsets = [80, 0], sizes = [8, 4], strides = [1, 1]} : vector<96x4xf32> to vector<8x4xf32>
    %cst_81 = arith.constant dense<0.000000e+00> : vector<4x4xf32>
    %156 = tpu.matmul %153, %154, %cst_81 {dimension_numbers = #tpu.dot_dimension_numbers<[0], [0], [1], [1], [0, 1, 1, 1], [], []>} : vector<8x4xf32>, vector<8x4xf32>, vector<4x4xf32> -> vector<4x4xf32>
    %cst_82 = arith.constant 0.353553385 : f32
    %157 = vector.broadcast %cst_82 : f32 to vector<4x4xf32>
    %158 = arith.mulf %156, %157 : vector<4x4xf32>
    %cst_83 = arith.constant dense<0xFF800000> : vector<4xf32>
    %159 = vector.multi_reduction <maximumf>, %158, %cst_83 [1] : vector<4x4xf32> to vector<4xf32>
    %160 = vector.shape_cast %159 : vector<4xf32> to vector<4x1xf32>
    %161 = vector.broadcast %160 : vector<4x1xf32> to vector<4x4xf32>
    %162 = arith.subf %158, %161 : vector<4x4xf32>
    %163 = math.exp %162 : vector<4x4xf32>
    %cst_84 = arith.constant dense<0.000000e+00> : vector<4xf32>
    %164 = vector.multi_reduction <add>, %163, %cst_84 [1] : vector<4x4xf32> to vector<4xf32>
    %165 = vector.shape_cast %164 : vector<4xf32> to vector<4x1xf32>
    %166 = vector.broadcast %165 : vector<4x1xf32> to vector<4x4xf32>
    %167 = arith.divf %163, %166 : vector<4x4xf32>
    %cst_85 = arith.constant dense<0.000000e+00> : vector<8x4xf32>
    %168 = tpu.matmul %155, %167, %cst_85 {dimension_numbers = #tpu.dot_dimension_numbers<[1], [1], [0], [0], [0, 0, 1, 0], [], []>} : vector<8x4xf32>, vector<4x4xf32>, vector<8x4xf32> -> vector<8x4xf32>
    %c2_86 = arith.constant 2 : index
    %c0_87 = arith.constant 0 : index
    %c0_88 = arith.constant 0 : index
    %169 = vector.load %arg8[%c2_86, %c0_87, %c0_88] : memref<4x32x8xf32, #tpu.memory_space<vmem>>, vector<1x32x8xf32>
    %170 = vector.shape_cast %169 : vector<1x32x8xf32> to vector<32x8xf32>
    %cst_89 = arith.constant dense<0.000000e+00> : vector<32x4xf32>
    %171 = tpu.matmul %170, %168, %cst_89 {dimension_numbers = #tpu.dot_dimension_numbers<[1], [0], [0], [1], [0, 0, 1, 1], [], []>} : vector<32x8xf32>, vector<8x4xf32>, vector<32x4xf32> -> vector<32x4xf32>
    %172 = arith.addf %152, %171 : vector<32x4xf32>
    %173 = vector.extract_strided_slice %111 {offsets = [24, 0], sizes = [8, 4], strides = [1, 1]} : vector<96x4xf32> to vector<8x4xf32>
    %174 = vector.extract_strided_slice %111 {offsets = [56, 0], sizes = [8, 4], strides = [1, 1]} : vector<96x4xf32> to vector<8x4xf32>
    %175 = vector.extract_strided_slice %111 {offsets = [88, 0], sizes = [8, 4], strides = [1, 1]} : vector<96x4xf32> to vector<8x4xf32>
    %cst_90 = arith.constant dense<0.000000e+00> : vector<4x4xf32>
    %176 = tpu.matmul %173, %174, %cst_90 {dimension_numbers = #tpu.dot_dimension_numbers<[0], [0], [1], [1], [0, 1, 1, 1], [], []>} : vector<8x4xf32>, vector<8x4xf32>, vector<4x4xf32> -> vector<4x4xf32>
    %cst_91 = arith.constant 0.353553385 : f32
    %177 = vector.broadcast %cst_91 : f32 to vector<4x4xf32>
    %178 = arith.mulf %176, %177 : vector<4x4xf32>
    %cst_92 = arith.constant dense<0xFF800000> : vector<4xf32>
    %179 = vector.multi_reduction <maximumf>, %178, %cst_92 [1] : vector<4x4xf32> to vector<4xf32>
    %180 = vector.shape_cast %179 : vector<4xf32> to vector<4x1xf32>
    %181 = vector.broadcast %180 : vector<4x1xf32> to vector<4x4xf32>
    %182 = arith.subf %178, %181 : vector<4x4xf32>
    %183 = math.exp %182 : vector<4x4xf32>
    %cst_93 = arith.constant dense<0.000000e+00> : vector<4xf32>
    %184 = vector.multi_reduction <add>, %183, %cst_93 [1] : vector<4x4xf32> to vector<4xf32>
    %185 = vector.shape_cast %184 : vector<4xf32> to vector<4x1xf32>
    %186 = vector.broadcast %185 : vector<4x1xf32> to vector<4x4xf32>
    %187 = arith.divf %183, %186 : vector<4x4xf32>
    %cst_94 = arith.constant dense<0.000000e+00> : vector<8x4xf32>
    %188 = tpu.matmul %175, %187, %cst_94 {dimension_numbers = #tpu.dot_dimension_numbers<[1], [1], [0], [0], [0, 0, 1, 0], [], []>} : vector<8x4xf32>, vector<4x4xf32>, vector<8x4xf32> -> vector<8x4xf32>
    %c3_95 = arith.constant 3 : index
    %c0_96 = arith.constant 0 : index
    %c0_97 = arith.constant 0 : index
    %189 = vector.load %arg8[%c3_95, %c0_96, %c0_97] : memref<4x32x8xf32, #tpu.memory_space<vmem>>, vector<1x32x8xf32>
    %190 = vector.shape_cast %189 : vector<1x32x8xf32> to vector<32x8xf32>
    %cst_98 = arith.constant dense<0.000000e+00> : vector<32x4xf32>
    %191 = tpu.matmul %190, %188, %cst_98 {dimension_numbers = #tpu.dot_dimension_numbers<[1], [0], [0], [1], [0, 0, 1, 1], [], []>} : vector<32x8xf32>, vector<8x4xf32>, vector<32x4xf32> -> vector<32x4xf32>
    %192 = arith.addf %172, %191 : vector<32x4xf32>
    %c0_99 = arith.constant 0 : index
    %c0_100 = arith.constant 0 : index
    %193 = vector.load %arg9[%c0_99, %c0_100] : memref<32x1xf32, #tpu.memory_space<vmem>>, vector<32x1xf32>
    %194 = vector.broadcast %193 : vector<32x1xf32> to vector<32x4xf32>
    %195 = arith.addf %192, %194 : vector<32x4xf32>
    %c0_101 = arith.constant 0 : index
    %c0_102 = arith.constant 0 : index
    %196 = vector.load %arg10[%c0_101, %c0_102] : memref<64x32xf32, #tpu.memory_space<vmem>>, vector<64x32xf32>
    %cst_103 = arith.constant dense<0.000000e+00> : vector<64x4xf32>
    %197 = tpu.matmul %196, %106, %cst_103 {dimension_numbers = #tpu.dot_dimension_numbers<[1], [0], [0], [1], [0, 0, 1, 1], [], []>} : vector<64x32xf32>, vector<32x4xf32>, vector<64x4xf32> -> vector<64x4xf32>
    %c0_104 = arith.constant 0 : index
    %c0_105 = arith.constant 0 : index
    %198 = vector.load %arg11[%c0_104, %c0_105] : memref<64x32xf32, #tpu.memory_space<vmem>>, vector<64x32xf32>
    %cst_106 = arith.constant dense<0.000000e+00> : vector<64x4xf32>
    %199 = tpu.matmul %198, %195, %cst_106 {dimension_numbers = #tpu.dot_dimension_numbers<[1], [0], [0], [1], [0, 0, 1, 1], [], []>} : vector<64x32xf32>, vector<32x4xf32>, vector<64x4xf32> -> vector<64x4xf32>
    %200 = arith.addf %197, %199 : vector<64x4xf32>
    %c0_107 = arith.constant 0 : index
    %c0_108 = arith.constant 0 : index
    %201 = vector.load %arg12[%c0_107, %c0_108] : memref<64x1xf32, #tpu.memory_space<vmem>>, vector<64x1xf32>
    %202 = vector.broadcast %201 : vector<64x1xf32> to vector<64x4xf32>
    %203 = arith.addf %200, %202 : vector<64x4xf32>
    %cst_109 = arith.constant 0.000000e+00 : f32
    %204 = vector.broadcast %cst_109 : f32 to vector<64x4xf32>
    %205 = arith.maximumf %203, %204 : vector<64x4xf32>
    %c0_110 = arith.constant 0 : index
    %c0_111 = arith.constant 0 : index
    %206 = vector.load %arg13[%c0_110, %c0_111] : memref<32x64xf32, #tpu.memory_space<vmem>>, vector<32x64xf32>
    %cst_112 = arith.constant dense<0.000000e+00> : vector<32x4xf32>
    %207 = tpu.matmul %206, %205, %cst_112 {dimension_numbers = #tpu.dot_dimension_numbers<[1], [0], [0], [1], [0, 0, 1, 1], [], []>} : vector<32x64xf32>, vector<64x4xf32>, vector<32x4xf32> -> vector<32x4xf32>
    %208 = arith.addf %106, %207 : vector<32x4xf32>
    %c0_113 = arith.constant 0 : index
    %c0_114 = arith.constant 0 : index
    %209 = vector.load %arg14[%c0_113, %c0_114] : memref<32x1xf32, #tpu.memory_space<vmem>>, vector<32x1xf32>
    %210 = vector.broadcast %209 : vector<32x1xf32> to vector<32x4xf32>
    %211 = arith.addf %208, %210 : vector<32x4xf32>
    %c0_115 = arith.constant 0 : index
    %c0_116 = arith.constant 0 : index
    %212 = vector.load %arg15[%c0_115, %c0_116] : memref<32x96xf32, #tpu.memory_space<vmem>>, vector<32x32xf32>
    %cst_117 = arith.constant dense<0.000000e+00> : vector<32x4xf32>
    %213 = tpu.matmul %212, %211, %cst_117 {dimension_numbers = #tpu.dot_dimension_numbers<[1], [0], [0], [1], [0, 0, 1, 1], [], []>} : vector<32x32xf32>, vector<32x4xf32>, vector<32x4xf32> -> vector<32x4xf32>
    %c0_118 = arith.constant 0 : index
    %c32 = arith.constant 32 : index
    %214 = vector.load %arg15[%c0_118, %c32] : memref<32x96xf32, #tpu.memory_space<vmem>>, vector<32x32xf32>
    %cst_119 = arith.constant dense<0.000000e+00> : vector<32x8xf32>
    %215 = tpu.matmul %214, %105, %cst_119 {dimension_numbers = #tpu.dot_dimension_numbers<[1], [0], [0], [1], [0, 0, 1, 1], [], []>} : vector<32x32xf32>, vector<32x8xf32>, vector<32x8xf32> -> vector<32x8xf32>
    %c0_120 = arith.constant 0 : index
    %c64 = arith.constant 64 : index
    %216 = vector.load %arg15[%c0_120, %c64] : memref<32x96xf32, #tpu.memory_space<vmem>>, vector<32x32xf32>
    %c0_121 = arith.constant 0 : index
    %c0_122 = arith.constant 0 : index
    %217 = vector.load %arg2[%c0_121, %c0_122] : memref<32x32xf32, #tpu.memory_space<vmem>>, vector<32x32xf32>
    %cst_123 = arith.constant dense<0.000000e+00> : vector<32x32xf32>
    %218 = tpu.matmul %216, %217, %cst_123 {dimension_numbers = #tpu.dot_dimension_numbers<[1], [0], [0], [1], [0, 0, 1, 1], [], []>} : vector<32x32xf32>, vector<32x32xf32>, vector<32x32xf32> -> vector<32x32xf32>
    %c0_124 = arith.constant 0 : index
    %c0_125 = arith.constant 0 : index
    %219 = vector.load %arg19[%c0_124, %c0_125] : memref<4x32xf32, #tpu.memory_space<vmem>>, vector<4x32xf32>
    %cst_126 = arith.constant dense<0.000000e+00> : vector<32x32xf32>
    %220 = tpu.matmul %213, %219, %cst_126 {dimension_numbers = #tpu.dot_dimension_numbers<[1], [0], [0], [1], [0, 0, 1, 1], [], []>} : vector<32x4xf32>, vector<4x32xf32>, vector<32x32xf32> -> vector<32x32xf32>
    %c0_127 = arith.constant 0 : index
    %c0_128 = arith.constant 0 : index
    %221 = vector.load %arg20[%c0_127, %c0_128] : memref<8x32xf32, #tpu.memory_space<vmem>>, vector<8x32xf32>
    %cst_129 = arith.constant dense<0.000000e+00> : vector<32x32xf32>
    %222 = tpu.matmul %215, %221, %cst_129 {dimension_numbers = #tpu.dot_dimension_numbers<[1], [0], [0], [1], [0, 0, 1, 1], [], []>} : vector<32x8xf32>, vector<8x32xf32>, vector<32x32xf32> -> vector<32x32xf32>
    %223 = arith.addf %220, %222 : vector<32x32xf32>
    %224 = arith.addf %223, %218 : vector<32x32xf32>
    %c0_130 = arith.constant 0 : index
    %c0_131 = arith.constant 0 : index
    %225 = vector.load %arg16[%c0_130, %c0_131] : memref<32x1xf32, #tpu.memory_space<vmem>>, vector<32x1xf32>
    %226 = vector.broadcast %225 : vector<32x1xf32> to vector<32x32xf32>
    %227 = arith.addf %224, %226 : vector<32x32xf32>
    %cst_132 = arith.constant 0.000000e+00 : f32
    %228 = vector.broadcast %cst_132 : f32 to vector<32x32xf32>
    %229 = arith.maximumf %227, %228 : vector<32x32xf32>
    %c0_133 = arith.constant 0 : index
    %c0_134 = arith.constant 0 : index
    %230 = vector.load %arg17[%c0_133, %c0_134] : memref<1x32xf32, #tpu.memory_space<vmem>>, vector<1x32xf32>
    %cst_135 = arith.constant dense<0.000000e+00> : vector<1x32xf32>
    %231 = tpu.matmul %230, %229, %cst_135 {dimension_numbers = #tpu.dot_dimension_numbers<[1], [0], [0], [1], [0, 0, 1, 1], [], []>} : vector<1x32xf32>, vector<32x32xf32>, vector<1x32xf32> -> vector<1x32xf32>
    %c0_136 = arith.constant 0 : index
    %c0_137 = arith.constant 0 : index
    %232 = vector.load %arg18[%c0_136, %c0_137] : memref<1x1xf32, #tpu.memory_space<vmem>>, vector<1x1xf32>
    %233 = vector.broadcast %232 : vector<1x1xf32> to vector<1x32xf32>
    %234 = arith.addf %231, %233 : vector<1x32xf32>
    %c0_138 = arith.constant 0 : index
    %c0_139 = arith.constant 0 : index
    %235 = vector.load %arg19[%c0_138, %c0_139] : memref<4x32xf32, #tpu.memory_space<vmem>>, vector<4x32xf32>
    %236 = vector.broadcast %234 : vector<1x32xf32> to vector<4x32xf32>
    %237 = arith.mulf %235, %236 : vector<4x32xf32>
    %c0_140 = arith.constant 0 : index
    %c0_141 = arith.constant 0 : index
    %238 = vector.load %arg20[%c0_140, %c0_141] : memref<8x32xf32, #tpu.memory_space<vmem>>, vector<8x32xf32>
    %cst_142 = arith.constant dense<0.000000e+00> : vector<4x8xf32>
    %239 = tpu.matmul %237, %238, %cst_142 {dimension_numbers = #tpu.dot_dimension_numbers<[1], [1], [0], [0], [0, 0, 1, 0], [], []>} : vector<4x32xf32>, vector<8x32xf32>, vector<4x8xf32> -> vector<4x8xf32>
    %cst_143 = arith.constant dense<0xFF800000> : vector<8xf32>
    %240 = vector.multi_reduction <maximumf>, %239, %cst_143 [0] : vector<4x8xf32> to vector<8xf32>
    %241 = vector.shape_cast %240 : vector<8xf32> to vector<1x8xf32>
    %242 = vector.broadcast %241 : vector<1x8xf32> to vector<4x8xf32>
    %243 = arith.subf %239, %242 : vector<4x8xf32>
    %244 = math.exp %243 : vector<4x8xf32>
    %cst_144 = arith.constant dense<0.000000e+00> : vector<8xf32>
    %245 = vector.multi_reduction <add>, %244, %cst_144 [0] : vector<4x8xf32> to vector<8xf32>
    %246 = vector.shape_cast %245 : vector<8xf32> to vector<1x8xf32>
    %247 = math.log %246 : vector<1x8xf32>
    %248 = vector.broadcast %247 : vector<1x8xf32> to vector<4x8xf32>
    %249 = arith.subf %243, %248 : vector<4x8xf32>
    %c0_145 = arith.constant 0 : index
    %c0_146 = arith.constant 0 : index
    %250 = memref.load %arg23[%c0_145, %c0_146] : memref<1x1xf32, #tpu.memory_space<smem>>
    %cst_147 = arith.constant 0.000000e+00 : f32
    %251 = vector.broadcast %cst_147 : f32 to vector<5x9xf32>
    %252 = vector.broadcast %250 : f32 to vector<5x9xf32>
    %253 = arith.addf %251, %252 : vector<5x9xf32>
    %c0_148 = arith.constant 0 : index
    %c0_149 = arith.constant 0 : index
    %254 = vector.load %arg25[%c0_148, %c0_149] : memref<5x9xf32, #tpu.memory_space<vmem>>, vector<5x9xf32>
    tpu.vector_store %arg25[%c0_148, %c0_149], %253 {strides = array<i32>} : memref<5x9xf32, #tpu.memory_space<vmem>>, vector<5x9xf32>,
    %c0_150 = arith.constant 0 : index
    %c0_151 = arith.constant 0 : index
    %255 = vector.load %arg25[%c0_150, %c0_151] : memref<5x9xf32, #tpu.memory_space<vmem>>, vector<4x8xf32>
    tpu.vector_store %arg25[%c0_150, %c0_151], %249 {strides = array<i32>} : memref<5x9xf32, #tpu.memory_space<vmem>>, vector<4x8xf32>,
    %c0_152 = arith.constant 0 : index
    %c0_153 = arith.constant 0 : index
    %256 = vector.load %arg25[%c0_152, %c0_153] : memref<5x9xf32, #tpu.memory_space<vmem>>, vector<5x9xf32>
    %c0_154 = arith.constant 0 : index
    %c0_155 = arith.constant 0 : index
    %257 = vector.load %arg21[%c0_154, %c0_155] : memref<5x1xf32, #tpu.memory_space<vmem>>, vector<5x1xf32>
    %c0_156 = arith.constant 0 : index
    %c0_157 = arith.constant 0 : index
    %258 = vector.load %arg22[%c0_156, %c0_157] : memref<1x9xf32, #tpu.memory_space<vmem>>, vector<1x9xf32>
    %cst_158 = arith.constant 0.000000e+00 : f32
    %259 = vector.broadcast %cst_158 : f32 to vector<1x9xf32>
    %260 = vector.broadcast %259 : vector<1x9xf32> to vector<5x9xf32>
    %261 = arith.addf %256, %260 : vector<5x9xf32>
    %cst_159 = arith.constant dense<0xFF800000> : vector<5xf32>
    %262 = vector.multi_reduction <maximumf>, %261, %cst_159 [1] : vector<5x9xf32> to vector<5xf32>
    %263 = vector.shape_cast %262 : vector<5xf32> to vector<5x1xf32>
    %264 = vector.broadcast %263 : vector<5x1xf32> to vector<5x9xf32>
    %265 = arith.subf %261, %264 : vector<5x9xf32>
    %266 = math.exp %265 : vector<5x9xf32>
    %cst_160 = arith.constant dense<0.000000e+00> : vector<5xf32>
    %267 = vector.multi_reduction <add>, %266, %cst_160 [1] : vector<5x9xf32> to vector<5xf32>
    %268 = vector.shape_cast %267 : vector<5xf32> to vector<5x1xf32>
    %269 = math.log %268 : vector<5x1xf32>
    %270 = arith.addf %269, %263 : vector<5x1xf32>
    %271 = arith.subf %257, %270 : vector<5x1xf32>
    %272 = vector.broadcast %271 : vector<5x1xf32> to vector<5x9xf32>
    %273 = arith.addf %256, %272 : vector<5x9xf32>
    %cst_161 = arith.constant dense<0xFF800000> : vector<9xf32>
    %274 = vector.multi_reduction <maximumf>, %273, %cst_161 [0] : vector<5x9xf32> to vector<9xf32>
    %275 = vector.shape_cast %274 : vector<9xf32> to vector<1x9xf32>
    %276 = vector.broadcast %275 : vector<1x9xf32> to vector<5x9xf32>
    %277 = arith.subf %273, %276 : vector<5x9xf32>
    %278 = math.exp %277 : vector<5x9xf32>
    %cst_162 = arith.constant dense<0.000000e+00> : vector<9xf32>
    %279 = vector.multi_reduction <add>, %278, %cst_162 [0] : vector<5x9xf32> to vector<9xf32>
    %280 = vector.shape_cast %279 : vector<9xf32> to vector<1x9xf32>
    %281 = math.log %280 : vector<1x9xf32>
    %282 = arith.addf %281, %275 : vector<1x9xf32>
    %283 = arith.subf %258, %282 : vector<1x9xf32>
    %284 = vector.broadcast %283 : vector<1x9xf32> to vector<5x9xf32>
    %285 = arith.addf %256, %284 : vector<5x9xf32>
    %cst_163 = arith.constant dense<0xFF800000> : vector<5xf32>
    %286 = vector.multi_reduction <maximumf>, %285, %cst_163 [1] : vector<5x9xf32> to vector<5xf32>
    %287 = vector.shape_cast %286 : vector<5xf32> to vector<5x1xf32>
    %288 = vector.broadcast %287 : vector<5x1xf32> to vector<5x9xf32>
    %289 = arith.subf %285, %288 : vector<5x9xf32>
    %290 = math.exp %289 : vector<5x9xf32>
    %cst_164 = arith.constant dense<0.000000e+00> : vector<5xf32>
    %291 = vector.multi_reduction <add>, %290, %cst_164 [1] : vector<5x9xf32> to vector<5xf32>
    %292 = vector.shape_cast %291 : vector<5xf32> to vector<5x1xf32>
    %293 = math.log %292 : vector<5x1xf32>
    %294 = arith.addf %293, %287 : vector<5x1xf32>
    %295 = arith.subf %257, %294 : vector<5x1xf32>
    %296 = vector.broadcast %295 : vector<5x1xf32> to vector<5x9xf32>
    %297 = arith.addf %256, %296 : vector<5x9xf32>
    %cst_165 = arith.constant dense<0xFF800000> : vector<9xf32>
    %298 = vector.multi_reduction <maximumf>, %297, %cst_165 [0] : vector<5x9xf32> to vector<9xf32>
    %299 = vector.shape_cast %298 : vector<9xf32> to vector<1x9xf32>
    %300 = vector.broadcast %299 : vector<1x9xf32> to vector<5x9xf32>
    %301 = arith.subf %297, %300 : vector<5x9xf32>
    %302 = math.exp %301 : vector<5x9xf32>
    %cst_166 = arith.constant dense<0.000000e+00> : vector<9xf32>
    %303 = vector.multi_reduction <add>, %302, %cst_166 [0] : vector<5x9xf32> to vector<9xf32>
    %304 = vector.shape_cast %303 : vector<9xf32> to vector<1x9xf32>
    %305 = math.log %304 : vector<1x9xf32>
    %306 = arith.addf %305, %299 : vector<1x9xf32>
    %307 = arith.subf %258, %306 : vector<1x9xf32>
    %308 = vector.broadcast %307 : vector<1x9xf32> to vector<5x9xf32>
    %309 = arith.addf %256, %308 : vector<5x9xf32>
    %cst_167 = arith.constant dense<0xFF800000> : vector<5xf32>
    %310 = vector.multi_reduction <maximumf>, %309, %cst_167 [1] : vector<5x9xf32> to vector<5xf32>
    %311 = vector.shape_cast %310 : vector<5xf32> to vector<5x1xf32>
    %312 = vector.broadcast %311 : vector<5x1xf32> to vector<5x9xf32>
    %313 = arith.subf %309, %312 : vector<5x9xf32>
    %314 = math.exp %313 : vector<5x9xf32>
    %cst_168 = arith.constant dense<0.000000e+00> : vector<5xf32>
    %315 = vector.multi_reduction <add>, %314, %cst_168 [1] : vector<5x9xf32> to vector<5xf32>
    %316 = vector.shape_cast %315 : vector<5xf32> to vector<5x1xf32>
    %317 = math.log %316 : vector<5x1xf32>
    %318 = arith.addf %317, %311 : vector<5x1xf32>
    %319 = arith.subf %257, %318 : vector<5x1xf32>
    %320 = vector.broadcast %319 : vector<5x1xf32> to vector<5x9xf32>
    %321 = arith.addf %256, %320 : vector<5x9xf32>
    %cst_169 = arith.constant dense<0xFF800000> : vector<9xf32>
    %322 = vector.multi_reduction <maximumf>, %321, %cst_169 [0] : vector<5x9xf32> to vector<9xf32>
    %323 = vector.shape_cast %322 : vector<9xf32> to vector<1x9xf32>
    %324 = vector.broadcast %323 : vector<1x9xf32> to vector<5x9xf32>
    %325 = arith.subf %321, %324 : vector<5x9xf32>
    %326 = math.exp %325 : vector<5x9xf32>
    %cst_170 = arith.constant dense<0.000000e+00> : vector<9xf32>
    %327 = vector.multi_reduction <add>, %326, %cst_170 [0] : vector<5x9xf32> to vector<9xf32>
    %328 = vector.shape_cast %327 : vector<9xf32> to vector<1x9xf32>
    %329 = math.log %328 : vector<1x9xf32>
    %330 = arith.addf %329, %323 : vector<1x9xf32>
    %331 = arith.subf %258, %330 : vector<1x9xf32>
    %332 = vector.broadcast %331 : vector<1x9xf32> to vector<5x9xf32>
    %333 = arith.addf %256, %332 : vector<5x9xf32>
    %cst_171 = arith.constant dense<0xFF800000> : vector<5xf32>
    %334 = vector.multi_reduction <maximumf>, %333, %cst_171 [1] : vector<5x9xf32> to vector<5xf32>
    %335 = vector.shape_cast %334 : vector<5xf32> to vector<5x1xf32>
    %336 = vector.broadcast %335 : vector<5x1xf32> to vector<5x9xf32>
    %337 = arith.subf %333, %336 : vector<5x9xf32>
    %338 = math.exp %337 : vector<5x9xf32>
    %cst_172 = arith.constant dense<0.000000e+00> : vector<5xf32>
    %339 = vector.multi_reduction <add>, %338, %cst_172 [1] : vector<5x9xf32> to vector<5xf32>
    %340 = vector.shape_cast %339 : vector<5xf32> to vector<5x1xf32>
    %341 = math.log %340 : vector<5x1xf32>
    %342 = arith.addf %341, %335 : vector<5x1xf32>
    %343 = arith.subf %257, %342 : vector<5x1xf32>
    %344 = vector.broadcast %343 : vector<5x1xf32> to vector<5x9xf32>
    %345 = arith.addf %256, %344 : vector<5x9xf32>
    %cst_173 = arith.constant dense<0xFF800000> : vector<9xf32>
    %346 = vector.multi_reduction <maximumf>, %345, %cst_173 [0] : vector<5x9xf32> to vector<9xf32>
    %347 = vector.shape_cast %346 : vector<9xf32> to vector<1x9xf32>
    %348 = vector.broadcast %347 : vector<1x9xf32> to vector<5x9xf32>
    %349 = arith.subf %345, %348 : vector<5x9xf32>
    %350 = math.exp %349 : vector<5x9xf32>
    %cst_174 = arith.constant dense<0.000000e+00> : vector<9xf32>
    %351 = vector.multi_reduction <add>, %350, %cst_174 [0] : vector<5x9xf32> to vector<9xf32>
    %352 = vector.shape_cast %351 : vector<9xf32> to vector<1x9xf32>
    %353 = math.log %352 : vector<1x9xf32>
    %354 = arith.addf %353, %347 : vector<1x9xf32>
    %355 = arith.subf %258, %354 : vector<1x9xf32>
    %356 = vector.broadcast %355 : vector<1x9xf32> to vector<5x9xf32>
    %357 = arith.addf %256, %356 : vector<5x9xf32>
    %cst_175 = arith.constant dense<0xFF800000> : vector<5xf32>
    %358 = vector.multi_reduction <maximumf>, %357, %cst_175 [1] : vector<5x9xf32> to vector<5xf32>
    %359 = vector.shape_cast %358 : vector<5xf32> to vector<5x1xf32>
    %360 = vector.broadcast %359 : vector<5x1xf32> to vector<5x9xf32>
    %361 = arith.subf %357, %360 : vector<5x9xf32>
    %362 = math.exp %361 : vector<5x9xf32>
    %cst_176 = arith.constant dense<0.000000e+00> : vector<5xf32>
    %363 = vector.multi_reduction <add>, %362, %cst_176 [1] : vector<5x9xf32> to vector<5xf32>
    %364 = vector.shape_cast %363 : vector<5xf32> to vector<5x1xf32>
    %365 = math.log %364 : vector<5x1xf32>
    %366 = arith.addf %365, %359 : vector<5x1xf32>
    %367 = arith.subf %257, %366 : vector<5x1xf32>
    %368 = vector.broadcast %367 : vector<5x1xf32> to vector<5x9xf32>
    %369 = arith.addf %256, %368 : vector<5x9xf32>
    %cst_177 = arith.constant dense<0xFF800000> : vector<9xf32>
    %370 = vector.multi_reduction <maximumf>, %369, %cst_177 [0] : vector<5x9xf32> to vector<9xf32>
    %371 = vector.shape_cast %370 : vector<9xf32> to vector<1x9xf32>
    %372 = vector.broadcast %371 : vector<1x9xf32> to vector<5x9xf32>
    %373 = arith.subf %369, %372 : vector<5x9xf32>
    %374 = math.exp %373 : vector<5x9xf32>
    %cst_178 = arith.constant dense<0.000000e+00> : vector<9xf32>
    %375 = vector.multi_reduction <add>, %374, %cst_178 [0] : vector<5x9xf32> to vector<9xf32>
    %376 = vector.shape_cast %375 : vector<9xf32> to vector<1x9xf32>
    %377 = math.log %376 : vector<1x9xf32>
    %378 = arith.addf %377, %371 : vector<1x9xf32>
    %379 = arith.subf %258, %378 : vector<1x9xf32>
    %380 = vector.broadcast %367 : vector<5x1xf32> to vector<5x9xf32>
    %381 = arith.addf %256, %380 : vector<5x9xf32>
    %382 = vector.broadcast %379 : vector<1x9xf32> to vector<5x9xf32>
    %383 = arith.addf %381, %382 : vector<5x9xf32>
    %cst_179 = arith.constant -2.48490667 : f32
    %384 = vector.broadcast %cst_179 : f32 to vector<5x9xf32>
    %385 = arith.subf %383, %384 : vector<5x9xf32>
    %386 = vector.extract_strided_slice %385 {offsets = [0, 0], sizes = [4, 8], strides = [1, 1]} : vector<5x9xf32> to vector<4x8xf32>
    %c0_180 = arith.constant 0 : index
    %c0_181 = arith.constant 0 : index
    %387 = vector.load %arg5[%c0_180, %c0_181] : memref<2x8xf32, #tpu.memory_space<vmem>>, vector<1x8xf32>
    %c1_182 = arith.constant 1 : index
    %c0_183 = arith.constant 0 : index
    %388 = vector.load %arg5[%c1_182, %c0_183] : memref<2x8xf32, #tpu.memory_space<vmem>>, vector<1x8xf32>
    %c0_184 = arith.constant 0 : index
    %c0_185 = arith.constant 0 : index
    %389 = vector.load %arg4[%c0_184, %c0_185] : memref<4x4xf32, #tpu.memory_space<vmem>>, vector<4x1xf32>
    %390 = vector.broadcast %387 : vector<1x8xf32> to vector<4x8xf32>
    %391 = vector.broadcast %389 : vector<4x1xf32> to vector<4x8xf32>
    %392 = arith.cmpf olt, %390, %391 : vector<4x8xf32>
    %c0_186 = arith.constant 0 : index
    %c1_187 = arith.constant 1 : index
    %393 = vector.load %arg4[%c0_186, %c1_187] : memref<4x4xf32, #tpu.memory_space<vmem>>, vector<4x1xf32>
    %394 = vector.broadcast %387 : vector<1x8xf32> to vector<4x8xf32>
    %395 = vector.broadcast %393 : vector<4x1xf32> to vector<4x8xf32>
    %396 = arith.cmpf oge, %394, %395 : vector<4x8xf32>
    %397 = arith.ori %392, %396 : vector<4x8xi1>
    %c0_188 = arith.constant 0 : index
    %c2_189 = arith.constant 2 : index
    %398 = vector.load %arg4[%c0_188, %c2_189] : memref<4x4xf32, #tpu.memory_space<vmem>>, vector<4x1xf32>
    %399 = vector.broadcast %388 : vector<1x8xf32> to vector<4x8xf32>
    %400 = vector.broadcast %398 : vector<4x1xf32> to vector<4x8xf32>
    %401 = arith.cmpf olt, %399, %400 : vector<4x8xf32>
    %402 = arith.ori %397, %401 : vector<4x8xi1>
    %c0_190 = arith.constant 0 : index
    %c3_191 = arith.constant 3 : index
    %403 = vector.load %arg4[%c0_190, %c3_191] : memref<4x4xf32, #tpu.memory_space<vmem>>, vector<4x1xf32>
    %404 = vector.broadcast %388 : vector<1x8xf32> to vector<4x8xf32>
    %405 = vector.broadcast %403 : vector<4x1xf32> to vector<4x8xf32>
    %406 = arith.cmpf oge, %404, %405 : vector<4x8xf32>
    %407 = arith.ori %402, %406 : vector<4x8xi1>
    %cst_192 = arith.constant 1.000000e+00 : f32
    %cst_193 = arith.constant 0.000000e+00 : f32
    %408 = vector.broadcast %cst_192 : f32 to vector<4x8xf32>
    %409 = vector.broadcast %cst_193 : f32 to vector<4x8xf32>
    %410 = arith.select %407, %408, %409 : vector<4x8xi1>, vector<4x8xf32>
    %cst_194 = arith.constant dense<0x7F800000> : vector<4xf32>
    %411 = vector.multi_reduction <minimumf>, %386, %cst_194 [1] : vector<4x8xf32> to vector<4xf32>
    %412 = vector.shape_cast %411 : vector<4xf32> to vector<4x1xf32>
    %cst_195 = arith.constant dense<0x7F800000> : vector<1xf32>
    %413 = vector.multi_reduction <minimumf>, %412, %cst_195 [0] : vector<4x1xf32> to vector<1xf32>
    %414 = vector.shape_cast %413 : vector<1xf32> to vector<1x1xf32>
    %cst_196 = arith.constant dense<0xFF800000> : vector<4xf32>
    %415 = vector.multi_reduction <maximumf>, %386, %cst_196 [1] : vector<4x8xf32> to vector<4xf32>
    %416 = vector.shape_cast %415 : vector<4xf32> to vector<4x1xf32>
    %cst_197 = arith.constant dense<0xFF800000> : vector<1xf32>
    %417 = vector.multi_reduction <maximumf>, %416, %cst_197 [0] : vector<4x1xf32> to vector<1xf32>
    %418 = vector.shape_cast %417 : vector<1xf32> to vector<1x1xf32>
    %419 = arith.subf %414, %418 : vector<1x1xf32>
    %cst_198 = arith.constant 4.000000e+01 : f32
    %420 = vector.broadcast %cst_198 : f32 to vector<1x1xf32>
    %421 = arith.subf %419, %420 : vector<1x1xf32>
    %422 = vector.broadcast %421 : vector<1x1xf32> to vector<4x8xf32>
    %423 = arith.mulf %422, %410 : vector<4x8xf32>
    %424 = arith.addf %386, %423 : vector<4x8xf32>
    %cst_199 = arith.constant 2.000000e+01 : f32
    %425 = vector.broadcast %cst_199 : f32 to vector<1x1xf32>
    %426 = arith.subf %419, %425 : vector<1x1xf32>
    %c0_200 = arith.constant 0 : index
    %c0_201 = arith.constant 0 : index
    %427 = vector.load %arg3[%c0_200, %c0_201] : memref<4x8xf32, #tpu.memory_space<vmem>>, vector<4x8xf32>
    %428 = vector.broadcast %426 : vector<1x1xf32> to vector<4x8xf32>
    %429 = arith.mulf %428, %427 : vector<4x8xf32>
    %430 = arith.addf %424, %429 : vector<4x8xf32>
    %cst_202 = arith.constant 1.500000e+01 : f32
    %431 = vector.broadcast %cst_202 : f32 to vector<4x8xf32>
    %432 = arith.mulf %430, %431 : vector<4x8xf32>
    %c0_203 = arith.constant 0 : index
    %c0_204 = arith.constant 0 : index
    %433 = vector.load %arg24[%c0_203, %c0_204] : memref<4x8xf32, #tpu.memory_space<vmem>>, vector<4x8xf32>
    tpu.vector_store %arg24[%c0_203, %c0_204], %432 {strides = array<i32>} : memref<4x8xf32, #tpu.memory_space<vmem>>, vector<4x8xf32>,
    return
  }
}

</mosaic_0001>

<bundles_post_ra>
// kernel: attentional_gnn_forward.1
= control target key start
LH: loop header
LB: loop body
LE: loop exit
PB: predicated region body
PF: predicated region fallthrough
CT: control target
= control target key end

     0   :  { %s4213_s0 = inlined_call_operand.vmem [shape: f32[32,8], index: 0, kind: input, shape index: {}]   ;;  %s4214_s1 = inlined_call_operand.vmem [shape: f32[32,4], index: 1, kind: input, shape index: {}]   ;;  %s4215_s2 = inlined_call_operand.hbm [shape: f32[32,32], index: 2, kind: input, shape index: {}]   ;;  %s4216_s3 = inlined_call_operand.vmem [shape: f32[4,8], index: 3, kind: input, shape index: {}]   ;;  %s4217_s4 = inlined_call_operand.vmem [shape: f32[4,4], index: 4, kind: input, shape index: {}]   ;;  %s4218_s5 = inlined_call_operand.vmem [shape: f32[2,8], index: 5, kind: input, shape index: {}]   ;;  %s4219_s6 = inlined_call_operand.hbm [shape: f32[96,32], index: 6, kind: input, shape index: {}]   ;;  %s4220_s7 = inlined_call_operand.vmem [shape: f32[96,1], index: 7, kind: input, shape index: {}]   ;;  %s4221_s8 = inlined_call_operand.hbm [shape: f32[4,32,8], index: 8, kind: input, shape index: {}]   ;;  %s4222_s9 = inlined_call_operand.hbm [shape: f32[32,1], index: 9, kind: input, shape index: {}]   ;;  %s4223_s10 = inlined_call_operand.hbm [shape: f32[64,32], index: 10, kind: input, shape index: {}]   ;;  %s4224_s11 = inlined_call_operand.hbm [shape: f32[64,32], index: 11, kind: input, shape index: {}]   ;;  %s4225_s12 = inlined_call_operand.hbm [shape: f32[64,1], index: 12, kind: input, shape index: {}]   ;;  %s4226_s13 = inlined_call_operand.hbm [shape: f32[32,64], index: 13, kind: input, shape index: {}]   ;;  %s4227_s14 = inlined_call_operand.vmem [shape: f32[32,1], index: 14, kind: input, shape index: {}]   ;;  %s4228_s15 = inlined_call_operand.hbm [shape: f32[32,96], index: 15, kind: input, shape index: {}]   ;;  %s4229_s16 = inlined_call_operand.hbm [shape: f32[32,1], index: 16, kind: input, shape index: {}]   ;;  %s4230_s17 = inlined_call_operand.vmem [shape: f32[1,32], index: 17, kind: input, shape index: {}]   ;;  %s4231_s18 = inlined_call_operand.<no memory space> [shape: f32[1,1], index: 18, kind: input, shape index: {}]   ;;  %s4232_s19 = inlined_call_operand.vmem [shape: f32[4,32], index: 19, kind: input, shape index: {}]   ;;  %s4233_s20 = inlined_call_operand.vmem [shape: f32[8,32], index: 20, kind: input, shape index: {}]   ;;  %s4234_s21 = inlined_call_operand.vmem [shape: f32[5,1], index: 21, kind: input, shape index: {}]   ;;  %s4235_s22 = inlined_call_operand.vmem [shape: f32[1,9], index: 22, kind: input, shape index: {}]   ;;  %s4236_s23 = inlined_call_operand.<no memory space> [shape: f32[1,1], index: 23, kind: input, shape index: {}]   ;;  %s4237_s24 = inlined_call_operand.hbm [shape: f32[4,8], index: 24, kind: output, shape index: {}]  }
   0x1   :  { %4259 = sst [smem:[#allocation47_spill]] %s4213_s0  ;;  %v29_v0 = vstv %s4231_s18 }
   0x2   :  { %4260 = sst [smem:[#allocation48_spill]] %s4214_s1  ;;  %30 = vst [vmem:[#allocation3] sm:$0x1] %v29_v0 }
   0x3   :  { %4261 = sst [smem:[#allocation49_spill]] %s4215_s2 }
   0x4   :  { %4262 = sst [smem:[#allocation50_spill]] %s4216_s3 }
   0x5   :  { %4263 = sst [smem:[#allocation51_spill]] %s4217_s4 }
   0x6   :  { %4264 = sst [smem:[#allocation52_spill]] %s4218_s5 }
   0x7   :  { %4265 = sst [smem:[#allocation53_spill]] %s4219_s6 }
   0x8   :  { %4266 = sst [smem:[#allocation54_spill]] %s4220_s7 }
   0x9   :  { %4267 = sst [smem:[#allocation55_spill]] %s4221_s8 }
   0xa   :  { %32 = vsyncpa [#allocation6], 0 }
   0xb   :  { %33 = vsyncpa [#allocation9], 0 }
   0xc   :  { %34 = vsyncpa [#allocation12], 0 }
   0xd   :  { %35 = vsyncpa [#allocation15], 0 }
   0xe   :  { %36 = vsyncpa [#allocation18], 0 }
   0xf   :  { %37 = vsyncpa [#allocation21], 0 }
  0x10   :  { %38 = vsyncpa [#allocation7], 0  ;;  %s4268_s6 = sld [smem:[#allocation53_spill]]  ;;  %s3287_s29 = smov [#allocation8]  }
  0x11   :  { %s68_s0 = sshll.u32 %s3287_s29, 4  ;;  %s94_s18 = sshll.u32 %s4222_s9, 4  ;;  %s69_s0 = int_to_ptr.vmem [resolvable:$true] %s68_s0  ;;  %s95_s18 = int_to_ptr.hbm [resolvable:$true] %s94_s18 }
  0x12   :  { %s3288_s3 = smov 128   ;;  %s3289_s25 = smov 8  }
  0x13   :  { %s3290_s8 = smov [#allocation11]   ;;  %s120_s26 = sshll.u32 %s4224_s11, 4  ;;  %s121_s26 = int_to_ptr.hbm [resolvable:$true] %s120_s26 }
  0x14   :  { %s96_s4 = sshll.u32 %s3290_s8, 4  ;;  %s146_s28 = sshll.u32 %s4226_s13, 4  ;;  %s97_s4 = int_to_ptr.vmem [resolvable:$true] %s96_s4  ;;  %s147_s28 = int_to_ptr.hbm [resolvable:$true] %s146_s28 }
  0x15   :  { %102 = dma.hbm_to_vmem [thread:$0]  %s95_s18, 512, %s97_s4, [#allocation12], %s3288_s3, %s3288_s3, %s3289_s25  }
  0x16   :  { %s66_s2 = sshll.u32 %s4268_s6, 4  ;;  %s3291_s6 = smov [#allocation14]   ;;  %s67_s2 = int_to_ptr.hbm [resolvable:$true] %s66_s2 }
  0x17   :  { %74 = dma.hbm_to_vmem [thread:$0]  %s67_s2, 1536, %s69_s0, [#allocation9], %s3288_s3, %s3288_s3, %s3289_s25  }
  0x18   :  { %s122_s29 = sshll.u32 %s3291_s6, 4  ;;  %s3292_s2 = smov [#allocation17]   ;;  %s123_s29 = int_to_ptr.vmem [resolvable:$true] %s122_s29 }
  0x19   :  { %128 = dma.hbm_to_vmem [thread:$0]  %s121_s26, 1024, %s123_s29, [#allocation15], %s3288_s3, %s3288_s3, %s3289_s25  }
  0x1a   :  { %s148_s11 = sshll.u32 %s3292_s2, 4  ;;  %s4269_s30 = sld [smem:[#allocation49_spill]]  ;;  %s149_s11 = int_to_ptr.vmem [resolvable:$true] %s148_s11 }
  0x1b   :  { %154 = dma.hbm_to_vmem [thread:$0]  %s147_s28, 512, %s149_s11, [#allocation18], %s3288_s3, %s3288_s3, %s3289_s25  }
  0x1c   :  { %s4270_s4 = sld [smem:[#allocation55_spill]]  ;;  %s3293_s5 = smov [#allocation5]  }
  0x1d   :  { %s49_s9 = sshll.u32 %s3293_s5, 4  ;;  %s3294_s26 = smov [#allocation10]   ;;  %s50_s9 = int_to_ptr.vmem [resolvable:$true] %s49_s9 }
  0x1e   :  { %s83_s27 = sshll.u32 %s3294_s26, 4  ;;  %s107_s2 = sshll.u32 %s4223_s10, 4  ;;  %s84_s27 = int_to_ptr.vmem [resolvable:$true] %s83_s27  ;;  %s108_s2 = int_to_ptr.hbm [resolvable:$true] %s107_s2 }
  0x1f   :  { %s133_s0 = sshll.u32 %s4225_s12, 4  ;;  %s3295_s7 = smov [#allocation13]   ;;  %s134_s0 = int_to_ptr.hbm [resolvable:$true] %s133_s0 }
  0x20   :  { %s47_s8 = sshll.u32 %s4269_s30, 4  ;;  %s109_s30 = sshll.u32 %s3295_s7, 4  ;;  %s48_s8 = int_to_ptr.hbm [resolvable:$true] %s47_s8  ;;  %s110_s30 = int_to_ptr.vmem [resolvable:$true] %s109_s30 }
  0x21   :  { %55 = dma.hbm_to_vmem [thread:$0]  %s48_s8, 512, %s50_s9, [#allocation6], %s3288_s3, %s3288_s3, %s3289_s25  }
  0x22   :  { %s81_s1 = sshll.u32 %s4270_s4, 4  ;;  %s3296_s8 = smov [#allocation16]   ;;  %s82_s1 = int_to_ptr.hbm [resolvable:$true] %s81_s1 }
  0x23   :  { %89 = dma.hbm_to_vmem [thread:$0]  %s82_s1, 2048, %s84_s27, [#allocation9], %s3288_s3, %s3288_s3, %s3289_s25  }
  0x24   :  { %115 = dma.hbm_to_vmem [thread:$0]  %s108_s2, 1024, %s110_s30, [#allocation12], %s3288_s3, %s3288_s3, %s3289_s25  }
  0x25   :  { %s135_s10 = sshll.u32 %s3296_s8, 4  ;;  %s161_s4 = sshll.u32 %s4228_s15, 4  ;;  %s136_s10 = int_to_ptr.vmem [resolvable:$true] %s135_s10  ;;  %s162_s4 = int_to_ptr.hbm [resolvable:$true] %s161_s4 }
  0x26   :  { %141 = dma.hbm_to_vmem [thread:$0]  %s134_s0, 1024, %s136_s10, [#allocation15], %s3288_s3, %s3288_s3, %s3289_s25  }
  0x27   :  { %s174_s5 = sshll.u32 %s4229_s16, 4  ;;  %s3297_s9 = smov [#allocation19]   ;;  %s175_s5 = int_to_ptr.hbm [resolvable:$true] %s174_s5 }
  0x28   :  { %s163_s26 = sshll.u32 %s3297_s9, 4  ;;  %s3298_s27 = smov [#allocation20]   ;;  %s164_s26 = int_to_ptr.vmem [resolvable:$true] %s163_s26 }
  0x29   :  { %169 = dma.hbm_to_vmem [thread:$0]  %s162_s4, 512, %s164_s26, [#allocation18], %s3288_s3, %s3288_s3, %s3289_s25  }
  0x2a   :  { %s176_s15 = sshll.u32 %s3298_s27, 4  ;;  %s177_s15 = int_to_ptr.vmem [resolvable:$true] %s176_s15 }
  0x2b   :  { %182 = dma.hbm_to_vmem [thread:$0]  %s175_s5, 512, %s177_s15, [#allocation21], %s3288_s3, %s3288_s3, %s3289_s25  }
  0x2c   :  { %3273 = dma.done.wait [#allocation6], 512  }
  0x2d   :  { %3274 = vsyncadd [#allocation6], 4294966784 }
  0x2e   :  { %3275 = dma.done.wait [#allocation9], 3584  }
  0x2f   :  { %3276 = vsyncadd [#allocation9], 4294963712 }
  0x30   :  { %3277 = dma.done.wait [#allocation12], 1536  }
  0x31   :  { %3278 = vsyncadd [#allocation12], 4294965760 }
  0x32   :  { %3279 = dma.done.wait [#allocation15], 2048  }
  0x33   :  { %3280 = vsyncadd [#allocation15], 4294965248 }
  0x34   :  { %3281 = dma.done.wait [#allocation18], 1024  }
  0x35   :  { %3282 = vsyncadd [#allocation18], 4294966272 }
  0x36   :  { %3283 = dma.done.wait [#allocation21], 512  }
  0x37   :  { %3284 = vsyncadd [#allocation21], 4294966784  ;;  %v3299_v1 = vmov 0   ;;  %s4271_s3 = sld [smem:[#allocation47_spill]]  ;;  %v241_v7 = vld [vmem:[#allocation8] sm:$0xff]  ;;  %vm325_vm0 = vcmask 261120  }
  0x38   :  { %2916 = vset.pattern.permute.xlu0 %v3299_v1  ;;  %2917 = vset.pattern.permute.xlu2 %v3299_v1  ;;  %s4272_s2 = sld [smem:[#allocation54_spill]]  ;;  %v242_v10 = vld [vmem:[#allocation8 + $0x8] sm:$0xff]  ;;  %v243_v12 = vld [vmem:[#allocation8 + $0x10] sm:$0xff]  ;;  %v244_v14 = vld [vmem:[#allocation8 + $0x18] sm:$0xff]  ;;  %vm447_vm1 = vcmask 64512   ;;  %s3301_s0 = smov 96  }
  0x39   :  { %v245_v15 = vld [vmem:[#allocation8 + $0x20] sm:$0xff]  ;;  %v246_v16 = vld [vmem:[#allocation8 + $0x28] sm:$0xff]  ;;  %v247_v17 = vld [vmem:[#allocation8 + $0x30] sm:$0xff]  ;;  %s4273_s15 = sld [smem:[#allocation48_spill]]  ;;  %s3306_s5 = smov [#allocation22]  }
  0x3a   :  { %v248_v18 = vld [vmem:[#allocation8 + $0x38] sm:$0xff]  ;;  %v249_v23 = vld [vmem:[#allocation8 + $0x40] sm:$0xff]  ;;  %v250_v24 = vld [vmem:[#allocation8 + $0x48] sm:$0xff]  ;;  %s4309_s13 = sld [smem:[#allocation52_spill]]  ;;  %s2732_s9 = sshll.u32 %s3306_s5, 4  ;;  %s2733_s9 = int_to_ptr.vmem [resolvable:$true] %s2732_s9 }
  0x3b   :  { %v251_v25 = vld [vmem:[#allocation8 + $0x50] sm:$0xff]  ;;  %v252_v26 = vld [vmem:[#allocation8 + $0x58] sm:$0xff] }
  0x3d   :  { %v3500_v2 = vld [vmem:[%s4271_s3 + $0x18] sm:$0xff]  ;;  %v3508_v4 = vld [vmem:[%s4271_s3 + $0x10] sm:$0xff]  ;;  %v3514_v5 = vld [vmem:[%s4271_s3 + $0x8] sm:$0xff] }
  0x3e   :  { %v254_v3 = vld [vmem:[%s4272_s2 + $0x8] sm:$0xff]  ;;  %374 = vmatpush.msra.mxu0 %v3500_v2  ;;  %v3520_v6 = vld [vmem:[%s4271_s3] sm:$0xff]  ;;  %v260_v41 = vld [vmem:[%s4272_s2 + $0x38] sm:$0xff] }
  0x3f   :  { %272 = vperm.xlu0 %2916, %v254_v3   ;;  %v258_v8 = vld [vmem:[%s4272_s2 + $0x28] sm:$0xff]  ;;  %v253_v9 = vld [vmem:[%s4272_s2] sm:$0xff]  ;;  %v1350_v19 = vld [vmem:[%s4273_s15 + $0x18] sm:$0xff] }
  0x40   :  { %375 = vmatpush.msra.mxu0 %v3508_v4  ;;  %267 = vperm.xlu2 %2917, %v253_v9   ;;  %v257_v11 = vld [vmem:[%s4272_s2 + $0x20] sm:$0xff]  ;;  %v262_v13 = vld [vmem:[%s4272_s2 + $0x48] sm:$0xff]  ;;  %v1349_v20 = vld [vmem:[%s4273_s15 + $0x10] sm:$0xff] }
  0x41   :  { %v1348_v21 = vld [vmem:[%s4273_s15 + $0x8] sm:$0xff]  ;;  %v1347_v22 = vld [vmem:[%s4273_s15] sm:$0xff]  ;;  %v256_v53 = vld [vmem:[%s4272_s2 + $0x18] sm:$0xff] }
  0x42   :  { %376 = vmatpush.msra.mxu0 %v3514_v5  ;;  %v255_v54 = vld [vmem:[%s4272_s2 + $0x10] sm:$0xff] }
  0x43   :  { %v259_v55 = vld [vmem:[%s4272_s2 + $0x30] sm:$0xff] }
  0x44   :  { %377 = vmatpush.msra.mxu0 %v3520_v6 }
  0x45   :  { %2749 = vmatmul.msk.f32.vlgmr.msra.gmra.mxu0 %vm325_vm0, %v241_v7 }
  0x46   :  { %1363 = vmatpush.msrb.mxu0 %v1350_v19 }
  0x47   :  { %292 = vperm.xlu0 %2916, %v258_v8  }
  0x48   :  { %1364 = vmatpush.msrb.mxu0 %v1349_v20 }
  0x4a   :  { %1365 = vmatpush.msrb.mxu0 %v1348_v21 }
  0x4c   :  { %1366 = vmatpush.msrb.mxu0 %v1347_v22 }
  0x4d   :  { %2750 = vmatmul.msk.f32.gmra.mxu0 %vm325_vm0, %v242_v10 }
  0x4f   :  { %287 = vperm.xlu0 %2916, %v257_v11  }
  0x55   :  { %2751 = vmatmul.msk.f32.gmra.mxu0 %vm325_vm0, %v243_v12 }
  0x57   :  { %312 = vperm.xlu0 %2916, %v262_v13  }
  0x5d   :  { %2752 = vmatmul.msk.f32.gmra.mxu0 %vm325_vm0, %v244_v14 }
  0x65   :  { %2753 = vmatmul.msk.f32.gmra.mxu0 %vm325_vm0, %v245_v15 }
  0x6d   :  { %2754 = vmatmul.msk.f32.gmra.mxu0 %vm325_vm0, %v246_v16 }
  0x75   :  { %2755 = vmatmul.msk.f32.gmra.mxu0 %vm325_vm0, %v247_v17 }
  0x7d   :  { %2756 = vmatmul.msk.f32.gmra.mxu0 %vm325_vm0, %v248_v18 }
  0x85   :  { %2757 = vmatmul.msk.f32.gmra.mxu0 %vm325_vm0, %v249_v23 }
  0x8d   :  { %2758 = vmatmul.msk.f32.gmra.mxu0 %vm325_vm0, %v250_v24 }
  0x95   :  { %2759 = vmatmul.msk.f32.gmra.mxu0 %vm325_vm0, %v251_v25 }
  0x9a   :  { %v3564_v27 = vpop.permute.xlu2 %267 }
  0x9d   :  { %2760 = vmatmul.msk.f32.gmra.mxu0 %vm325_vm0, %v252_v26 }
  0xa5   :  { %2809 = vmatmul.msk.f32.vlgmr.msrb.gmra.mxu0 %vm325_vm0, %v241_v7 }
  0xad   :  { %2810 = vmatmul.msk.f32.gmra.mxu0 %vm325_vm0, %v242_v10 }
  0xb1   :  { %v3568_v30 = vpop.permute.xlu0 %272 }
  0xb5   :  { %2811 = vmatmul.msk.f32.gmra.mxu0 %vm325_vm0, %v243_v12 }
  0xb9   :  { %v3575_v34 = vpop.permute.xlu0 %292 }
  0xbd   :  { %2812 = vmatmul.msk.f32.gmra.mxu0 %vm325_vm0, %v244_v14 }
  0xc1   :  { %v3578_v36 = vpop.permute.xlu0 %287 }
  0xc2   :  { %v379_v28 = vpop.f32.mrf.mxu0 }
  0xc3   :  { %v380_v29 = vadd.f32 %v379_v28, %v3564_v27 }
  0xc5   :  { %2813 = vmatmul.msk.f32.gmra.mxu0 %vm325_vm0, %v245_v15  ;;  %415 = vxpose.xlu0.b32.start.end [1/1] (short) (narrow) %v380_v29, 8  ;;  %v3631_v29 = vld [vmem:[#allocation10 + $0x28] sm:$0xff] }
  0xc9   :  { %v3589_v42 = vpop.permute.xlu0 %312 }
  0xca   :  { %v382_v31 = vpop.f32.mrf.mxu0 }
  0xcb   :  { %v383_v32 = vadd.f32 %v382_v31, %v3568_v30  ;;  %v1031_v31 = vld [vmem:[#allocation11] sm:$0xff] }
  0xcd   :  { %2814 = vmatmul.msk.f32.gmra.mxu0 %vm325_vm0, %v246_v16  ;;  %526 = vxpose.xlu1.b32.start.end [1/1] (short) (narrow) %v383_v32, 8  ;;  %v3635_v32 = vld [vmem:[#allocation10 + $0x30] sm:$0xff] }
  0xd2   :  { %v3572_v33 = vpop.f32.mrf.mxu0 }
  0xd5   :  { %2815 = vmatmul.msk.f32.gmra.mxu0 %vm325_vm0, %v247_v17 }
  0xda   :  { %v388_v35 = vpop.f32.mrf.mxu0 }
  0xdd   :  { %2816 = vmatmul.msk.f32.gmra.mxu0 %vm325_vm0, %v248_v18 }
  0xe2   :  { %v391_v37 = vpop.f32.mrf.mxu0 }
  0xe3   :  { %v392_v38 = vadd.f32 %v391_v37, %v3578_v36  ;;  %v1208_v37 = vld [vmem:[#allocation16 + $0x18] sm:$0xff] }
  0xe5   :  { %466 = vmatpush.msra.mxu1 %v392_v38  ;;  %2817 = vmatmul.msk.f32.gmra.mxu0 %vm325_vm0, %v249_v23  ;;  %v261_v23 = vld [vmem:[%s4272_s2 + $0x40] sm:$0xff] }
  0xea   :  { %v394_v39 = vpop.f32.mrf.mxu0 }
  0xeb   :  { %v395_v40 = vadd.f32 %v394_v39, %v3575_v34 }
  0xed   :  { %576 = vmatpush.msra.mxu3 %v395_v40  ;;  %2818 = vmatmul.msk.f32.gmra.mxu0 %vm325_vm0, %v250_v24  ;;  %v1205_v40 = vld [vmem:[#allocation16] sm:$0xff] }
  0xf2   :  { %v397_v56 = vpop.f32.mrf.mxu0 }
  0xf5   :  { %2819 = vmatmul.msk.f32.gmra.mxu0 %vm325_vm0, %v251_v25  ;;  %v3626_v25 = vld [vmem:[#allocation10 + $0x20] sm:$0xff] }
  0xfa   :  { %v400_v57 = vpop.f32.mrf.mxu0 }
  0xfd   :  { %2820 = vmatmul.msk.f32.gmra.mxu0 %vm325_vm0, %v252_v26 }
 0x102   :  { %v3604_v60 = vpop.f32.mrf.mxu0 }
 0x10a   :  { %v406_v15 = vpop.f32.mrf.mxu0 }
 0x10b   :  { %v407_v17 = vadd.f32 %v406_v15, %v3589_v42 }
 0x133   :  { %302 = vperm.xlu0 %2916, %v260_v41  }
 0x169   :  { %v431_v43 = vpop.trf.xlu0 }
 0x16a   :  { %2761 = vmatmul.msk.f32.vlgmr.msra.gmra.mxu1 %vm447_vm1, %v431_v43 }
 0x171   :  { %v542_v44 = vpop.trf.xlu1 }
 0x172   :  { %2764 = vmatmul.msk.f32.vlgmr.msra.gmra.mxu3 %vm447_vm1, %v542_v44 }
 0x1a5   :  { %v3624_v24 = vpop.permute.xlu0 %302 }
 0x1a6   :  { %v401_v28 = vadd.f32 %v400_v57, %v3624_v24  ;;  %v263_v57 = vld [vmem:[%s4272_s2 + $0x50] sm:$0xff] }
 0x1e7   :  { %v468_v20 = vpop.f32.mrf.mxu1 }
 0x1e8   :  { %v471_v21 = vmul.f32 0.35355338, %v468_v20 }
 0x1ea   :  { %v472_v22 = vsel %vm447_vm1, %v471_v21, -inf }
 0x1f5   :  { %v578_v45 = vpop.f32.mrf.mxu3 }
 0x1f6   :  { %v581_v46 = vmul.f32 0.35355338, %v578_v45 }
 0x1f8   :  { %v582_v47 = vsel %vm447_vm1, %v581_v46, -inf }
 0x1f9   :  { %583 = vmax.xlane.f32.xlu1 %v582_v47 }
 0x26c   :  { %v584_v48 = vpop.xlane.xlu1 %583 }
 0x26d   :  { %v585_v49 = vsub.f32 %v581_v46, %v584_v48 }
 0x26f   :  { %v586_v50 = vmul.f32 1.442695, %v585_v49 }
 0x271   :  { %2925 = vpow2.f32 %v586_v50 }
 0x277   :  { %v2926_v51 = vpop.eup %2925 }
 0x278   :  { %v588_v52 = vsel %vm447_vm1, %v2926_v51, 0.0 }
 0x279   :  { %589 = vadd.xlane.f32.xlu2 %v588_v52 }
 0x291   :  { %282 = vperm.xlu2 %2917, %v256_v53  }
 0x299   :  { %277 = vperm.xlu2 %2917, %v255_v54  }
 0x2a1   :  { %297 = vperm.xlu2 %2917, %v259_v55  }
 0x2ec   :  { %v590_v58 = vpop.xlane.xlu2 %589 }
 0x2ed   :  { %2927 = vrcp.f32 %v590_v58  ;;  %v602_v3 = vand.u32 2147483648, %v590_v58  ;;  %v600_v8 = vand.u32 2147483647, %v590_v58  ;;  %vm596_vm3 = vweird.f32 %v590_v58 }
 0x2ef   :  { %v603_v10 = vor.u32 1.1754944e-38, %v602_v3  ;;  %vm601_vm5 = vcmp.eq.f32.partialorder %v600_v8, 8.507059e+37 }
 0x2f3   :  { %v2928_v59 = vpop.eup %2927 }
 0x2f4   :  { %v592_v61 = vmul.f32 %v2928_v59, %v590_v58  ;;  %v3606_v62 = vpop.permute.xlu2 %282  ;;  %vm597_vm2 = vweird.f32 %v2928_v59  ;;  %v1210_v58 = vld [vmem:[#allocation16 + $0x28] sm:$0xff] }
 0x2f5   :  { %v389_v63 = vadd.f32 %v388_v35, %v3606_v62  ;;  %vm598_vm4 = vmor %vm596_vm3, %vm597_vm2  ;;  %v3639_v35 = vld [vmem:[#allocation10 + $0x38] sm:$0xff] }
 0x2f6   :  { %v593_v0 = vsub.f32 1.0, %v592_v61  ;;  %v3659_v61 = vpop.f32.mrf.mxu0 }
 0x2f7   :  { %875 = vxpose.xlu2.b32.start.end [1/1] (short) (narrow) %v389_v63, 8 }
 0x2f8   :  { %v594_v7 = vmul.f32 %v2928_v59, %v593_v0 }
 0x2fa   :  { %v595_v9 = vadd.f32 %v2928_v59, %v594_v7 }
 0x2fc   :  { %v3609_v11 = vpop.permute.xlu2 %277  ;;  %v599_v12 = vsel %vm598_vm4, %v2928_v59, %v595_v9  ;;  %v1207_v59 = vld [vmem:[#allocation16 + $0x10] sm:$0xff]  ;;  %vm1273_vm4 = vcmask 523264  }
 0x2fd   :  { %v386_v13 = vadd.f32 %v3572_v33, %v3609_v11  ;;  %v604_v14 = vsel %vm601_vm5, %v603_v10, %v599_v12  ;;  %v1211_v33 = vld [vmem:[#allocation16 + $0x30] sm:$0xff]  ;;  %vm1460_vm5 = vcmask 27648  }
 0x2fe   :  { %v605_v16 = vmul.f32 %v2926_v51, %v604_v14  ;;  %v3661_v63 = vpop.f32.mrf.mxu0 }
 0x2ff   :  { %719 = vxpose.xlu1.b32.start.end [1/1] (short) (narrow) %v386_v13, 8 }
 0x300   :  { %2765 = vmatpush.xpose.msk.msrb.mxu1 %vm447_vm1, %v605_v16 }
 0x303   :  { %2766 = vmatmul.msk.f32.vlgmr.msrb.gmra.mxu1 %vm447_vm1, %v407_v17 }
 0x304   :  { %v3616_v18 = vpop.permute.xlu2 %297 }
 0x305   :  { %v398_v19 = vadd.f32 %v397_v56, %v3616_v18 }
 0x306   :  { %v1368_v0 = vpop.f32.mrf.mxu0 }
 0x307   :  { %769 = vmatpush.msra.mxu1 %v398_v19  ;;  %v1369_v3 = vadd.f32 %v1368_v0, %v3564_v27 }
 0x352   :  { %2918 = vset.pattern.permute.xlu1 %v3299_v1  ;;  %v1033_v1 = vld [vmem:[#allocation11 + $0x10] sm:$0xff] }
 0x368   :  { %473 = vmax.xlane.f32.xlu2 %v472_v22 }
 0x380   :  { %v629_v26 = vpop.f32.mrf.mxu1  ;;  %307 = vperm.xlu2 %2917, %v261_v23  }
 0x381   :  { %664 = vmatpush.msrb.mxu3 %v629_v26 }
 0x382   :  { %2767 = vmatmul.msk.f32.vlgmr.msrb.gmra.mxu3 %vm447_vm1, %v3626_v25 }
 0x383   :  { %925 = vmatpush.msra.mxu3 %v401_v28 }
 0x388   :  { %1047 = vperm.xlu2 %2917, %v1033_v1  }
 0x38a   :  { %2768 = vmatmul.msk.f32.gmra.mxu3 %vm447_vm1, %v3631_v29 }
 0x390   :  { %1037 = vperm.xlu2 %2917, %v1031_v31   ;;  %v891_v38 = vpop.trf.xlu2 }
 0x392   :  { %2769 = vmatmul.msk.f32.gmra.mxu3 %vm447_vm1, %v3635_v32 }
 0x398   :  { %1245 = vperm.xlu2 %2917, %v1211_v33  }
 0x39a   :  { %2770 = vmatmul.msk.f32.gmra.mxu3 %vm447_vm1, %v3639_v35 }
 0x3a0   :  { %1230 = vperm.xlu2 %2917, %v1208_v37  }
 0x3a2   :  { %2782 = vmatmul.msk.f32.vlgmr.msra.gmra.mxu3 %vm447_vm1, %v891_v38 }
 0x3a3   :  { %v735_v39 = vpop.trf.xlu1 }
 0x3a4   :  { %2775 = vmatmul.msk.f32.vlgmr.msra.gmra.mxu1 %vm447_vm1, %v735_v39 }
 0x3a8   :  { %1215 = vperm.xlu2 %2917, %v1205_v40   ;;  %v264_v40 = vld [vmem:[%s4272_s2 + $0x58] sm:$0xff]  ;;  %s3300_s2 = smov 64  }
 0x3db   :  { %v474_v45 = vpop.xlane.xlu2 %473 }
 0x3dc   :  { %v475_v46 = vsub.f32 %v471_v21, %v474_v45  ;;  %v1034_v45 = vld [vmem:[#allocation11 + $0x18] sm:$0xff] }
 0x3de   :  { %v476_v48 = vmul.f32 1.442695, %v475_v46  ;;  %v1032_v46 = vld [vmem:[#allocation11 + $0x8] sm:$0xff] }
 0x3e0   :  { %2929 = vpow2.f32 %v476_v48  ;;  %v1212_v48 = vld [vmem:[#allocation16 + $0x38] sm:$0xff] }
 0x3e3   :  { %v3672_v37 = vpop.permute.xlu2 %307 }
 0x3e4   :  { %v404_v39 = vadd.f32 %v3604_v60, %v3672_v37 }
 0x3e6   :  { %v2930_v55 = vpop.eup %2929 }
 0x3e7   :  { %v478_v56 = vsel %vm447_vm1, %v2930_v55, 0.0 }
 0x405   :  { %v3645_v41 = vpop.f32.mrf.mxu3 }
 0x40d   :  { %v3647_v43 = vpop.f32.mrf.mxu3 }
 0x415   :  { %v3649_v44 = vpop.f32.mrf.mxu3 }
 0x41d   :  { %v3651_v47 = vpop.f32.mrf.mxu3 }
 0x421   :  { %v771_v49 = vpop.f32.mrf.mxu1 }
 0x422   :  { %v774_v50 = vmul.f32 0.35355338, %v771_v49  ;;  %v1209_v49 = vld [vmem:[#allocation16 + $0x20] sm:$0xff] }
 0x424   :  { %v775_v51 = vsel %vm447_vm1, %v774_v50, -inf }
 0x425   :  { %776 = vmax.xlane.f32.xlu0 %v775_v51  ;;  %v927_v52 = vpop.f32.mrf.mxu3  ;;  %v1371_v51 = vpop.f32.mrf.mxu0 }
 0x426   :  { %v930_v53 = vmul.f32 0.35355338, %v927_v52  ;;  %v1372_v60 = vadd.f32 %v1371_v51, %v3568_v30 }
 0x428   :  { %v931_v54 = vsel %vm447_vm1, %v930_v53, -inf }
 0x429   :  { %932 = vmax.xlane.f32.xlu1 %v931_v54 }
 0x42d   :  { %479 = vadd.xlane.f32.xlu0 %v478_v56 }
 0x442   :  { %317 = vperm.xlu1 %2918, %v263_v57  }
 0x44a   :  { %1240 = vperm.xlu1 %2918, %v1210_v58  }
 0x452   :  { %1225 = vperm.xlu1 %2918, %v1207_v59  }
 0x487   :  { %1404 = vxpose.xlu1.b32.start.end [1/1] (short) (narrow) %v1369_v3, 8 }
 0x498   :  { %v777_v7 = vpop.xlane.xlu0 %776 }
 0x499   :  { %v778_v8 = vsub.f32 %v774_v50, %v777_v7  ;;  %v1206_v50 = vld [vmem:[#allocation16 + $0x8] sm:$0xff] }
 0x49b   :  { %v779_v9 = vmul.f32 1.442695, %v778_v8 }
 0x49c   :  { %v933_v10 = vpop.xlane.xlu1 %932 }
 0x49d   :  { %2931 = vpow2.f32 %v779_v9  ;;  %v934_v12 = vsub.f32 %v930_v53, %v933_v10 }
 0x49f   :  { %v935_v13 = vmul.f32 1.442695, %v934_v12 }
 0x4a0   :  { %v480_v14 = vpop.xlane.xlu0 %479 }
 0x4a1   :  { %2933 = vrcp.f32 %v480_v14  ;;  %v492_v22 = vand.u32 2147483648, %v480_v14  ;;  %v490_v26 = vand.u32 2147483647, %v480_v14  ;;  %vm486_vm7 = vweird.f32 %v480_v14 }
 0x4a2   :  { %2935 = vpow2.f32 %v935_v13 }
 0x4a3   :  { %v3664_v15 = vpop.eup %2931  ;;  %v493_v1 = vor.u32 1.1754944e-38, %v492_v22  ;;  %vm491_vm9 = vcmp.eq.f32.partialorder %v490_v26, 8.507059e+37 }
 0x4a4   :  { %v781_v16 = vsel %vm447_vm1, %v3664_v15, 0.0 }
 0x4a5   :  { %782 = vadd.xlane.f32.xlu0 %v781_v16 }
 0x4a7   :  { %v2934_v17 = vpop.eup %2933 }
 0x4a8   :  { %v3668_v19 = vpop.eup %2935  ;;  %v482_v27 = vmul.f32 %v2934_v17, %v480_v14  ;;  %vm487_vm6 = vweird.f32 %v2934_v17 }
 0x4a9   :  { %v937_v21 = vsel %vm447_vm1, %v3668_v19, 0.0  ;;  %vm488_vm8 = vmor %vm486_vm7, %vm487_vm6 }
 0x4aa   :  { %v483_v20 = vsub.f32 1.0, %v482_v27 }
 0x4ac   :  { %v484_v23 = vmul.f32 %v2934_v17, %v483_v20 }
 0x4ad   :  { %938 = vadd.xlane.f32.xlu0 %v937_v21 }
 0x4ae   :  { %v485_v28 = vadd.f32 %v2934_v17, %v484_v23 }
 0x4b0   :  { %v489_v31 = vsel %vm488_vm8, %v2934_v17, %v485_v28  ;;  %v3696_v28 = vld [vmem:[#allocation10] sm:$0xff] }
 0x4b1   :  { %v494_v33 = vsel %vm491_vm9, %v493_v1, %v489_v31  ;;  %v3700_v31 = vld [vmem:[#allocation10 + $0x8] sm:$0xff] }
 0x4b2   :  { %v495_v38 = vmul.f32 %v2930_v55, %v494_v33  ;;  %v3712_v33 = vld [vmem:[#allocation10 + $0x40] sm:$0xff] }
 0x4b4   :  { %2762 = vmatpush.xpose.msk.msra.mxu2 %vm447_vm1, %v495_v38  ;;  %v3682_v9 = vpop.permute.xlu1 %317 }
 0x4b5   :  { %v410_v16 = vadd.f32 %v3659_v61, %v3682_v9 }
 0x4b7   :  { %2763 = vmatmul.msk.f32.vlgmr.msra.gmra.mxu2 %vm447_vm1, %v404_v39  ;;  %v3718_v39 = vld [vmem:[#allocation10 + $0x48] sm:$0xff] }
 0x4c1   :  { %322 = vperm.xlu0 %2916, %v264_v40   ;;  %v3724_v40 = vld [vmem:[#allocation10 + $0x60] sm:$0xff] }
 0x4c9   :  { %1052 = vperm.xlu0 %2916, %v1034_v45  }
 0x4d1   :  { %1042 = vperm.xlu0 %2916, %v1032_v46   ;;  %v3726_v46 = vld [vmem:[#allocation10 + $0x50] sm:$0xff] }
 0x4d9   :  { %1250 = vperm.xlu0 %2916, %v1212_v48  }
 0x4e1   :  { %1235 = vperm.xlu0 %2916, %v1209_v49  }
 0x4e9   :  { %1220 = vperm.xlu0 %2916, %v1206_v50  }
 0x50b   :  { %1512 = vxpose.xlu0.b32.start.end [1/1] (short) (narrow) %v1372_v60, 8 }
 0x518   :  { %v783_v52 = vpop.xlane.xlu0 %782 }
 0x519   :  { %2937 = vrcp.f32 %v783_v52  ;;  %v795_v57 = vand.u32 2147483648, %v783_v52  ;;  %v793_v59 = vand.u32 2147483647, %v783_v52  ;;  %vm789_vm11 = vweird.f32 %v783_v52 }
 0x51b   :  { %v796_v7 = vor.u32 1.1754944e-38, %v795_v57  ;;  %vm794_vm13 = vcmp.eq.f32.partialorder %v793_v59, 8.507059e+37 }
 0x51f   :  { %v2938_v53 = vpop.eup %2937 }
 0x520   :  { %v785_v54 = vmul.f32 %v2938_v53, %v783_v52  ;;  %v939_v55 = vpop.xlane.xlu0 %938  ;;  %vm790_vm10 = vweird.f32 %v2938_v53  ;;  %v3748_v52 = vld [vmem:[#allocation13] sm:$0xff] }
 0x521   :  { %2939 = vrcp.f32 %v939_v55  ;;  %vm791_vm12 = vmor %vm789_vm11, %vm790_vm10  ;;  %v951_v14 = vand.u32 2147483648, %v939_v55  ;;  %v949_v27 = vand.u32 2147483647, %v939_v55  ;;  %vm945_vm15 = vweird.f32 %v939_v55 }
 0x522   :  { %v786_v56 = vsub.f32 1.0, %v785_v54  ;;  %vm1485_vm10 = vcmask 31744  }
 0x523   :  { %v952_v21 = vor.u32 1.1754944e-38, %v951_v14  ;;  %vm950_vm3 = vcmp.eq.f32.partialorder %v949_v27, 8.507059e+37 }
 0x524   :  { %v787_v58 = vmul.f32 %v2938_v53, %v786_v56  ;;  %v3752_v56 = vld [vmem:[#allocation13 + $0x8] sm:$0xff] }
 0x526   :  { %v788_v0 = vadd.f32 %v2938_v53, %v787_v58 }
 0x527   :  { %v2940_v3 = vpop.eup %2939 }
 0x528   :  { %v792_v8 = vsel %vm791_vm12, %v2938_v53, %v788_v0  ;;  %v941_v30 = vmul.f32 %v2940_v3, %v939_v55  ;;  %vm946_vm14 = vweird.f32 %v2940_v3 }
 0x529   :  { %v797_v10 = vsel %vm794_vm13, %v796_v7, %v792_v8  ;;  %vm947_vm2 = vmor %vm945_vm15, %vm946_vm14 }
 0x52a   :  { %v942_v12 = vsub.f32 1.0, %v941_v30  ;;  %v798_v13 = vmul.f32 %v3664_v15, %v797_v10  ;;  %v3764_v30 = vpop.permute.xlu2 %1047 }
 0x52b   :  { %4278 = vst [vmem:[#allocation34_spill] sm:$0xff] %v3764_v30 }
 0x52c   :  { %v943_v17 = vmul.f32 %v2940_v3, %v942_v12  ;;  %2776 = vmatpush.xpose.msk.msrb.mxu1 %vm447_vm1, %v798_v13 }
 0x52e   :  { %v944_v20 = vadd.f32 %v2940_v3, %v943_v17 }
 0x52f   :  { %2777 = vmatmul.msk.f32.vlgmr.msrb.gmra.mxu1 %vm447_vm1, %v410_v16 }
 0x530   :  { %v948_v22 = vsel %vm947_vm2, %v2940_v3, %v944_v20  ;;  %v3758_v3 = vld [vmem:[#allocation13 + $0x10] sm:$0xff] }
 0x531   :  { %v953_v23 = vsel %vm950_vm3, %v952_v21, %v948_v22 }
 0x532   :  { %v954_v15 = vmul.f32 %v3668_v19, %v953_v23  ;;  %v3704_v19 = vld [vmem:[#allocation10 + $0x10] sm:$0xff] }
 0x533   :  { %v3690_v26 = vpop.permute.xlu0 %322 }
 0x534   :  { %v413_v61 = vadd.f32 %v3661_v63, %v3690_v26  ;;  %2783 = vmatpush.xpose.msk.msrb.mxu3 %vm447_vm1, %v954_v15  ;;  %v3708_v63 = vld [vmem:[#allocation10 + $0x18] sm:$0xff] }
 0x537   :  { %2784 = vmatmul.msk.f32.vlgmr.msrb.gmra.mxu3 %vm447_vm1, %v413_v61  ;;  %v3777_v61 = vpop.permute.xlu2 %1037 }
 0x538   :  { %4280 = vst [vmem:[#allocation36_spill] sm:$0xff] %v3777_v61 }
 0x53a   :  { %v519_v1 = vpop.f32.mrf.mxu2 }
 0x53b   :  { %705 = vmatpush.msrb.mxu2 %v519_v1  ;;  %v3756_v59 = vpop.permute.xlu0 %1052 }
 0x53c   :  { %2771 = vmatmul.msk.f32.vlgmr.msrb.gmra.mxu2 %vm447_vm1, %v3696_v28  ;;  %4277 = vst [vmem:[#allocation33_spill] sm:$0xff] %v3756_v59 }
 0x544   :  { %2772 = vmatmul.msk.f32.gmra.mxu2 %vm447_vm1, %v3700_v31 }
 0x54c   :  { %2773 = vmatmul.msk.f32.gmra.mxu2 %vm447_vm1, %v3704_v19 }
 0x554   :  { %2774 = vmatmul.msk.f32.gmra.mxu2 %vm447_vm1, %v3708_v63 }
 0x5ac   :  { %v822_v38 = vpop.f32.mrf.mxu1 }
 0x5ad   :  { %857 = vmatpush.msra.mxu1 %v822_v38  ;;  %v3780_v38 = vld [vmem:[#allocation14] sm:$0xff] }
 0x5ae   :  { %2778 = vmatmul.msk.f32.vlgmr.msra.gmra.mxu1 %vm447_vm1, %v3712_v33  ;;  %4281 = vst [vmem:[#allocation37_spill] sm:$0xff] %v3780_v38 }
 0x5af   :  { %1176 = vmatpush.msrb.mxu1 %v3500_v2  ;;  %v3732_v2 = vld [vmem:[#allocation10 + $0x68] sm:$0xff] }
 0x5b0   :  { %4274 = vst [vmem:[#allocation30_spill] sm:$0xff] %v3732_v2 }
 0x5b1   :  { %1177 = vmatpush.msrb.mxu1 %v3508_v4  ;;  %v3734_v4 = vld [vmem:[#allocation10 + $0x58] sm:$0xff] }
 0x5b3   :  { %1178 = vmatpush.msrb.mxu1 %v3514_v5  ;;  %v3740_v5 = vld [vmem:[#allocation10 + $0x70] sm:$0xff] }
 0x5b4   :  { %4275 = vst [vmem:[#allocation31_spill] sm:$0xff] %v3740_v5 }
 0x5b5   :  { %1179 = vmatpush.msrb.mxu1 %v3520_v6  ;;  %v3744_v6 = vld [vmem:[#allocation10 + $0x78] sm:$0xff] }
 0x5b6   :  { %2779 = vmatmul.msk.f32.gmra.mxu1 %vm447_vm1, %v3718_v39  ;;  %4276 = vst [vmem:[#allocation32_spill] sm:$0xff] %v3744_v6 }
 0x5ba   :  { %v978_v45 = vpop.f32.mrf.mxu3 }
 0x5bb   :  { %1013 = vmatpush.msra.mxu3 %v978_v45  ;;  %v3784_v45 = vld [vmem:[#allocation13 + $0x20] sm:$0xff] }
 0x5bc   :  { %2785 = vmatmul.msk.f32.vlgmr.msra.gmra.mxu3 %vm447_vm1, %v3724_v40 }
 0x5be   :  { %2780 = vmatmul.msk.f32.gmra.mxu1 %vm447_vm1, %v3726_v46 }
 0x5bf   :  { %v707_v48 = vpop.f32.mrf.mxu2 }
 0x5c0   :  { %v708_v16 = vadd.f32 %v707_v48, %v3645_v41  ;;  %v3788_v48 = vld [vmem:[#allocation14 + $0x8] sm:$0xff] }
 0x5c1   :  { %4282 = vst [vmem:[#allocation38_spill] sm:$0xff] %v3788_v48 }
 0x5c4   :  { %2786 = vmatmul.msk.f32.gmra.mxu3 %vm447_vm1, %v3732_v2 }
 0x5c6   :  { %2781 = vmatmul.msk.f32.gmra.mxu1 %vm447_vm1, %v3734_v4 }
 0x5c7   :  { %v710_v50 = vpop.f32.mrf.mxu2 }
 0x5c8   :  { %v711_v10 = vadd.f32 %v710_v50, %v3647_v43  ;;  %v3774_v43 = vpop.permute.xlu0 %1042  ;;  %v3796_v50 = vld [vmem:[#allocation14 + $0x10] sm:$0xff] }
 0x5c9   :  { %4279 = vst [vmem:[#allocation35_spill] sm:$0xff] %v3774_v43 }
 0x5ca   :  { %4283 = vst [vmem:[#allocation39_spill] sm:$0xff] %v3796_v50 }
 0x5cc   :  { %2787 = vmatmul.msk.f32.gmra.mxu3 %vm447_vm1, %v3740_v5 }
 0x5ce   :  { %2797 = vmatmul.msk.f32.vlgmr.msrb.gmra.mxu1 %vm325_vm0, %v3748_v52 }
 0x5cf   :  { %v713_v53 = vpop.f32.mrf.mxu2 }
 0x5d0   :  { %v714_v7 = vadd.f32 %v713_v53, %v3649_v44  ;;  %v3808_v53 = vld [vmem:[#allocation13 + $0x38] sm:$0xff] }
 0x5d4   :  { %2788 = vmatmul.msk.f32.gmra.mxu3 %vm447_vm1, %v3744_v6 }
 0x5d6   :  { %2798 = vmatmul.msk.f32.gmra.mxu1 %vm325_vm0, %v3752_v56 }
 0x5d7   :  { %v716_v58 = vpop.f32.mrf.mxu2 }
 0x5d8   :  { %v717_v8 = vadd.f32 %v716_v58, %v3651_v47  ;;  %v3769_v47 = vld [vmem:[#allocation13 + $0x18] sm:$0xff] }
 0x5d9   :  { %v3824_v58 = vld [vmem:[#allocation14 + $0x38] sm:$0xff] }
 0x5da   :  { %4288 = vst [vmem:[#allocation44_spill] sm:$0xff] %v3824_v58 }
 0x5de   :  { %2799 = vmatmul.msk.f32.gmra.mxu1 %vm325_vm0, %v3758_v3 }
 0x5e6   :  { %2800 = vmatmul.msk.f32.gmra.mxu1 %vm325_vm0, %v3769_v47 }
 0x5ee   :  { %2801 = vmatmul.msk.f32.gmra.mxu1 %vm325_vm0, %v3784_v45 }
 0x62b   :  { %v859_v49 = vpop.f32.mrf.mxu1 }
 0x62c   :  { %v871_v21 = vadd.f32 %v859_v49, %v708_v16  ;;  %v3792_v49 = vld [vmem:[#allocation13 + $0x28] sm:$0xff] }
 0x62d   :  { %2802 = vmatmul.msk.f32.gmra.mxu1 %vm325_vm0, %v3792_v49 }
 0x633   :  { %v862_v51 = vpop.f32.mrf.mxu1 }
 0x634   :  { %v872_v17 = vadd.f32 %v862_v51, %v711_v10  ;;  %v3800_v51 = vld [vmem:[#allocation13 + $0x30] sm:$0xff] }
 0x635   :  { %2803 = vmatmul.msk.f32.gmra.mxu1 %vm325_vm0, %v3800_v51 }
 0x63b   :  { %v865_v55 = vpop.f32.mrf.mxu1 }
 0x63c   :  { %v873_v12 = vadd.f32 %v865_v55, %v714_v7  ;;  %v3816_v55 = vld [vmem:[#allocation14 + $0x28] sm:$0xff] }
 0x63d   :  { %2804 = vmatmul.msk.f32.gmra.mxu1 %vm325_vm0, %v3808_v53  ;;  %4286 = vst [vmem:[#allocation42_spill] sm:$0xff] %v3816_v55 }
 0x63f   :  { %v1015_v60 = vpop.f32.mrf.mxu3 }
 0x640   :  { %v1027_v23 = vadd.f32 %v1015_v60, %v871_v21  ;;  %v3804_v60 = vld [vmem:[#allocation14 + $0x18] sm:$0xff] }
 0x641   :  { %4284 = vst [vmem:[#allocation40_spill] sm:$0xff] %v3804_v60 }
 0x642   :  { %v1055_v1 = vadd.f32 %v3777_v61, %v1027_v23  ;;  %v3830_v23 = vpop.permute.xlu0 %1250 }
 0x643   :  { %v868_v0 = vpop.f32.mrf.mxu1 }
 0x644   :  { %v874_v13 = vadd.f32 %v868_v0, %v717_v8 }
 0x647   :  { %v1018_v54 = vpop.f32.mrf.mxu3 }
 0x648   :  { %v1028_v22 = vadd.f32 %v1018_v54, %v872_v17  ;;  %v3812_v54 = vld [vmem:[#allocation14 + $0x20] sm:$0xff] }
 0x649   :  { %4285 = vst [vmem:[#allocation41_spill] sm:$0xff] %v3812_v54 }
 0x64a   :  { %v1056_v41 = vadd.f32 %v3774_v43, %v1028_v22 }
 0x64b   :  { %v1181_v0 = vpop.f32.mrf.mxu1 }
 0x64f   :  { %v1021_v57 = vpop.f32.mrf.mxu3 }
 0x650   :  { %v1029_v27 = vadd.f32 %v1021_v57, %v873_v12  ;;  %v3820_v57 = vld [vmem:[#allocation14 + $0x30] sm:$0xff] }
 0x651   :  { %4287 = vst [vmem:[#allocation43_spill] sm:$0xff] %v3820_v57 }
 0x652   :  { %v1057_v15 = vadd.f32 %v3764_v30, %v1029_v27 }
 0x653   :  { %v1184_v7 = vpop.f32.mrf.mxu1 }
 0x657   :  { %v1024_v14 = vpop.f32.mrf.mxu3 }
 0x658   :  { %v1030_v20 = vadd.f32 %v1024_v14, %v874_v13 }
 0x65a   :  { %v1058_v44 = vadd.f32 %v3756_v59, %v1030_v20 }
 0x65b   :  { %v1187_v10 = vpop.f32.mrf.mxu1 }
 0x65c   :  { %1111 = vmatpush.msra.mxu2 %v1058_v44  ;;  %v3828_v44 = vpop.f32.mrf.mxu0 }
 0x65e   :  { %1112 = vmatpush.msra.mxu2 %v1057_v15 }
 0x660   :  { %1113 = vmatpush.msra.mxu2 %v1056_v41  ;;  %v3832_v41 = vpop.permute.xlu2 %1245 }
 0x662   :  { %1114 = vmatpush.msra.mxu2 %v1055_v1 }
 0x663   :  { %2789 = vmatmul.msk.f32.vlgmr.msra.gmra.mxu2 %vm325_vm0, %v3780_v38  ;;  %v1190_v13 = vpop.f32.mrf.mxu1 }
 0x668   :  { %v3842_v30 = vpop.permute.xlu2 %1230 }
 0x66b   :  { %2790 = vmatmul.msk.f32.gmra.mxu2 %vm325_vm0, %v3788_v48  ;;  %v1193_v17 = vpop.f32.mrf.mxu1  ;;  %v3838_v48 = vpop.permute.xlu0 %1235 }
 0x673   :  { %2791 = vmatmul.msk.f32.gmra.mxu2 %vm325_vm0, %v3796_v50 }
 0x67b   :  { %2792 = vmatmul.msk.f32.gmra.mxu2 %vm325_vm0, %v3804_v60 }
 0x683   :  { %2793 = vmatmul.msk.f32.gmra.mxu2 %vm325_vm0, %v3812_v54 }
 0x68b   :  { %2794 = vmatmul.msk.f32.gmra.mxu2 %vm325_vm0, %v3816_v55  ;;  %v3836_v55 = vpop.permute.xlu1 %1240 }
 0x693   :  { %2795 = vmatmul.msk.f32.gmra.mxu2 %vm325_vm0, %v3820_v57 }
 0x69b   :  { %2796 = vmatmul.msk.f32.gmra.mxu2 %vm325_vm0, %v3824_v58  ;;  %v3834_v58 = vpop.f32.mrf.mxu0 }
 0x6aa   :  { %v1196_v20 = vpop.f32.mrf.mxu1 }
 0x6b2   :  { %v1199_v22 = vpop.f32.mrf.mxu1 }
 0x6ba   :  { %v1202_v1 = vpop.f32.mrf.mxu1 }
 0x6e6   :  { %v1116_v8 = vpop.f32.mrf.mxu2 }
 0x6ee   :  { %v1119_v12 = vpop.f32.mrf.mxu2 }
 0x6f6   :  { %v1122_v14 = vpop.f32.mrf.mxu2 }
 0x6f7   :  { %v1188_v2 = vadd.f32 %v1187_v10, %v1122_v14  ;;  %v3866_v14 = vld [vmem:[#allocation17 + $0x10] sm:$0xff] }
 0x6f8   :  { %4289 = vst [vmem:[#allocation45_spill] sm:$0xff] %v3866_v14 }
 0x6fe   :  { %v1125_v16 = vpop.f32.mrf.mxu2 }
 0x6ff   :  { %v1191_v59 = vadd.f32 %v1190_v13, %v1125_v16  ;;  %v3870_v16 = vld [vmem:[#allocation17 + $0x18] sm:$0xff] }
 0x700   :  { %4290 = vst [vmem:[#allocation46_spill] sm:$0xff] %v3870_v16 }
 0x706   :  { %v1128_v27 = vpop.f32.mrf.mxu2 }
 0x707   :  { %v1194_v38 = vadd.f32 %v1193_v17, %v1128_v27 }
 0x70e   :  { %v1131_v21 = vpop.f32.mrf.mxu2 }
 0x70f   :  { %v1197_v60 = vadd.f32 %v1196_v20, %v1131_v21  ;;  %v1380_v20 = vpop.f32.mrf.mxu0  ;;  %v1256_v21 = vadd.f32 %v3842_v30, %v1191_v59 }
 0x711   :  { %v1258_v6 = vadd.f32 %v3836_v55, %v1197_v60  ;;  %v3850_v60 = vpop.permute.xlu0 %1220 }
 0x713   :  { %v1266_v17 = vmax.f32 %v1258_v6, 0.0 }
 0x716   :  { %v1134_v15 = vpop.f32.mrf.mxu2 }
 0x717   :  { %v1200_v57 = vadd.f32 %v1199_v22, %v1134_v15  ;;  %v1257_v22 = vadd.f32 %v3838_v48, %v1194_v38  ;;  %v1264_v38 = vmax.f32 %v1256_v21, 0.0 }
 0x719   :  { %v1259_v61 = vadd.f32 %v3832_v41, %v1200_v57  ;;  %v3847_v57 = vpop.permute.xlu1 %1225  ;;  %v1265_v13 = vmax.f32 %v1257_v22, 0.0 }
 0x71a   :  { %v1255_v27 = vadd.f32 %v3847_v57, %v1188_v2  ;;  %v3856_v2 = vld [vmem:[#allocation17] sm:$0xff] }
 0x71b   :  { %v1267_v15 = vmax.f32 %v1259_v61, 0.0 }
 0x71c   :  { %v1263_v59 = vmax.f32 %v1255_v27, 0.0 }
 0x71e   :  { %v1137_v54 = vpop.f32.mrf.mxu2 }
 0x71f   :  { %v1203_v50 = vadd.f32 %v1202_v1, %v1137_v54  ;;  %v1185_v54 = vadd.f32 %v1184_v7, %v1119_v12  ;;  %v1383_v7 = vpop.f32.mrf.mxu0  ;;  %v3862_v12 = vld [vmem:[#allocation17 + $0x8] sm:$0xff] }
 0x720   :  { %v1384_v10 = vadd.f32 %v1383_v7, %v3575_v34 }
 0x721   :  { %v1260_v43 = vadd.f32 %v3830_v23, %v1203_v50  ;;  %v1182_v50 = vadd.f32 %v1181_v0, %v1116_v8  ;;  %v1381_v8 = vadd.f32 %v1380_v20, %v3578_v36  ;;  %v1420_v34 = vpop.trf.xlu1  ;;  %v1528_v36 = vpop.trf.xlu0 }
 0x723   :  { %v1268_v5 = vmax.f32 %v1260_v43, 0.0  ;;  %v1254_v43 = vadd.f32 %v3850_v60, %v1185_v54 }
 0x725   :  { %1294 = vmatpush.msrb.mxu3 %v1268_v5  ;;  %v3853_v5 = vpop.permute.xlu2 %1215  ;;  %v1262_v6 = vmax.f32 %v1254_v43, 0.0 }
 0x726   :  { %v1253_v61 = vadd.f32 %v3853_v5, %v1182_v50 }
 0x727   :  { %1295 = vmatpush.msrb.mxu3 %v1267_v15 }
 0x728   :  { %v1261_v0 = vmax.f32 %v1253_v61, 0.0 }
 0x729   :  { %1296 = vmatpush.msrb.mxu3 %v1266_v17 }
 0x72b   :  { %1297 = vmatpush.msrb.mxu3 %v1265_v13 }
 0x72d   :  { %1298 = vmatpush.msrb.mxu3 %v1264_v38 }
 0x72f   :  { %1299 = vmatpush.msrb.mxu3 %v1263_v59 }
 0x731   :  { %1300 = vmatpush.msrb.mxu3 %v1262_v6 }
 0x733   :  { %1301 = vmatpush.msrb.mxu3 %v1261_v0 }
 0x734   :  { %2805 = vmatmul.msk.f32.vlgmr.msrb.gmra.mxu3 %vm1273_vm4, %v3856_v2 }
 0x735   :  { %1454 = vmatpush.msra.mxu3 %v1381_v8 }
 0x737   :  { %1562 = vmatpush.msrb.mxu3 %v1384_v10 }
 0x73c   :  { %2806 = vmatmul.msk.f32.gmra.mxu3 %vm1273_vm4, %v3862_v12 }
 0x744   :  { %2807 = vmatmul.msk.f32.gmra.mxu3 %vm1273_vm4, %v3866_v14 }
 0x74c   :  { %2808 = vmatmul.msk.f32.gmra.mxu3 %vm1273_vm4, %v3870_v16 }
 0x754   :  { %2821 = vmatmul.msk.f32.vlgmr.msra.gmra.mxu3 %vm447_vm1, %v1420_v34 }
 0x75c   :  { %2824 = vmatmul.msk.f32.vlgmr.msrb.gmra.mxu3 %vm447_vm1, %v1528_v36  ;;  %v1375_v36 = vadd.f32 %v3828_v44, %v3609_v11 }
 0x7b7   :  { %v3876_v1 = vpop.f32.mrf.mxu3 }
 0x7bf   :  { %v3878_v22 = vpop.f32.mrf.mxu3 }
 0x7c7   :  { %v3880_v15 = vpop.f32.mrf.mxu3 }
 0x7cf   :  { %v3882_v20 = vpop.f32.mrf.mxu3 }
 0x7d7   :  { %v1456_v54 = vpop.f32.mrf.mxu3 }
 0x7d8   :  { %v1459_v21 = vmul.f32 0.35355338, %v1456_v54  ;;  %v1378_v54 = vadd.f32 %v3834_v58, %v3606_v62 }
 0x7da   :  { %v1461_v17 = vsel %vm1460_vm5, %v1459_v21, -inf }
 0x7db   :  { %1462 = vmax.xlane.f32.xlu2 %v1461_v17 }
 0x7df   :  { %v1564_v50 = vpop.f32.mrf.mxu3 }
 0x7e0   :  { %v1567_v27 = vmul.f32 0.35355338, %v1564_v50 }
 0x7e2   :  { %v1568_v13 = vsel %vm1460_vm5, %v1567_v27, -inf }
 0x7e3   :  { %1569 = vmax.xlane.f32.xlu0 %v1568_v13 }
 0x84e   :  { %v1463_v43 = vpop.xlane.xlu2 %1462 }
 0x84f   :  { %v1464_v38 = vsub.f32 %v1459_v21, %v1463_v43  ;;  %v1386_v21 = vpop.f32.mrf.mxu0 }
 0x851   :  { %v1465_v61 = vmul.f32 1.442695, %v1464_v38 }
 0x853   :  { %2941 = vpow2.f32 %v1465_v61 }
 0x856   :  { %v1570_v59 = vpop.xlane.xlu0 %1569 }
 0x857   :  { %v1571_v6 = vsub.f32 %v1567_v27, %v1570_v59  ;;  %v1389_v50 = vpop.f32.mrf.mxu0 }
 0x859   :  { %v2942_v7 = vpop.eup %2941  ;;  %v1572_v0 = vmul.f32 1.442695, %v1571_v6 }
 0x85a   :  { %v1467_v8 = vsel %vm1460_vm5, %v2942_v7, 0.0 }
 0x85b   :  { %2943 = vpow2.f32 %v1572_v0  ;;  %1468 = vadd.xlane.f32.xlu2 %v1467_v8 }
 0x85f   :  { %v1392_v62 = vpop.f32.mrf.mxu0 }
 0x861   :  { %v2944_v10 = vpop.eup %2943 }
 0x862   :  { %v1574_v34 = vsel %vm1460_vm5, %v2944_v10, 0.0 }
 0x863   :  { %1575 = vadd.xlane.f32.xlu1 %v1574_v34 }
 0x884   :  { %1676 = vxpose.xlu2.b32.start.end [1/1] (short) (narrow) %v1375_v36, 8 }
 0x88c   :  { %1815 = vxpose.xlu2.b32.start.end [1/1] (short) (narrow) %v1378_v54, 8 }
 0x8ce   :  { %v1469_v17 = vpop.xlane.xlu2 %1468 }
 0x8cf   :  { %2945 = vrcp.f32 %v1469_v17  ;;  %v1481_v61 = vand.u32 2147483648, %v1469_v17  ;;  %v1479_v6 = vand.u32 2147483647, %v1469_v17  ;;  %vm1475_vm7 = vweird.f32 %v1469_v17 }
 0x8d1   :  { %v1482_v44 = vor.u32 1.1754944e-38, %v1481_v61  ;;  %vm1480_vm9 = vcmp.eq.f32.partialorder %v1479_v6, 8.507059e+37  ;;  %v1395_v6 = vpop.f32.mrf.mxu0 }
 0x8d5   :  { %v2946_v27 = vpop.eup %2945 }
 0x8d6   :  { %v1471_v13 = vmul.f32 %v2946_v27, %v1469_v17  ;;  %v1576_v43 = vpop.xlane.xlu1 %1575  ;;  %vm1476_vm6 = vweird.f32 %v2946_v27 }
 0x8d7   :  { %2947 = vrcp.f32 %v1576_v43  ;;  %vm1477_vm8 = vmor %vm1475_vm7, %vm1476_vm6  ;;  %v1588_v16 = vand.u32 2147483648, %v1576_v43  ;;  %vm1582_vm12 = vweird.f32 %v1576_v43 }
 0x8d8   :  { %v1472_v38 = vsub.f32 1.0, %v1471_v13  ;;  %v1586_v13 = vand.u32 2147483647, %v1576_v43 }
 0x8d9   :  { %v1589_v61 = vor.u32 1.1754944e-38, %v1588_v16 }
 0x8da   :  { %v1473_v59 = vmul.f32 %v2946_v27, %v1472_v38  ;;  %v1393_v38 = vadd.f32 %v1392_v62, %v3672_v37  ;;  %vm1587_vm14 = vcmp.eq.f32.partialorder %v1586_v13, 8.507059e+37 }
 0x8dc   :  { %v1474_v0 = vadd.f32 %v2946_v27, %v1473_v59 }
 0x8dd   :  { %v2948_v11 = vpop.eup %2947 }
 0x8de   :  { %v1478_v58 = vsel %vm1477_vm8, %v2946_v27, %v1474_v0  ;;  %v1578_v8 = vmul.f32 %v2948_v11, %v1576_v43  ;;  %vm1583_vm11 = vweird.f32 %v2948_v11 }
 0x8df   :  { %v1483_v34 = vsel %vm1480_vm9, %v1482_v44, %v1478_v58  ;;  %vm1584_vm13 = vmor %vm1582_vm12, %vm1583_vm11  ;;  %v1396_v44 = vadd.f32 %v1395_v6, %v3589_v42  ;;  %v2327_v6 = vld [vmem:[#allocation20 + $0x18] sm:$0xff] }
 0x8e0   :  { %v1579_v36 = vsub.f32 1.0, %v1578_v8  ;;  %v1484_v54 = vmul.f32 %v2942_v7, %v1483_v34  ;;  %v1387_v7 = vadd.f32 %v1386_v21, %v3616_v18 }
 0x8e2   :  { %v1580_v14 = vmul.f32 %v2948_v11, %v1579_v36  ;;  %2822 = vmatpush.xpose.msk.msrb.mxu2 %vm1485_vm10, %v1484_v54 }
 0x8e4   :  { %v1581_v17 = vadd.f32 %v2948_v11, %v1580_v14 }
 0x8e5   :  { %2823 = vmatmul.msk.f32.vlgmr.msrb.gmra.mxu2 %vm1485_vm10, %v1393_v38  ;;  %v3929_v38 = vld [vmem:[#allocation19 + $0x18] sm:$0xff] }
 0x8e6   :  { %v1585_v27 = vsel %vm1584_vm13, %v2948_v11, %v1581_v17  ;;  %v1322_v17 = vld [vmem:[%s4227_s14 + $0x18] sm:$0xff] }
 0x8e7   :  { %v1590_v59 = vsel %vm1587_vm14, %v1589_v61, %v1585_v27  ;;  %v1320_v61 = vld [vmem:[%s4227_s14 + $0x8] sm:$0xff]  ;;  %v1319_v27 = vld [vmem:[%s4227_s14] sm:$0xff] }
 0x8e8   :  { %v1591_v0 = vmul.f32 %v2944_v10, %v1590_v59  ;;  %v1390_v10 = vadd.f32 %v1389_v50, %v3624_v24  ;;  %v3942_v59 = vld [vmem:[#allocation19 + $0x8] sm:$0xff] }
 0x8ea   :  { %2825 = vmatpush.xpose.msk.msra.mxu2 %vm1485_vm10, %v1591_v0  ;;  %v2325_v0 = vld [vmem:[#allocation20 + $0x8] sm:$0xff] }
 0x8ed   :  { %2826 = vmatmul.msk.f32.vlgmr.msra.gmra.mxu2 %vm1485_vm10, %v1396_v44 }
 0x8ee   :  { %1726 = vmatpush.msrb.mxu2 %v1387_v7  ;;  %v2357_v7 = vld [vmem:[#allocation3] sm:$0x1] }
 0x91d   :  { %v1692_v37 = vpop.trf.xlu2 }
 0x91e   :  { %2835 = vmatmul.msk.f32.vlgmr.msrb.gmra.mxu2 %vm447_vm1, %v1692_v37 }
 0x925   :  { %v1831_v42 = vpop.trf.xlu2 }
 0x968   :  { %v1509_v14 = vpop.f32.mrf.mxu2 }
 0x969   :  { %1662 = vmatpush.msra.mxu3 %v1509_v14 }
 0x96a   :  { %2831 = vmatmul.msk.f32.vlgmr.msra.gmra.mxu3 %vm447_vm1, %v3696_v28 }
 0x970   :  { %v1615_v16 = vpop.f32.mrf.mxu2 }
 0x971   :  { %1633 = vmatpush.msra.mxu1 %v1615_v16 }
 0x972   :  { %2827 = vmatmul.msk.f32.vlgmr.msra.gmra.mxu1 %vm447_vm1, %v3626_v25  ;;  %2832 = vmatmul.msk.f32.gmra.mxu3 %vm447_vm1, %v3700_v31 }
 0x973   :  { %1865 = vmatpush.msrb.mxu1 %v1390_v10 }
 0x97a   :  { %2828 = vmatmul.msk.f32.gmra.mxu1 %vm447_vm1, %v3631_v29  ;;  %2833 = vmatmul.msk.f32.gmra.mxu3 %vm447_vm1, %v3704_v19 }
 0x982   :  { %2829 = vmatmul.msk.f32.gmra.mxu1 %vm447_vm1, %v3635_v32  ;;  %2834 = vmatmul.msk.f32.gmra.mxu3 %vm447_vm1, %v3708_v63 }
 0x98a   :  { %2830 = vmatmul.msk.f32.gmra.mxu1 %vm447_vm1, %v3639_v35 }
 0x992   :  { %2842 = vmatmul.msk.f32.vlgmr.msrb.gmra.mxu1 %vm447_vm1, %v1831_v42 }
 0x9a1   :  { %v1728_v18 = vpop.f32.mrf.mxu2 }
 0x9a2   :  { %v1731_v24 = vmul.f32 0.35355338, %v1728_v18 }
 0x9a4   :  { %v1732_v25 = vsel %vm1460_vm5, %v1731_v24, -inf }
 0x9a5   :  { %1733 = vmax.xlane.f32.xlu2 %v1732_v25 }
 0x9bd   :  { %2193 = vrot.lane.b32.xlu2 %v3929_v38, %s3300_s2 }
 0x9ed   :  { %v1664_v29 = vpop.f32.mrf.mxu3 }
 0x9ef   :  { %v1635_v28 = vpop.f32.mrf.mxu1 }
 0x9f0   :  { %v3919_v31 = vadd.f32 %v1664_v29, %v1635_v28 }
 0x9f5   :  { %v1667_v19 = vpop.f32.mrf.mxu3 }
 0x9f7   :  { %v1638_v32 = vpop.f32.mrf.mxu1 }
 0x9f8   :  { %v3921_v21 = vadd.f32 %v1667_v19, %v1638_v32 }
 0x9fd   :  { %v1670_v63 = vpop.f32.mrf.mxu3 }
 0x9ff   :  { %v1641_v50 = vpop.f32.mrf.mxu1 }
 0xa00   :  { %v3923_v43 = vadd.f32 %v1670_v63, %v1641_v50 }
 0xa07   :  { %v3925_v35 = vpop.f32.mrf.mxu1 }
 0xa0f   :  { %v1867_v11 = vpop.f32.mrf.mxu1 }
 0xa10   :  { %v1870_v62 = vmul.f32 0.35355338, %v1867_v11 }
 0xa12   :  { %v1871_v58 = vsel %vm1460_vm5, %v1870_v62, -inf }
 0xa13   :  { %1872 = vmax.xlane.f32.xlu1 %v1871_v58 }
 0xa18   :  { %v1734_v8 = vpop.xlane.xlu2 %1733 }
 0xa19   :  { %v1735_v34 = vsub.f32 %v1731_v24, %v1734_v8  ;;  %v1398_v8 = vpop.f32.mrf.mxu0 }
 0xa1b   :  { %v1736_v36 = vmul.f32 1.442695, %v1735_v34  ;;  %v1399_v34 = vadd.f32 %v1398_v8, %v3682_v9  ;;  %v2324_v9 = vld [vmem:[#allocation20] sm:$0xff] }
 0xa1d   :  { %2949 = vpow2.f32 %v1736_v36  ;;  %v3957_v36 = vld [vmem:[#allocation19] sm:$0xff] }
 0xa23   :  { %v2950_v54 = vpop.eup %2949 }
 0xa24   :  { %v1738_v13 = vsel %vm1460_vm5, %v2950_v54, 0.0 }
 0xa25   :  { %1739 = vadd.xlane.f32.xlu0 %v1738_v13  ;;  %v3961_v13 = vld [vmem:[#allocation19 + $0x10] sm:$0xff] }
 0xa39   :  { %1340 = vperm.xlu0 %2916, %v1322_v17  }
 0xa41   :  { %1330 = vperm.xlu0 %2916, %v1320_v61  }
 0xa49   :  { %1325 = vperm.xlu0 %2916, %v1319_v27  }
 0xa51   :  { %2140 = vrot.lane.b32.xlu0 %v3942_v59, %s3301_s0 }
 0xa59   :  { %2144 = vrot.lane.b32.xlu0 %v3929_v38, %s3301_s0 }
 0xa61   :  { %2189 = vrot.lane.b32.xlu0 %v3942_v59, %s3300_s2 }
 0xa69   :  { %2345 = vperm.xlu0 %2916, %v2327_v6  }
 0xa71   :  { %2335 = vperm.xlu0 %2916, %v2325_v0  }
 0xa79   :  { %2360 = vperm.xlu0 %2916, %v2357_v7  }
 0xa86   :  { %v1873_v44 = vpop.xlane.xlu1 %1872 }
 0xa87   :  { %v1874_v37 = vsub.f32 %v1870_v62, %v1873_v44  ;;  %v1321_v62 = vld [vmem:[%s4227_s14 + $0x10] sm:$0xff]  ;;  %s4308_s14 = sld [smem:[#allocation51_spill]] }
 0xa89   :  { %v1875_v14 = vmul.f32 1.442695, %v1874_v37 }
 0xa8b   :  { %2951 = vpow2.f32 %v1875_v14 }
 0xa91   :  { %v2952_v16 = vpop.eup %2951 }
 0xa92   :  { %v1877_v10 = vsel %vm1460_vm5, %v2952_v16, 0.0 }
 0xa93   :  { %1878 = vadd.xlane.f32.xlu1 %v1877_v10 }
 0xa98   :  { %v1740_v42 = vpop.xlane.xlu0 %1739 }
 0xa99   :  { %2953 = vrcp.f32 %v1740_v42  ;;  %v1752_v29 = vand.u32 2147483648, %v1740_v42  ;;  %v1750_v19 = vand.u32 2147483647, %v1740_v42  ;;  %vm1746_vm2 = vweird.f32 %v1740_v42 }
 0xa9b   :  { %v1753_v63 = vor.u32 1.1754944e-38, %v1752_v29  ;;  %vm1751_vm6 = vcmp.eq.f32.partialorder %v1750_v19, 8.507059e+37 }
 0xa9f   :  { %v2954_v18 = vpop.eup %2953 }
 0xaa0   :  { %v1742_v24 = vmul.f32 %v2954_v18, %v1740_v42  ;;  %vm1747_vm15 = vweird.f32 %v2954_v18 }
 0xaa1   :  { %vm1748_vm3 = vmor %vm1746_vm2, %vm1747_vm15 }
 0xaa2   :  { %v1743_v25 = vsub.f32 1.0, %v1742_v24 }
 0xaa4   :  { %v1744_v28 = vmul.f32 %v2954_v18, %v1743_v25 }
 0xaa6   :  { %v1745_v32 = vadd.f32 %v2954_v18, %v1744_v28  ;;  %v3977_v28 = vld [vmem:[%s4273_s15 + $0x18] sm:$0xff] }
 0xaa8   :  { %v1749_v50 = vsel %vm1748_vm3, %v2954_v18, %v1745_v32  ;;  %v1401_v18 = vpop.f32.mrf.mxu0 }
 0xaa9   :  { %v1754_v11 = vsel %vm1751_vm6, %v1753_v63, %v1749_v50  ;;  %v1402_v25 = vadd.f32 %v1401_v18, %v3690_v26  ;;  %v3989_v26 = vld [vmem:[%s4273_s15 + $0x8] sm:$0xff] }
 0xaaa   :  { %v1755_v58 = vmul.f32 %v2950_v54, %v1754_v11  ;;  %v2326_v54 = vld [vmem:[#allocation20 + $0x10] sm:$0xff] }
 0xaac   :  { %2836 = vmatpush.xpose.msk.msra.mxu2 %vm1485_vm10, %v1755_v58  ;;  %1335 = vperm.xlu1 %2918, %v1321_v62  }
 0xaaf   :  { %2837 = vmatmul.msk.f32.vlgmr.msra.gmra.mxu2 %vm1485_vm10, %v1399_v34 }
 0xab4   :  { %2138 = vrot.lane.b32.xlu1 %v3957_v36, %s3301_s0 }
 0xabc   :  { %2142 = vrot.lane.b32.xlu1 %v3961_v13, %s3301_s0 }
 0xac4   :  { %2187 = vrot.lane.b32.xlu1 %v3957_v36, %s3300_s2 }
 0xacc   :  { %2191 = vrot.lane.b32.xlu1 %v3961_v13, %s3300_s2  ;;  %s2734_s2 = sshll.u32 %s4237_s24, 4  ;;  %s2735_s2 = int_to_ptr.hbm [resolvable:$true] %s2734_s2 }
 0xad4   :  { %2340 = vperm.xlu1 %2918, %v2326_v54   ;;  %v4294_v54 = vld [vmem:[#allocation33_spill] sm:$0xff] }
 0xadc   :  { %2330 = vperm.xlu1 %2918, %v2324_v9  }
 0xb06   :  { %v1879_v17 = vpop.xlane.xlu1 %1878 }
 0xb07   :  { %2955 = vrcp.f32 %v1879_v17  ;;  %v1891_v0 = vand.u32 2147483648, %v1879_v17  ;;  %v1889_v44 = vand.u32 2147483647, %v1879_v17  ;;  %vm1885_vm7 = vweird.f32 %v1879_v17 }
 0xb09   :  { %v1892_v14 = vor.u32 1.1754944e-38, %v1891_v0  ;;  %vm1890_vm9 = vcmp.eq.f32.partialorder %v1889_v44, 8.507059e+37  ;;  %v4301_v44 = vld [vmem:[#allocation40_spill] sm:$0xff] }
 0xb0d   :  { %v2956_v61 = vpop.eup %2955 }
 0xb0e   :  { %v1881_v27 = vmul.f32 %v2956_v61, %v1879_v17  ;;  %vm1886_vm5 = vweird.f32 %v2956_v61 }
 0xb0f   :  { %vm1887_vm8 = vmor %vm1885_vm7, %vm1886_vm5 }
 0xb10   :  { %v1882_v6 = vsub.f32 1.0, %v1881_v27 }
 0xb12   :  { %v1883_v7 = vmul.f32 %v2956_v61, %v1882_v6  ;;  %v4296_v6 = vld [vmem:[#allocation35_spill] sm:$0xff] }
 0xb14   :  { %v1884_v37 = vadd.f32 %v2956_v61, %v1883_v7  ;;  %v4298_v7 = vld [vmem:[#allocation37_spill] sm:$0xff] }
 0xb16   :  { %v1888_v10 = vsel %vm1887_vm8, %v2956_v61, %v1884_v37  ;;  %v4295_v61 = vld [vmem:[#allocation34_spill] sm:$0xff]  ;;  %v4302_v37 = vld [vmem:[#allocation41_spill] sm:$0xff] }
 0xb17   :  { %v1893_v42 = vsel %vm1890_vm9, %v1892_v14, %v1888_v10  ;;  %v4303_v14 = vld [vmem:[#allocation42_spill] sm:$0xff]  ;;  %v4304_v10 = vld [vmem:[#allocation43_spill] sm:$0xff] }
 0xb18   :  { %v1894_v24 = vmul.f32 %v2952_v16, %v1893_v42  ;;  %v3983_v16 = vld [vmem:[%s4273_s15 + $0x10] sm:$0xff]  ;;  %v4305_v42 = vld [vmem:[#allocation44_spill] sm:$0xff] }
 0xb1a   :  { %2843 = vmatpush.xpose.msk.msrb.mxu3 %vm1485_vm10, %v1894_v24 }
 0xb1d   :  { %2844 = vmatmul.msk.f32.vlgmr.msrb.gmra.mxu3 %vm1485_vm10, %v1402_v25 }
 0xb32   :  { %v1779_v29 = vpop.f32.mrf.mxu2 }
 0xb33   :  { %1797 = vmatpush.msrb.mxu2 %v1779_v29 }
 0xb34   :  { %2838 = vmatmul.msk.f32.vlgmr.msrb.gmra.mxu2 %vm447_vm1, %v3712_v33  ;;  %v3995_v33 = vld [vmem:[%s4273_s15] sm:$0xff]  ;;  %s4310_s15 = sld [smem:[#allocation50_spill]] }
 0xb35   :  { %2011 = vmatpush.msra.mxu2 %v3977_v28 }
 0xb37   :  { %2012 = vmatpush.msra.mxu2 %v3983_v16 }
 0xb39   :  { %2013 = vmatpush.msra.mxu2 %v3989_v26 }
 0xb3b   :  { %2014 = vmatpush.msra.mxu2 %v3995_v33 }
 0xb3c   :  { %2839 = vmatmul.msk.f32.gmra.mxu2 %vm447_vm1, %v3718_v39  ;;  %v1673_v39 = vpop.f32.mrf.mxu3 }
 0xb3d   :  { %v1674_v32 = vadd.f32 %v1673_v39, %v3925_v35  ;;  %v4297_v35 = vld [vmem:[#allocation36_spill] sm:$0xff] }
 0xb44   :  { %2840 = vmatmul.msk.f32.gmra.mxu2 %vm447_vm1, %v3726_v46 }
 0xb4c   :  { %2841 = vmatmul.msk.f32.gmra.mxu2 %vm447_vm1, %v3734_v4  ;;  %v4291_v4 = vld [vmem:[#allocation30_spill] sm:$0xff] }
 0xb54   :  { %2857 = vmatmul.msk.f32.vlgmr.msra.gmra.mxu2 %vm325_vm0, %v3748_v52  ;;  %v4292_v52 = vld [vmem:[#allocation31_spill] sm:$0xff] }
 0xb5c   :  { %2858 = vmatmul.msk.f32.gmra.mxu2 %vm325_vm0, %v3752_v56  ;;  %v4293_v56 = vld [vmem:[#allocation32_spill] sm:$0xff] }
 0xb64   :  { %2859 = vmatmul.msk.f32.gmra.mxu2 %vm325_vm0, %v3758_v3 }
 0xb6c   :  { %2860 = vmatmul.msk.f32.gmra.mxu2 %vm325_vm0, %v3769_v47 }
 0xb74   :  { %2861 = vmatmul.msk.f32.gmra.mxu2 %vm325_vm0, %v3784_v45 }
 0xb7c   :  { %2862 = vmatmul.msk.f32.gmra.mxu2 %vm325_vm0, %v3792_v49 }
 0xb84   :  { %2863 = vmatmul.msk.f32.gmra.mxu2 %vm325_vm0, %v3800_v51 }
 0xb8c   :  { %2864 = vmatmul.msk.f32.gmra.mxu2 %vm325_vm0, %v3808_v53 }
 0xba0   :  { %v1918_v46 = vpop.f32.mrf.mxu3 }
 0xba1   :  { %1936 = vmatpush.msra.mxu1 %v1918_v46 }
 0xba2   :  { %2845 = vmatmul.msk.f32.vlgmr.msra.gmra.mxu1 %vm447_vm1, %v3724_v40 }
 0xbaa   :  { %2846 = vmatmul.msk.f32.gmra.mxu1 %vm447_vm1, %v4291_v4 }
 0xbb2   :  { %2847 = vmatmul.msk.f32.gmra.mxu1 %vm447_vm1, %v4292_v52 }
 0xbb7   :  { %v1799_v3 = vpop.f32.mrf.mxu2 }
 0xbb8   :  { %v1811_v8 = vadd.f32 %v1799_v3, %v3919_v31  ;;  %v4300_v31 = vld [vmem:[#allocation39_spill] sm:$0xff] }
 0xbba   :  { %2848 = vmatmul.msk.f32.gmra.mxu1 %vm447_vm1, %v4293_v56 }
 0xbbf   :  { %v1802_v47 = vpop.f32.mrf.mxu2 }
 0xbc0   :  { %v1812_v11 = vadd.f32 %v1802_v47, %v3921_v21  ;;  %v4299_v21 = vld [vmem:[#allocation38_spill] sm:$0xff] }
 0xbc7   :  { %v1805_v51 = vpop.f32.mrf.mxu2 }
 0xbc8   :  { %v1813_v40 = vadd.f32 %v1805_v51, %v3923_v43 }
 0xbcf   :  { %v1808_v19 = vpop.f32.mrf.mxu2 }
 0xbd0   :  { %v1814_v63 = vadd.f32 %v1808_v19, %v1674_v32 }
 0xbd7   :  { %v2016_v18 = vpop.f32.mrf.mxu2 }
 0xbdf   :  { %v2019_v24 = vpop.f32.mrf.mxu2 }
 0xbe7   :  { %v2022_v39 = vpop.f32.mrf.mxu2 }
 0xbef   :  { %v2025_v4 = vpop.f32.mrf.mxu2 }
 0xbf7   :  { %v2028_v3 = vpop.f32.mrf.mxu2 }
 0xc1f   :  { %v1938_v45 = vpop.f32.mrf.mxu1 }
 0xc20   :  { %v1950_v17 = vadd.f32 %v1938_v45, %v1811_v8  ;;  %v2031_v45 = vpop.f32.mrf.mxu2  ;;  %v4054_v8 = vpop.permute.xlu0 %1340 }
 0xc22   :  { %v1954_v43 = vadd.f32 %v1950_v17, %v4297_v35 }
 0xc27   :  { %v1941_v49 = vpop.f32.mrf.mxu1 }
 0xc28   :  { %v1951_v34 = vadd.f32 %v1941_v49, %v1812_v11  ;;  %v2034_v51 = vpop.f32.mrf.mxu2 }
 0xc2a   :  { %v1955_v0 = vadd.f32 %v1951_v34, %v4296_v6 }
 0xc2f   :  { %v1944_v53 = vpop.f32.mrf.mxu1 }
 0xc30   :  { %v1952_v62 = vadd.f32 %v1944_v53, %v1813_v40  ;;  %v2037_v19 = vpop.f32.mrf.mxu2 }
 0xc32   :  { %v1956_v27 = vadd.f32 %v1952_v62, %v4295_v61 }
 0xc37   :  { %v1947_v50 = vpop.f32.mrf.mxu1 }
 0xc38   :  { %v1953_v58 = vadd.f32 %v1947_v50, %v1814_v63 }
 0xc3a   :  { %v1957_v9 = vadd.f32 %v1953_v58, %v4294_v54 }
 0xc3c   :  { %1970 = vmatpush.msra.mxu3 %v1957_v9 }
 0xc3e   :  { %1971 = vmatpush.msra.mxu3 %v1956_v27 }
 0xc40   :  { %1972 = vmatpush.msra.mxu3 %v1955_v0 }
 0xc42   :  { %1973 = vmatpush.msra.mxu3 %v1954_v43 }
 0xc43   :  { %2849 = vmatmul.msk.f32.vlgmr.msra.gmra.mxu3 %vm325_vm0, %v4298_v7 }
 0xc4b   :  { %2850 = vmatmul.msk.f32.gmra.mxu3 %vm325_vm0, %v4299_v21 }
 0xc53   :  { %2851 = vmatmul.msk.f32.gmra.mxu3 %vm325_vm0, %v4300_v31 }
 0xc5b   :  { %2852 = vmatmul.msk.f32.gmra.mxu3 %vm325_vm0, %v4301_v44 }
 0xc63   :  { %2853 = vmatmul.msk.f32.gmra.mxu3 %vm325_vm0, %v4302_v37  ;;  %v1336_v37 = vpop.permute.xlu1 %1335 }
 0xc6b   :  { %2854 = vmatmul.msk.f32.gmra.mxu3 %vm325_vm0, %v4303_v14 }
 0xc73   :  { %2855 = vmatmul.msk.f32.gmra.mxu3 %vm325_vm0, %v4304_v10  ;;  %v3007_v10 = vld [vmem:[%s4271_s3 + $0x8] sm:$0xff] }
 0xc7b   :  { %2856 = vmatmul.msk.f32.gmra.mxu3 %vm325_vm0, %v4305_v42 }
 0xcc6   :  { %v1975_v25 = vpop.f32.mrf.mxu3 }
 0xcc7   :  { %v2017_v29 = vadd.f32 %v2016_v18, %v1975_v25 }
 0xcc9   :  { %v2040_v21 = vadd.f32 %v2017_v29, %v3853_v5 }
 0xcce   :  { %v1978_v46 = vpop.f32.mrf.mxu3 }
 0xccf   :  { %v2020_v6 = vadd.f32 %v2019_v24, %v1978_v46  ;;  %v3008_v24 = vld [vmem:[%s4271_s3] sm:$0xff] }
 0xcd6   :  { %v1981_v52 = vpop.f32.mrf.mxu3 }
 0xcd7   :  { %v2023_v17 = vadd.f32 %v2022_v39, %v1981_v52  ;;  %v2139_v39 = vpop.permute.xlu1 %2138 }
 0xcde   :  { %v1984_v56 = vpop.f32.mrf.mxu3 }
 0xcdf   :  { %v2026_v34 = vadd.f32 %v2025_v4, %v1984_v56 }
 0xce1   :  { %v2043_v0 = vadd.f32 %v2026_v34, %v3842_v30  ;;  %v3005_v30 = vld [vmem:[%s4271_s3 + $0x18] sm:$0xff] }
 0xce2   :  { %v1318_v44 = vadd.f32 %v3005_v30, %v3882_v20  ;;  %v1316_v20 = vadd.f32 %v3007_v10, %v3878_v22  ;;  %v4307_v22 = vld [vmem:[#allocation46_spill] sm:$0xff] }
 0xce3   :  { %v2051_v7 = vmax.f32 %v2043_v0, 0.0 }
 0xce4   :  { %v1346_v5 = vadd.f32 %v4054_v8, %v1318_v44 }
 0xce6   :  { %v1987_v47 = vpop.f32.mrf.mxu3 }
 0xce7   :  { %v2029_v11 = vadd.f32 %v2028_v3, %v1987_v47 }
 0xce9   :  { %v2044_v61 = vadd.f32 %v2029_v11, %v3838_v48 }
 0xceb   :  { %v2052_v43 = vmax.f32 %v2044_v61, 0.0 }
 0xcee   :  { %v1990_v49 = vpop.f32.mrf.mxu3 }
 0xcef   :  { %v2032_v63 = vadd.f32 %v2031_v45, %v1990_v49 }
 0xcf1   :  { %v2045_v54 = vadd.f32 %v2032_v63, %v3836_v55  ;;  %v1331_v55 = vpop.permute.xlu0 %1330 }
 0xcf2   :  { %v1344_v25 = vadd.f32 %v1331_v55, %v1316_v20 }
 0xcf3   :  { %v2053_v35 = vmax.f32 %v2045_v54, 0.0 }
 0xcf6   :  { %v1993_v53 = vpop.f32.mrf.mxu3 }
 0xcf7   :  { %v2035_v32 = vadd.f32 %v2034_v51, %v1993_v53 }
 0xcf9   :  { %v2046_v62 = vadd.f32 %v2035_v32, %v3832_v41  ;;  %v2042_v41 = vadd.f32 %v2023_v17, %v3847_v57  ;;  %v2048_v57 = vmax.f32 %v2040_v21, 0.0  ;;  %v1326_v18 = vpop.permute.xlu0 %1325 }
 0xcfb   :  { %v2054_v27 = vmax.f32 %v2046_v62, 0.0  ;;  %v2050_v31 = vmax.f32 %v2042_v41, 0.0 }
 0xcfe   :  { %v1996_v40 = vpop.f32.mrf.mxu3 }
 0xcff   :  { %v2038_v50 = vadd.f32 %v2037_v19, %v1996_v40 }
 0xd01   :  { %v2047_v58 = vadd.f32 %v2038_v50, %v3830_v23  ;;  %v2041_v23 = vadd.f32 %v2020_v6, %v3850_v60  ;;  %v3006_v60 = vld [vmem:[%s4271_s3 + $0x10] sm:$0xff]  ;;  %v2141_v46 = vpop.permute.xlu0 %2140 }
 0xd02   :  { %v1317_v14 = vadd.f32 %v3006_v60, %v3880_v15  ;;  %v1315_v15 = vadd.f32 %v3008_v24, %v3876_v1  ;;  %v2143_v1 = vpop.permute.xlu1 %2142 }
 0xd03   :  { %v2055_v9 = vmax.f32 %v2047_v58, 0.0  ;;  %v2049_v48 = vmax.f32 %v2041_v23, 0.0 }
 0xd04   :  { %v1345_v42 = vadd.f32 %v1336_v37, %v1317_v14  ;;  %v1343_v29 = vadd.f32 %v1326_v18, %v1315_v15 }
 0xd05   :  { %2064 = vmatpush.msra.mxu0 %v2055_v9 }
 0xd07   :  { %2065 = vmatpush.msra.mxu0 %v2054_v27 }
 0xd09   :  { %2066 = vmatpush.msra.mxu0 %v2053_v35  ;;  %v2145_v4 = vpop.permute.xlu0 %2144 }
 0xd0a   :  { %v2188_v63 = vpop.permute.xlu1 %2187 }
 0xd0b   :  { %2067 = vmatpush.msra.mxu0 %v2052_v43 }
 0xd0d   :  { %2068 = vmatpush.msra.mxu0 %v2051_v7 }
 0xd0f   :  { %2069 = vmatpush.msra.mxu0 %v2050_v31 }
 0xd11   :  { %2070 = vmatpush.msra.mxu0 %v2049_v48  ;;  %v2190_v11 = vpop.permute.xlu0 %2189 }
 0xd12   :  { %v2192_v58 = vpop.permute.xlu1 %2191 }
 0xd13   :  { %2071 = vmatpush.msra.mxu0 %v2048_v57 }
 0xd14   :  { %2865 = vmatmul.msk.f32.vlgmr.msra.gmra.mxu0 %vm1273_vm4, %v3856_v2  ;;  %v4306_v2 = vld [vmem:[#allocation45_spill] sm:$0xff] }
 0xd15   :  { %2166 = vmatpush.msrb.mxu0 %v1346_v5 }
 0xd17   :  { %2167 = vmatpush.msrb.mxu0 %v1345_v42 }
 0xd19   :  { %2168 = vmatpush.msrb.mxu0 %v1344_v25 }
 0xd1a   :  { %v2341_v31 = vpop.permute.xlu1 %2340 }
 0xd1b   :  { %2169 = vmatpush.msrb.mxu0 %v1343_v29 }
 0xd1c   :  { %2866 = vmatmul.msk.f32.gmra.mxu0 %vm1273_vm4, %v3862_v12 }
 0xd22   :  { %v2331_v29 = vpop.permute.xlu1 %2330 }
 0xd24   :  { %2867 = vmatmul.msk.f32.gmra.mxu0 %vm1273_vm4, %v4306_v2 }
 0xd2c   :  { %2868 = vmatmul.msk.f32.gmra.mxu0 %vm1273_vm4, %v4307_v22  ;;  %vm2287_vm4 = vcmask 1043456  }
 0xd34   :  { %2873 = vmatmul.msk.f32.vlgmr.msrb.gmra.mxu0 %vm325_vm0, %v2139_v39 }
 0xd3c   :  { %2874 = vmatmul.msk.f32.gmra.mxu0 %vm325_vm0, %v2141_v46 }
 0xd44   :  { %2875 = vmatmul.msk.f32.gmra.mxu0 %vm325_vm0, %v2143_v1  ;;  %v2356_v1 = vld [vmem:[%s4230_s17] sm:$0x1] }
 0xd4c   :  { %2876 = vmatmul.msk.f32.gmra.mxu0 %vm325_vm0, %v2145_v4 }
 0xd91   :  { %v2073_v52 = vpop.f32.mrf.mxu0 }
 0xd92   :  { %v2085_v53 = vadd.f32 %v3995_v33, %v2073_v52  ;;  %v2183_v33 = vld [vmem:[#allocation5] sm:$0xff] }
 0xd94   :  { %v2089_v40 = vadd.f32 %v2085_v53, %v1326_v18 }
 0xd99   :  { %v2076_v12 = vpop.f32.mrf.mxu0 }
 0xd9a   :  { %v2086_v49 = vadd.f32 %v3989_v26, %v2076_v12  ;;  %v4110_v26 = vld [vmem:[%s4232_s19] sm:$0xf] }
 0xd9b   :  { %2885 = vmatpush.msk.msrb.mxu2 %vm2287_vm4, %v4110_v26 }
 0xd9c   :  { %v2090_v32 = vadd.f32 %v2086_v49, %v1331_v55  ;;  %v2346_v55 = vpop.permute.xlu0 %2345 }
 0xda1   :  { %v2079_v56 = vpop.f32.mrf.mxu0 }
 0xda2   :  { %v2087_v47 = vadd.f32 %v3983_v16, %v2079_v56  ;;  %v2233_v16 = vld [vmem:[%s4233_s20] sm:$0xff] }
 0xda3   :  { %2261 = vmatpush.msrb.mxu3 %v2233_v16 }
 0xda4   :  { %v2091_v19 = vadd.f32 %v2087_v47, %v1336_v37  ;;  %v2336_v24 = vpop.permute.xlu0 %2335 }
 0xda9   :  { %v2082_v3 = vpop.f32.mrf.mxu0 }
 0xdaa   :  { %v2088_v45 = vadd.f32 %v3977_v28, %v2082_v3 }
 0xdac   :  { %v2092_v51 = vadd.f32 %v2088_v45, %v4054_v8  ;;  %v2194_v8 = vpop.permute.xlu2 %2193  ;;  %v2361_v4 = vpop.permute.xlu0 %2360 }
 0xdad   :  { %v2363_v52 = vperm.slane %v2361_v4, 0 }
 0xdae   :  { %2121 = vmatpush.msrb.mxu1 %v2092_v51 }
 0xdb0   :  { %2122 = vmatpush.msrb.mxu1 %v2091_v19 }
 0xdb1   :  { %v2171_v28 = vpop.f32.mrf.mxu0 }
 0xdb2   :  { %2123 = vmatpush.msrb.mxu1 %v2090_v32  ;;  %2881 = vmatmul.msk.f32.vlgmr.msrb.gmra.mxu3 %vm447_vm1, %v2171_v28 }
 0xdb4   :  { %2124 = vmatpush.msrb.mxu1 %v2089_v40 }
 0xdb5   :  { %2869 = vmatmul.msk.f32.vlgmr.msrb.gmra.mxu1 %vm325_vm0, %v3957_v36  ;;  %v2185_v36 = vld [vmem:[#allocation5 + $0x10] sm:$0xff] }
 0xdbd   :  { %2870 = vmatmul.msk.f32.gmra.mxu1 %vm325_vm0, %v3942_v59  ;;  %v2186_v59 = vld [vmem:[#allocation5 + $0x18] sm:$0xff] }
 0xdbe   :  { %2215 = vmatpush.msra.mxu1 %v2186_v59  ;;  %v2437_v59 = vstv %s4236_s23 }
 0xdc0   :  { %2216 = vmatpush.msra.mxu1 %v2185_v36 }
 0xdc5   :  { %2871 = vmatmul.msk.f32.gmra.mxu1 %vm325_vm0, %v3961_v13  ;;  %v2174_v13 = vpop.f32.mrf.mxu0 }
 0xdc6   :  { %2882 = vmatmul.msk.f32.gmra.mxu3 %vm447_vm1, %v2174_v13 }
 0xdcd   :  { %2872 = vmatmul.msk.f32.gmra.mxu1 %vm325_vm0, %v3929_v38  ;;  %v2184_v38 = vld [vmem:[#allocation5 + $0x8] sm:$0xff]  ;;  %v2177_v50 = vpop.f32.mrf.mxu0 }
 0xdce   :  { %2217 = vmatpush.msra.mxu1 %v2184_v38  ;;  %2883 = vmatmul.msk.f32.gmra.mxu3 %vm447_vm1, %v2177_v50 }
 0xdd0   :  { %2218 = vmatpush.msra.mxu1 %v2183_v33 }
 0xdd2   :  { %2891 = vmatpush.xpose.msk.msrb.mxu1 %vm325_vm0, %v2233_v16 }
 0xdd5   :  { %2877 = vmatmul.msk.f32.vlgmr.msra.gmra.mxu1 %vm325_vm0, %v2188_v63  ;;  %v2180_v62 = vpop.f32.mrf.mxu0 }
 0xdd6   :  { %2884 = vmatmul.msk.f32.gmra.mxu3 %vm447_vm1, %v2180_v62  ;;  %vm2415_vm1 = vcmask 60416  }
 0xddd   :  { %2878 = vmatmul.msk.f32.gmra.mxu1 %vm325_vm0, %v2190_v11 }
 0xde5   :  { %2879 = vmatmul.msk.f32.gmra.mxu1 %vm325_vm0, %v2192_v58 }
 0xded   :  { %2880 = vmatmul.msk.f32.gmra.mxu1 %vm325_vm0, %v2194_v8 }
 0xe32   :  { %v2126_v34 = vpop.f32.mrf.mxu1 }
 0xe33   :  { %2886 = vmatmul.msk.f32.vlgmr.msrb.gmra.mxu2 %vm1485_vm10, %v2126_v34 }
 0xe35   :  { %v2263_v61 = vpop.f32.mrf.mxu3 }
 0xe3a   :  { %v2129_v54 = vpop.f32.mrf.mxu1 }
 0xe3b   :  { %2887 = vmatmul.msk.f32.gmra.mxu2 %vm1485_vm10, %v2129_v54 }
 0xe42   :  { %v2132_v9 = vpop.f32.mrf.mxu1 }
 0xe43   :  { %2888 = vmatmul.msk.f32.gmra.mxu2 %vm1485_vm10, %v2132_v9 }
 0xe49   :  { %v2266_v0 = vpop.f32.mrf.mxu3 }
 0xe4a   :  { %v2135_v17 = vpop.f32.mrf.mxu1 }
 0xe4b   :  { %2889 = vmatmul.msk.f32.gmra.mxu2 %vm1485_vm10, %v2135_v17  ;;  %vm2439_vm10 = vcmask 69632  }
 0xe4c   :  { %2440 = vst.msk [vmem:[#allocation2] sm:$0x1f] %vm2439_vm10, %v2437_v59 }
 0xe51   :  { %v2269_v43 = vpop.f32.mrf.mxu3 }
 0xe52   :  { %v2220_v27 = vpop.f32.mrf.mxu1 }
 0xe59   :  { %v2272_v48 = vpop.f32.mrf.mxu3 }
 0xe5a   :  { %v2223_v35 = vpop.f32.mrf.mxu1 }
 0xe62   :  { %v2226_v23 = vpop.f32.mrf.mxu1 }
 0xe6a   :  { %v2229_v57 = vpop.f32.mrf.mxu1 }
 0xeb6   :  { %v2308_v6 = vpop.f32.mrf.mxu2 }
 0xeb7   :  { %v2309_v37 = vadd.f32 %v2308_v6, %v2263_v61 }
 0xeb9   :  { %v2320_v20 = vadd.f32 %v2309_v37, %v2220_v27 }
 0xebb   :  { %v2348_v2 = vadd.f32 %v2331_v29, %v2320_v20 }
 0xebd   :  { %v2352_v46 = vmax.f32 %v2348_v2, 0.0 }
 0xebe   :  { %v2311_v41 = vpop.f32.mrf.mxu2 }
 0xebf   :  { %v2312_v30 = vadd.f32 %v2311_v41, %v2266_v0 }
 0xec1   :  { %v2321_v5 = vadd.f32 %v2312_v30, %v2223_v35 }
 0xec3   :  { %v2349_v15 = vadd.f32 %v2336_v24, %v2321_v5 }
 0xec5   :  { %v2353_v39 = vmax.f32 %v2349_v15, 0.0 }
 0xec6   :  { %v2314_v7 = vpop.f32.mrf.mxu2 }
 0xec7   :  { %v2315_v21 = vadd.f32 %v2314_v7, %v2269_v43 }
 0xec9   :  { %v2322_v60 = vadd.f32 %v2315_v21, %v2226_v23  ;;  %v4149_v23 = vld [vmem:[%s4234_s21] sm:$0x1f] }
 0xecb   :  { %v2350_v42 = vadd.f32 %v2341_v31, %v2322_v60 }
 0xecd   :  { %v2354_v22 = vmax.f32 %v2350_v42, 0.0 }
 0xece   :  { %v2317_v44 = vpop.f32.mrf.mxu2 }
 0xecf   :  { %v2318_v14 = vadd.f32 %v2317_v44, %v2272_v48 }
 0xed1   :  { %v2323_v10 = vadd.f32 %v2318_v14, %v2229_v57 }
 0xed3   :  { %v2351_v18 = vadd.f32 %v2346_v55, %v2323_v10 }
 0xed5   :  { %v2355_v25 = vmax.f32 %v2351_v18, 0.0 }
 0xed7   :  { %2379 = vmatpush.msra.mxu0 %v2355_v25 }
 0xed9   :  { %2380 = vmatpush.msra.mxu0 %v2354_v22 }
 0xedb   :  { %2381 = vmatpush.msra.mxu0 %v2353_v39 }
 0xedd   :  { %2382 = vmatpush.msra.mxu0 %v2352_v46  ;;  %v4158_v46 = vld [vmem:[%s4235_s22] sm:$0x1] }
 0xede   :  { %2890 = vmatmul.msk.f32.vlgmr.msra.gmra.mxu0 %vm325_vm0, %v2356_v1 }
 0xf5b   :  { %v2384_v12 = vpop.f32.mrf.mxu0 }
 0xf5c   :  { %v2385_v56 = vadd.f32 %v2384_v12, %v2363_v52 }
 0xf5e   :  { %v2387_v3 = vperm.slane %v2385_v56, 0 }
 0xf60   :  { %v2388_v47 = vmul.f32 %v2387_v3, %v4110_v26 }
 0xf62   :  { %2892 = vmatmul.msk.f32.vlgmr.msrb.gmra.mxu1 %vm325_vm0, %v2388_v47 }
 0xfdf   :  { %v2412_v45 = vpop.f32.mrf.mxu1 }
 0xfe0   :  { %v2416_v49 = vsel %vm2415_vm1, %v2412_v45, -inf }
 0xfe1   :  { %v2417_v51 = vrot.slane %v2416_v49, 4 }
 0xfe3   :  { %v2418_v53 = vmax.f32 %v2416_v49, %v2417_v51 }
 0xfe5   :  { %v2419_v19 = vrot.slane %v2418_v53, 2 }
 0xfe7   :  { %v2420_v32 = vmax.f32 %v2418_v53, %v2419_v19 }
 0xfe9   :  { %v2421_v40 = vrot.slane %v2420_v32, 1 }
 0xfeb   :  { %v2422_v28 = vmax.f32 %v2420_v32, %v2421_v40 }
 0xfed   :  { %v2423_v16 = vsub.f32 %v2412_v45, %v2422_v28 }
 0xfef   :  { %v2424_v36 = vmul.f32 1.442695, %v2423_v16 }
 0xff1   :  { %2957 = vpow2.f32 %v2424_v36 }
 0xff7   :  { %v2958_v26 = vpop.eup %2957 }
 0xff8   :  { %v2426_v38 = vsel %vm2415_vm1, %v2958_v26, 0.0 }
 0xff9   :  { %v2427_v13 = vrot.slane %v2426_v38, 4 }
 0xffb   :  { %v2428_v33 = vadd.f32 %v2427_v13, %v2426_v38 }
 0xffd   :  { %v2429_v63 = vrot.slane %v2428_v33, 2 }
 0xfff   :  { %v2430_v50 = vadd.f32 %v2429_v63, %v2428_v33 }
0x1001   :  { %v2431_v11 = vrot.slane %v2430_v50, 1 }
0x1003   :  { %v2432_v62 = vadd.f32 %v2431_v11, %v2430_v50 }
0x1005   :  { %2959 = vlog2.f32 %v2432_v62 }
0x100b   :  { %v2960_v58 = vpop.eup %2959 }
0x100c   :  { %v2434_v8 = vmul.f32 0.6931472, %v2960_v58 }
0x100e   :  { %v2435_v34 = vsub.f32 %v2423_v16, %v2434_v8 }
0x1010   :  { %2441 = vst.msk [vmem:[#allocation2] sm:$0xf] %vm2415_vm1, %v2435_v34 }
0x1017   :  { %v4140_v54 = vld [vmem:[#allocation2] sm:$0x1f] }
0x1018   :  { %v2446_v9 = vsel %vm2439_vm10, %v4140_v54, -inf }
0x1019   :  { %2447 = vmax.xlane.f32.xlu1 %v2446_v9 }
0x108c   :  { %v2448_v17 = vpop.xlane.xlu1 %2447 }
0x108d   :  { %v2449_v61 = vsub.f32 %v4140_v54, %v2448_v17 }
0x108f   :  { %v2450_v27 = vmul.f32 1.442695, %v2449_v61 }
0x1091   :  { %2961 = vpow2.f32 %v2450_v27 }
0x1097   :  { %v2962_v6 = vpop.eup %2961 }
0x1098   :  { %v2452_v0 = vsel %vm2439_vm10, %v2962_v6, 0.0 }
0x1099   :  { %2453 = vadd.xlane.f32.xlu2 %v2452_v0 }
0x110c   :  { %v2454_v35 = vpop.xlane.xlu2 %2453 }
0x110d   :  { %2963 = vlog2.f32 %v2454_v35 }
0x1113   :  { %v2964_v41 = vpop.eup %2963 }
0x1114   :  { %v2456_v43 = vmul.f32 0.6931472, %v2964_v41 }
0x1116   :  { %v2457_v7 = vadd.f32 %v2456_v43, %v2448_v17 }
0x1118   :  { %v2458_v55 = vsub.f32 %v4149_v23, %v2457_v7 }
0x111a   :  { %2461 = vperm.xlu0 %2916, %v2458_v55  }
0x118c   :  { %v2462_v21 = vpop.permute.xlu0 %2461 }
0x118d   :  { %v2464_v31 = vadd.f32 %v2462_v21, %v4140_v54 }
0x118f   :  { %v2465_v48 = vsel %vm2439_vm10, %v2464_v31, -inf }
0x1190   :  { %v2466_v30 = vrot.slane %v2465_v48, 4 }
0x1192   :  { %v2467_v44 = vmax.f32 %v2465_v48, %v2466_v30 }
0x1194   :  { %v2468_v57 = vrot.slane %v2467_v44, 2 }
0x1196   :  { %v2469_v37 = vmax.f32 %v2467_v44, %v2468_v57 }
0x1198   :  { %v2470_v60 = vrot.slane %v2469_v37, 1 }
0x119a   :  { %v2471_v14 = vmax.f32 %v2469_v37, %v2470_v60 }
0x119c   :  { %v2472_v5 = vsub.f32 %v2464_v31, %v2471_v14 }
0x119e   :  { %v2473_v10 = vmul.f32 1.442695, %v2472_v5 }
0x11a0   :  { %2965 = vpow2.f32 %v2473_v10 }
0x11a6   :  { %v2966_v20 = vpop.eup %2965 }
0x11a7   :  { %v2475_v42 = vsel %vm2439_vm10, %v2966_v20, 0.0 }
0x11a8   :  { %v2476_v18 = vrot.slane %v2475_v42, 4 }
0x11aa   :  { %v2477_v24 = vadd.f32 %v2476_v18, %v2475_v42 }
0x11ac   :  { %v2478_v15 = vrot.slane %v2477_v24, 2 }
0x11ae   :  { %v2479_v25 = vadd.f32 %v2478_v15, %v2477_v24 }
0x11b0   :  { %v2480_v29 = vrot.slane %v2479_v25, 1 }
0x11b2   :  { %v2481_v2 = vadd.f32 %v2480_v29, %v2479_v25 }
0x11b4   :  { %2967 = vlog2.f32 %v2481_v2 }
0x11ba   :  { %v2968_v22 = vpop.eup %2967 }
0x11bb   :  { %v2483_v39 = vmul.f32 0.6931472, %v2968_v22 }
0x11bd   :  { %v2484_v1 = vadd.f32 %v2483_v39, %v2471_v14 }
0x11bf   :  { %v2485_v4 = vsub.f32 %v4158_v46, %v2484_v1 }
0x11c1   :  { %v2487_v52 = vperm.slane %v2485_v4, 0 }
0x11c3   :  { %v2489_v12 = vadd.f32 %v2487_v52, %v4140_v54 }
0x11c5   :  { %v2490_v56 = vsel %vm2439_vm10, %v2489_v12, -inf }
0x11c6   :  { %2491 = vmax.xlane.f32.xlu0 %v2490_v56 }
0x1239   :  { %v2492_v3 = vpop.xlane.xlu0 %2491 }
0x123a   :  { %v2493_v47 = vsub.f32 %v2489_v12, %v2492_v3 }
0x123c   :  { %v2494_v45 = vmul.f32 1.442695, %v2493_v47 }
0x123e   :  { %2969 = vpow2.f32 %v2494_v45 }
0x1244   :  { %v2970_v49 = vpop.eup %2969 }
0x1245   :  { %v2496_v51 = vsel %vm2439_vm10, %v2970_v49, 0.0 }
0x1246   :  { %2497 = vadd.xlane.f32.xlu1 %v2496_v51 }
0x12b9   :  { %v2498_v53 = vpop.xlane.xlu1 %2497 }
0x12ba   :  { %2971 = vlog2.f32 %v2498_v53 }
0x12c0   :  { %v2972_v19 = vpop.eup %2971 }
0x12c1   :  { %v2500_v32 = vmul.f32 0.6931472, %v2972_v19 }
0x12c3   :  { %v2501_v40 = vadd.f32 %v2500_v32, %v2492_v3 }
0x12c5   :  { %v2502_v28 = vsub.f32 %v4149_v23, %v2501_v40 }
0x12c7   :  { %2505 = vperm.xlu2 %2917, %v2502_v28  }
0x1321   :  { %v2506_v16 = vpop.permute.xlu2 %2505 }
0x1322   :  { %v2508_v59 = vadd.f32 %v2506_v16, %v4140_v54 }
0x1324   :  { %v2509_v36 = vsel %vm2439_vm10, %v2508_v59, -inf }
0x1325   :  { %v2510_v26 = vrot.slane %v2509_v36, 4 }
0x1327   :  { %v2511_v38 = vmax.f32 %v2509_v36, %v2510_v26 }
0x1329   :  { %v2512_v13 = vrot.slane %v2511_v38, 2 }
0x132b   :  { %v2513_v33 = vmax.f32 %v2511_v38, %v2512_v13 }
0x132d   :  { %v2514_v63 = vrot.slane %v2513_v33, 1 }
0x132f   :  { %v2515_v50 = vmax.f32 %v2513_v33, %v2514_v63 }
0x1331   :  { %v2516_v11 = vsub.f32 %v2508_v59, %v2515_v50 }
0x1333   :  { %v2517_v62 = vmul.f32 1.442695, %v2516_v11 }
0x1335   :  { %2973 = vpow2.f32 %v2517_v62 }
0x133b   :  { %v2974_v58 = vpop.eup %2973 }
0x133c   :  { %v2519_v8 = vsel %vm2439_vm10, %v2974_v58, 0.0 }
0x133d   :  { %v2520_v34 = vrot.slane %v2519_v8, 4 }
0x133f   :  { %v2521_v9 = vadd.f32 %v2520_v34, %v2519_v8 }
0x1341   :  { %v2522_v17 = vrot.slane %v2521_v9, 2 }
0x1343   :  { %v2523_v61 = vadd.f32 %v2522_v17, %v2521_v9 }
0x1345   :  { %v2524_v27 = vrot.slane %v2523_v61, 1 }
0x1347   :  { %v2525_v6 = vadd.f32 %v2524_v27, %v2523_v61 }
0x1349   :  { %2975 = vlog2.f32 %v2525_v6 }
0x134f   :  { %v2976_v0 = vpop.eup %2975 }
0x1350   :  { %v2527_v35 = vmul.f32 0.6931472, %v2976_v0 }
0x1352   :  { %v2528_v41 = vadd.f32 %v2527_v35, %v2515_v50 }
0x1354   :  { %v2529_v43 = vsub.f32 %v4158_v46, %v2528_v41 }
0x1356   :  { %v2531_v7 = vperm.slane %v2529_v43, 0 }
0x1358   :  { %v2533_v55 = vadd.f32 %v2531_v7, %v4140_v54 }
0x135a   :  { %v2534_v21 = vsel %vm2439_vm10, %v2533_v55, -inf }
0x135b   :  { %2535 = vmax.xlane.f32.xlu1 %v2534_v21 }
0x13ce   :  { %v2536_v31 = vpop.xlane.xlu1 %2535 }
0x13cf   :  { %v2537_v48 = vsub.f32 %v2533_v55, %v2536_v31 }
0x13d1   :  { %v2538_v30 = vmul.f32 1.442695, %v2537_v48 }
0x13d3   :  { %2977 = vpow2.f32 %v2538_v30 }
0x13d9   :  { %v2978_v44 = vpop.eup %2977 }
0x13da   :  { %v2540_v57 = vsel %vm2439_vm10, %v2978_v44, 0.0 }
0x13db   :  { %2541 = vadd.xlane.f32.xlu0 %v2540_v57 }
0x144e   :  { %v2542_v37 = vpop.xlane.xlu0 %2541 }
0x144f   :  { %2979 = vlog2.f32 %v2542_v37 }
0x1455   :  { %v2980_v60 = vpop.eup %2979 }
0x1456   :  { %v2544_v14 = vmul.f32 0.6931472, %v2980_v60 }
0x1458   :  { %v2545_v5 = vadd.f32 %v2544_v14, %v2536_v31 }
0x145a   :  { %v2546_v10 = vsub.f32 %v4149_v23, %v2545_v5 }
0x145c   :  { %2549 = vperm.xlu1 %2918, %v2546_v10  }
0x14ce   :  { %v2550_v20 = vpop.permute.xlu1 %2549 }
0x14cf   :  { %v2552_v42 = vadd.f32 %v2550_v20, %v4140_v54 }
0x14d1   :  { %v2553_v18 = vsel %vm2439_vm10, %v2552_v42, -inf }
0x14d2   :  { %v2554_v24 = vrot.slane %v2553_v18, 4 }
0x14d4   :  { %v2555_v15 = vmax.f32 %v2553_v18, %v2554_v24  ;;  %v3302_v18 = vmov 1  }
0x14d6   :  { %v2556_v25 = vrot.slane %v2555_v15, 2 }
0x14d8   :  { %v2557_v29 = vmax.f32 %v2555_v15, %v2556_v25 }
0x14da   :  { %v2558_v2 = vrot.slane %v2557_v29, 1 }
0x14dc   :  { %v2559_v22 = vmax.f32 %v2557_v29, %v2558_v2 }
0x14de   :  { %v2560_v39 = vsub.f32 %v2552_v42, %v2559_v22  ;;  %v2669_v42 = vld [vmem:[%s4308_s14] sm:$0xf] }
0x14e0   :  { %v2561_v1 = vmul.f32 1.442695, %v2560_v39 }
0x14e2   :  { %2981 = vpow2.f32 %v2561_v1 }
0x14e8   :  { %v2982_v4 = vpop.eup %2981 }
0x14e9   :  { %v2563_v52 = vsel %vm2439_vm10, %v2982_v4, 0.0 }
0x14ea   :  { %v2564_v12 = vrot.slane %v2563_v52, 4 }
0x14ec   :  { %v2565_v56 = vadd.f32 %v2564_v12, %v2563_v52 }
0x14ee   :  { %v2566_v3 = vrot.slane %v2565_v56, 2 }
0x14f0   :  { %v2567_v47 = vadd.f32 %v2566_v3, %v2565_v56  ;;  %v3304_v56 = vmov 2  }
0x14f2   :  { %v2568_v45 = vrot.slane %v2567_v47, 1 }
0x14f4   :  { %v2569_v49 = vadd.f32 %v2568_v45, %v2567_v47 }
0x14f6   :  { %2983 = vlog2.f32 %v2569_v49 }
0x14fc   :  { %v2984_v51 = vpop.eup %2983 }
0x14fd   :  { %v2571_v53 = vmul.f32 0.6931472, %v2984_v51 }
0x14ff   :  { %v2572_v19 = vadd.f32 %v2571_v53, %v2559_v22  ;;  %v3303_v22 = vmov 3  }
0x1501   :  { %v2573_v32 = vsub.f32 %v4158_v46, %v2572_v19 }
0x1503   :  { %v2575_v40 = vperm.slane %v2573_v32, 0 }
0x1505   :  { %v2577_v28 = vadd.f32 %v2575_v40, %v4140_v54 }
0x1507   :  { %v2578_v16 = vsel %vm2439_vm10, %v2577_v28, -inf }
0x1508   :  { %2579 = vmax.xlane.f32.xlu0 %v2578_v16 }
0x157b   :  { %v2580_v59 = vpop.xlane.xlu0 %2579 }
0x157c   :  { %v2581_v36 = vsub.f32 %v2577_v28, %v2580_v59 }
0x157e   :  { %v2582_v26 = vmul.f32 1.442695, %v2581_v36 }
0x1580   :  { %2985 = vpow2.f32 %v2582_v26 }
0x1586   :  { %v2986_v38 = vpop.eup %2985 }
0x1587   :  { %v2584_v13 = vsel %vm2439_vm10, %v2986_v38, 0.0 }
0x1588   :  { %2585 = vadd.xlane.f32.xlu2 %v2584_v13 }
0x15fb   :  { %v2586_v33 = vpop.xlane.xlu2 %2585 }
0x15fc   :  { %2987 = vlog2.f32 %v2586_v33 }
0x1602   :  { %v2988_v63 = vpop.eup %2987 }
0x1603   :  { %v2588_v50 = vmul.f32 0.6931472, %v2988_v63 }
0x1605   :  { %v2589_v11 = vadd.f32 %v2588_v50, %v2580_v59 }
0x1607   :  { %v2590_v62 = vsub.f32 %v4149_v23, %v2589_v11 }
0x1609   :  { %2593 = vperm.xlu0 %2916, %v2590_v62  }
0x1611   :  { %2919 = vset.pattern.permute.xlu0 %v3302_v18 }
0x167b   :  { %v2594_v58 = vpop.permute.xlu0 %2593 }
0x167c   :  { %v2596_v8 = vadd.f32 %v2594_v58, %v4140_v54 }
0x167e   :  { %v2597_v34 = vsel %vm2439_vm10, %v2596_v8, -inf }
0x167f   :  { %v2598_v9 = vrot.slane %v2597_v34, 4 }
0x1681   :  { %v2599_v17 = vmax.f32 %v2597_v34, %v2598_v9 }
0x1683   :  { %v2600_v61 = vrot.slane %v2599_v17, 2 }
0x1685   :  { %v2601_v27 = vmax.f32 %v2599_v17, %v2600_v61 }
0x1687   :  { %v2602_v6 = vrot.slane %v2601_v27, 1 }
0x1689   :  { %v2603_v0 = vmax.f32 %v2601_v27, %v2602_v6 }
0x168b   :  { %v2604_v35 = vsub.f32 %v2596_v8, %v2603_v0 }
0x168d   :  { %v2605_v41 = vmul.f32 1.442695, %v2604_v35 }
0x168f   :  { %2989 = vpow2.f32 %v2605_v41 }
0x1695   :  { %v2990_v43 = vpop.eup %2989 }
0x1696   :  { %v2607_v7 = vsel %vm2439_vm10, %v2990_v43, 0.0 }
0x1697   :  { %v2608_v55 = vrot.slane %v2607_v7, 4 }
0x1699   :  { %v2609_v21 = vadd.f32 %v2608_v55, %v2607_v7 }
0x169b   :  { %v2610_v31 = vrot.slane %v2609_v21, 2 }
0x169d   :  { %v2611_v48 = vadd.f32 %v2610_v31, %v2609_v21 }
0x169f   :  { %v2612_v30 = vrot.slane %v2611_v48, 1 }
0x16a1   :  { %v2613_v44 = vadd.f32 %v2612_v30, %v2611_v48  ;;  %v2924_v48 = vld [vmem:[%s4309_s13 + $0x1] ss:$0 sm:$0xff] }
0x16a3   :  { %2991 = vlog2.f32 %v2613_v44 }
0x16a9   :  { %v2992_v57 = vpop.eup %2991 }
0x16aa   :  { %v2615_v37 = vmul.f32 0.6931472, %v2992_v57  ;;  %v2923_v57 = vld [vmem:[%s4309_s13] ss:$0 sm:$0xff] }
0x16ac   :  { %v2616_v60 = vadd.f32 %v2615_v37, %v2603_v0 }
0x16ae   :  { %v2617_v14 = vsub.f32 %v4158_v46, %v2616_v60 }
0x16b0   :  { %v2619_v5 = vperm.slane %v2617_v14, 0 }
0x16b2   :  { %v2621_v10 = vadd.f32 %v2619_v5, %v4140_v54 }
0x16b4   :  { %v2622_v20 = vsel %vm2439_vm10, %v2621_v10, -inf }
0x16b5   :  { %2623 = vmax.xlane.f32.xlu1 %v2622_v20 }
0x16ce   :  { %2673 = vperm.xlu1 %2918, %v2669_v42  }
0x1728   :  { %v2624_v24 = vpop.xlane.xlu1 %2623 }
0x1729   :  { %v2625_v15 = vsub.f32 %v2621_v10, %v2624_v24 }
0x172b   :  { %v2626_v25 = vmul.f32 1.442695, %v2625_v15  ;;  %v3305_v15 = vmov 0.0  }
0x172d   :  { %2993 = vpow2.f32 %v2626_v25 }
0x1733   :  { %v2994_v29 = vpop.eup %2993 }
0x1734   :  { %v2628_v2 = vsel %vm2439_vm10, %v2994_v29, 0.0  ;;  %v2722_v29 = vld [vmem:[%s4310_s15] sm:$0xf] }
0x1735   :  { %2629 = vadd.xlane.f32.xlu0 %v2628_v2 }
0x1740   :  { %v2674_v27 = vpop.permute.xlu1 %2673 }
0x1741   :  { %vm2676_vm12 = vcmp.lt.f32.partialorder %v2923_v57, %v2674_v27 }
0x1749   :  { %2678 = vperm.xlu0 %2919, %v2669_v42  }
0x1751   :  { %2922 = vset.pattern.permute.xlu0 %v3303_v22 }
0x17a8   :  { %v2630_v39 = vpop.xlane.xlu0 %2629 }
0x17a9   :  { %2995 = vlog2.f32 %v2630_v39 }
0x17af   :  { %v2996_v1 = vpop.eup %2995 }
0x17b0   :  { %v2632_v4 = vmul.f32 0.6931472, %v2996_v1 }
0x17b2   :  { %v2633_v52 = vadd.f32 %v2632_v4, %v2624_v24 }
0x17b4   :  { %v2634_v12 = vsub.f32 %v4149_v23, %v2633_v52 }
0x17b6   :  { %2637 = vperm.xlu2 %2917, %v2634_v12  }
0x17bb   :  { %v2679_v31 = vpop.permute.xlu0 %2678 }
0x17bc   :  { %vm2681_vm0 = vcmp.ge.f32.partialorder %v2923_v57, %v2679_v31 }
0x17bd   :  { %vm2682_vm14 = vmor %vm2676_vm12, %vm2681_vm0 }
0x17be   :  { %2920 = vset.pattern.permute.xlu2 %v3304_v56 }
0x17bf   :  { %2685 = vperm.xlu2 %2920, %v2669_v42  }
0x17c7   :  { %2921 = vset.pattern.permute.xlu2 %v3303_v22 }
0x17c8   :  { %2691 = vperm.xlu2 %2921, %v2669_v42  }
0x1810   :  { %v2638_v3 = vpop.permute.xlu2 %2637 }
0x1811   :  { %v2640_v47 = vadd.f32 %v2638_v3, %v4140_v54 }
0x1813   :  { %v2641_v45 = vsel %vm2439_vm10, %v2640_v47, -inf }
0x1814   :  { %v2642_v49 = vrot.slane %v2641_v45, 4 }
0x1816   :  { %v2643_v51 = vmax.f32 %v2641_v45, %v2642_v49 }
0x1818   :  { %v2644_v53 = vrot.slane %v2643_v51, 2 }
0x1819   :  { %v2686_v61 = vpop.permute.xlu2 %2685 }
0x181a   :  { %v2645_v19 = vmax.f32 %v2643_v51, %v2644_v53  ;;  %vm2688_vm11 = vcmp.lt.f32.partialorder %v2924_v48, %v2686_v61 }
0x181b   :  { %vm2689_vm15 = vmor %vm2682_vm14, %vm2688_vm11 }
0x181c   :  { %v2646_v32 = vrot.slane %v2645_v19, 1 }
0x181e   :  { %v2647_v40 = vmax.f32 %v2645_v19, %v2646_v32 }
0x1820   :  { %v2648_v28 = vsub.f32 %v2640_v47, %v2647_v40 }
0x1822   :  { %v2649_v16 = vmul.f32 1.442695, %v2648_v28  ;;  %v2692_v6 = vpop.permute.xlu2 %2691 }
0x1823   :  { %vm2694_vm13 = vcmp.ge.f32.partialorder %v2924_v48, %v2692_v6 }
0x1824   :  { %2997 = vpow2.f32 %v2649_v16  ;;  %vm2695_vm2 = vmor %vm2689_vm15, %vm2694_vm13 }
0x1825   :  { %v2696_v25 = vsel %vm2695_vm2, 1.0, %v3305_v15 }
0x182a   :  { %v2998_v23 = vpop.eup %2997 }
0x182b   :  { %v2651_v59 = vsel %vm2439_vm10, %v2998_v23, 0.0 }
0x182c   :  { %v2652_v36 = vrot.slane %v2651_v59, 4 }
0x182e   :  { %v2653_v26 = vadd.f32 %v2652_v36, %v2651_v59 }
0x1830   :  { %v2654_v38 = vrot.slane %v2653_v26, 2 }
0x1832   :  { %v2655_v13 = vadd.f32 %v2654_v38, %v2653_v26 }
0x1834   :  { %v2656_v33 = vrot.slane %v2655_v13, 1 }
0x1836   :  { %v2657_v54 = vadd.f32 %v2656_v33, %v2655_v13 }
0x1838   :  { %2999 = vlog2.f32 %v2657_v54 }
0x183e   :  { %v3000_v63 = vpop.eup %2999 }
0x183f   :  { %v2659_v50 = vmul.f32 0.6931472, %v3000_v63 }
0x1841   :  { %v2660_v11 = vadd.f32 %v2659_v50, %v2647_v40 }
0x1843   :  { %v2661_v62 = vsub.f32 %v4158_v46, %v2660_v11 }
0x1845   :  { %v2663_v58 = vperm.slane %v2661_v62, 0 }
0x1847   :  { %v2665_v8 = vadd.f32 %v2663_v58, %v2640_v47 }
0x1849   :  { %v2893_v34 = vadd.f32 2.4849067, %v2665_v8 }
0x184b   :  { %v2707_v9 = vsel %vm2415_vm1, %v2893_v34, -inf  ;;  %v2697_v17 = vsel %vm2415_vm1, %v2893_v34, inf }
0x184c   :  { %2708 = vmax.xlane.f32.xlu1 %v2707_v9  ;;  %2698 = vmin.xlane.f32.xlu2 %v2697_v17 }
0x18bf   :  { %v2699_v0 = vpop.xlane.xlu2 %2698  ;;  %v2709_v35 = vpop.xlane.xlu1 %2708 }
0x18c0   :  { %v2700_v41 = vsel %vm2287_vm4, %v2699_v0, inf  ;;  %v2710_v43 = vsel %vm2287_vm4, %v2709_v35, -inf }
0x18c1   :  { %v2701_v7 = vrot.slane %v2700_v41, 4  ;;  %v2711_v46 = vrot.slane %v2710_v43, 4 }
0x18c3   :  { %v2702_v55 = vmin.f32 %v2700_v41, %v2701_v7  ;;  %v2712_v21 = vmax.f32 %v2710_v43, %v2711_v46 }
0x18c5   :  { %v2703_v30 = vrot.slane %v2702_v55, 2  ;;  %v2713_v44 = vrot.slane %v2712_v21, 2 }
0x18c7   :  { %v2704_v37 = vmin.f32 %v2702_v55, %v2703_v30  ;;  %v2714_v60 = vmax.f32 %v2712_v21, %v2713_v44 }
0x18c9   :  { %v2705_v14 = vrot.slane %v2704_v37, 1  ;;  %v2715_v5 = vrot.slane %v2714_v60, 1 }
0x18cb   :  { %v2706_v10 = vmin.f32 %v2704_v37, %v2705_v14  ;;  %v2716_v20 = vmax.f32 %v2714_v60, %v2715_v5 }
0x18cd   :  { %v2717_v42 = vsub.f32 %v2706_v10, %v2716_v20 }
0x18cf   :  { %v2894_v18 = vadd.f32 -40.0, %v2717_v42  ;;  %v2895_v24 = vadd.f32 -20.0, %v2717_v42 }
0x18d1   :  { %v2719_v2 = vmul.f32 %v2894_v18, %v2696_v25  ;;  %v2723_v39 = vmul.f32 %v2895_v24, %v2722_v29 }
0x18d3   :  { %v2720_v22 = vadd.f32 %v2893_v34, %v2719_v2 }
0x18d5   :  { %v2724_v1 = vadd.f32 %v2723_v39, %v2720_v22 }
0x18d7   :  { %v2725_v4 = vmul.f32 15.0, %v2724_v1 }
0x18d9   :  { %2726 = vst.msk [vmem:[#allocation22] sm:$0xf] %vm2415_vm1, %v2725_v4 }
0x18da   :  { %2737 = dma.vmem_to_hbm [thread:$0]  %s2733_s9, 64, %s2735_s2, [#allocation7]  }
0x18db   :  { %3285 = dma.done.wait [#allocation7], 64  }
0x18dc   :  { %3286 = vsyncadd [#allocation7], 4294967232 }
0x18dd   :  { %2742 = vsyncpa [#allocation6], 1 }
0x18de   :  { %2743 = vsyncpa [#allocation9], 1 }
0x18df   :  { %2744 = vsyncpa [#allocation12], 1 }
0x18e0   :  { %2745 = vsyncpa [#allocation15], 1 }
0x18e1   :  { %2746 = vsyncpa [#allocation18], 1 }
0x18e2   :  { %2747 = vsyncpa [#allocation21], 1 }
0x18e3   :  { %2748 = vsyncpa [#allocation7], 1 }

</bundles_post_ra>
